<compile_context>
chip_gen: v5e
topology: v5e:2x2
jax: 0.10.0
libtpu: 0.0.40
codegen_flags: <defaults>
</compile_context>

<pallas_src>
import functools

import jax
import jax.numpy as jnp
from jax.experimental import pallas as pl
from jax.experimental.pallas import tpu as pltpu

BN_EPS = 1e-5


# ------------------------------ kernel bodies --------------------------------
def _accum_conv3x3(main_ref, halo_ref, w_ref):
    """9-tap 3x3 'same' conv over one row tile, accumulated in f32 on the MXU.

    main_ref: (th, W+2, Cin) bf16  -- padded rows [t*th, t*th+th)
    halo_ref: (2,  W+2, Cin) bf16  -- padded rows [t*th+th, t*th+th+2)
    w_ref:    (9, Cin, Cout) bf16  -- BN-scale-folded weights, tap-major (dy*3+dx)
    returns   (th*W, Cout) f32
    """
    th, wp, cin = main_ref.shape
    w = wp - 2
    # 1-row-halo window assembled in VMEM; taps are never materialized in HBM.
    win = jnp.concatenate([main_ref[...], halo_ref[...]], axis=0)  # (th+2, W+2, Cin)
    acc = None
    for dy in range(3):
        for dx in range(3):
            tap = win[dy:dy + th, dx:dx + w, :].reshape(th * w, cin)
            part = jnp.dot(tap, w_ref[dy * 3 + dx],
                           preferred_element_type=jnp.float32)
            acc = part if acc is None else acc + part
    return acc


def _conv_bn_kernel(main_ref, halo_ref, w_ref, b_ref, out_ref, *, relu):
    th, wp, _ = main_ref.shape
    w = wp - 2
    y = _accum_conv3x3(main_ref, halo_ref, w_ref) + b_ref[...]     # folded BN bias
    if relu:
        y = jnp.maximum(y, 0.0)
    out_ref[...] = y.reshape(th, w, -1).astype(out_ref.dtype)


def _conv_nobias_kernel(main_ref, halo_ref, w_ref, out_ref, *, relu):
    th, wp, _ = main_ref.shape
    w = wp - 2
    y = _accum_conv3x3(main_ref, halo_ref, w_ref)
    if relu:
        y = jnp.maximum(y, 0.0)
    out_ref[...] = y.reshape(th, w, -1).astype(out_ref.dtype)


def _conv_bn_add_kernel(main_ref, halo_ref, w_ref, b_ref, add_ref, out_ref,
                        *, relu, row_upsample):
    th, wp, _ = main_ref.shape
    w = wp - 2
    cout = out_ref.shape[-1]
    y = _accum_conv3x3(main_ref, halo_ref, w_ref).reshape(th, w, cout)
    add = add_ref[...]                               # bf16 add stream
    if row_upsample:
        # nearest x2 along rows only (lowering-safe leading-dim merge); columns are
        # already repeated at half row count by the wrapper.
        h2, aw, ac = add.shape
        add = jnp.broadcast_to(add[:, None, :, :], (h2, 2, aw, ac)).reshape(th, aw, ac)
    y = y + add.astype(jnp.float32) + b_ref[...]
    if relu:
        y = jnp.maximum(y, 0.0)
    out_ref[...] = y.astype(out_ref.dtype)


# ------------------------------ tiling helpers --------------------------------
def _pick_tile_h(h, w, cin, cout, need_even):
    """Largest row tile whose per-step VMEM working set stays within a few MiB,
    preferring >=2 (ideally an even number of) row tiles so both v7x TensorCores
    get work; `need_even` keeps the tile 2x-aligned for the half-res add stream."""
    budget = 6 << 20

    def tile_bytes(th):
        win = (th + 2) * (w + 2) * cin * 2       # bf16 window (+halo), incl. in-kernel copy
        tap = th * w * cin * 2                   # transient tap slice
        acc = th * w * cout * 4                  # f32 accumulator
        out = th * w * cout * 4                  # output tile (<= f32)
        return 3 * win + 3 * tap + 2 * acc + 2 * out

    cand = [d for d in range(h, 0, -1)
            if h % d == 0 and (not need_even or d % 2 == 0)]
    if not cand:                                 # defensive; H is even in practice
        cand = [d for d in range(h, 0, -1) if h % d == 0]
    for ok in (
        lambda t: tile_bytes(t) <= budget and (h // t) >= 2 and (h // t) % 2 == 0,
        lambda t: tile_bytes(t) <= budget and (h // t) >= 2,
        lambda t: tile_bytes(t) <= budget,
    ):
        for th in cand:
            if ok(th):
                return th
    return cand[-1]


def _vmem_limit(th, w, cin, cout, has_add):
    """Bytes-based VMEM request: double-buffered pipeline blocks plus in-kernel
    temporaries, clamped to [16 MiB, 40 MiB] (safe on v5e..v7x)."""
    win = (th + 2) * (w + 2) * cin * 2
    tap = th * w * cin * 2
    acc = th * w * cout * 4
    out = th * w * cout * 4
    add = th * w * cout * 2 if has_add else 0
    wts = 9 * cin * cout * 2 + cout * 4
    need = 2 * (win + out + add) + 3 * tap + 2 * acc + wts
    return int(min(40 << 20, max(16 << 20, 2 * need)))


# --------------------------- conv3x3 + BN (+add) call -------------------------
def conv3x3_bn_act(x, w_folded, bias=None, add=None, add_half_rows=False,
                   relu=True, out_dtype=jnp.bfloat16):
    """3x3 'same' conv as row-tiled Pallas call: folded-BN bias (+add) (+ReLU).

    x:        (B, H, W, Cin) float  (cast to bf16 for the MXU)
    w_folded: (3, 3, Cin, Cout) HWIO, eval-mode BN scale folded in
    bias:     (Cout,) f32 folded-BN bias, or None (no bias stream at all)
    add:      bf16 residual added before ReLU:
                add_half_rows=False -> (B, H, W, Cout)
                add_half_rows=True  -> (B, H//2, W, Cout)  (nearest row-x2 in-kernel)
    Returns (B, H, W, Cout) in out_dtype (bf16 for intermediates, f32 for outputs).
    """
    b, h, w, cin = x.shape
    cout = w_folded.shape[-1]
    th = _pick_tile_h(h, w, cin, cout, need_even=add_half_rows)
    n_t = h // th
    wp = w + 2

    # zero 'same' padding: the only HBM-side prep (no 9x im2col materialization).
    xp = jnp.pad(x.astype(jnp.bfloat16), ((0, 0), (1, 1), (1, 1), (0, 0)))
    # 2 halo rows per row tile -> each tile window = main block + halo block,
    # so the activation volume is streamed ~once.
    halo = jnp.stack(
        [xp[:, (t + 1) * th:(t + 1) * th + 2] for t in range(n_t)], axis=1)

    w9 = w_folded.reshape(9, cin, cout).astype(jnp.bfloat16)

    in_specs = [
        pl.BlockSpec((None, th, wp, cin), lambda bi, ti: (bi, ti, 0, 0)),
        pl.BlockSpec((None, None, 2, wp, cin), lambda bi, ti: (bi, ti, 0, 0, 0)),
        pl.BlockSpec((9, cin, cout), lambda bi, ti: (0, 0, 0)),
    ]
    args = [xp, halo, w9]

    if bias is not None:
        in_specs.append(pl.BlockSpec((1, cout), lambda bi, ti: (0, 0)))
        args.append(bias.reshape(1, cout).astype(jnp.float32))

    if add is not None:
        assert bias is not None
        ath = th // 2 if add_half_rows else th
        in_specs.append(pl.BlockSpec((None, ath, w, cout),
                                     lambda bi, ti: (bi, ti, 0, 0)))
        args.append(add.astype(jnp.bfloat16))
        kernel = functools.partial(_conv_bn_add_kernel, relu=relu,
                                   row_upsample=add_half_rows)
    elif bias is not None:
        kernel = functools.partial(_conv_bn_kernel, relu=relu)
    else:
        kernel = functools.partial(_conv_nobias_kernel, relu=relu)

    return pl.pallas_call(
        kernel,
        out_shape=jax.ShapeDtypeStruct((b, h, w, cout), out_dtype),
        grid=(b, n_t),
        in_specs=in_specs,
        out_specs=pl.BlockSpec((None, th, w, cout), lambda bi, ti: (bi, ti, 0, 0)),
        compiler_params=pltpu.CompilerParams(
            dimension_semantics=("parallel", "parallel"),
            vmem_limit_bytes=_vmem_limit(th, w, cin, cout, add is not None)),
    )(*args)


# --------------------------------- JAX glue -----------------------------------
def avg_pool2(x):  # (B,H,W,C) -> (B,H/2,W/2,C), AvgPool2d(2,2)
    b, h, w, c = x.shape
    return x.reshape(b, h // 2, 2, w // 2, 2, c).mean(axis=(2, 4))


def upsample2(x):  # nearest x2 (reference only)
    return jnp.repeat(jnp.repeat(x, 2, axis=1), 2, axis=2)


def bn_fold(gamma, beta, mean, var):
    s = gamma / jnp.sqrt(var + BN_EPS)
    return s, beta - mean * s


def double_oct_conv_forward(x_nchw, p):
    x = jnp.transpose(x_nchw, (0, 2, 3, 1)).astype(jnp.float32)  # NCHW -> NHWC

    s1h, b1h = bn_fold(*p["bn1_h"])
    s1l, b1l = bn_fold(*p["bn1_l"])
    s2h, b2h = bn_fold(*p["bn2_h"])
    s2l, b2l = bn_fold(*p["bn2_l"])

    # ---- conv1 (alpha_in=0, alpha_out=0.5) + ReLU; intermediates kept in bf16 ----
    x_h = conv3x3_bn_act(x, p["w1_h2h"] * s1h, b1h, relu=True)
    x_l = conv3x3_bn_act(avg_pool2(x), p["w1_h2l"] * s1l, b1l, relu=True)

    # ---- conv2 (alpha_in = alpha_out = 0.5) + ReLU ----
    # l2h + l2l fused into one call: x_l taps are streamed once and the output lane
    # dim is c_h + c_l wide; BN scales folded per output-channel group; no bias/ReLU.
    c_h = p["w2_l2h"].shape[-1]
    c_l = p["w2_l2l"].shape[-1]
    w_l_fused = jnp.concatenate([p["w2_l2h"] * s2h, p["w2_l2l"] * s2l], axis=-1)
    l_cat = conv3x3_bn_act(x_l, w_l_fused, bias=None, relu=False)
    l2h = l_cat[..., :c_h]            # (B, H/2, W/2, c_h) bf16, already scaled by s2h
    l2l = l_cat[..., c_h:]            # (B, H/2, W/2, c_l) bf16, already scaled by s2l

    # Nearest-x2 upsample of l2h: columns repeated on the quarter-res bf16 array here,
    # rows repeated inside the y_h kernel (add stream stays at half row count).
    l2h_wide = jnp.repeat(l2h, 2, axis=2)          # (B, H/2, W, c_h) bf16

    y_h = conv3x3_bn_act(x_h, p["w2_h2h"] * s2h, b2h,
                         add=l2h_wide, add_half_rows=True, relu=True,
                         out_dtype=jnp.float32)
    y_l = conv3x3_bn_act(avg_pool2(x_h), p["w2_h2l"] * s2l, b2l,
                         add=l2l, relu=True, out_dtype=jnp.float32)

    # NHWC -> NCHW to match PyTorch output convention
    return jnp.transpose(y_h, (0, 3, 1, 2)), jnp.transpose(y_l, (0, 3, 1, 2))


# ----------------------- pure-JAX reference (for check) -----------------------
def _ref_conv(x, w):
    return jax.lax.conv_general_dilated(
        x, w, (1, 1), ((1, 1), (1, 1)),
        dimension_numbers=("NHWC", "HWIO", "NHWC"))


def _ref_bn(x, gamma, beta, mean, var):
    return (x - mean) / jnp.sqrt(var + BN_EPS) * gamma + beta


def reference_forward(x_nchw, p):
    x = jnp.transpose(x_nchw, (0, 2, 3, 1))
    x_h = jax.nn.relu(_ref_bn(_ref_conv(x, p["w1_h2h"]), *p["bn1_h"]))
    x_l = jax.nn.relu(_ref_bn(_ref_conv(avg_pool2(x), p["w1_h2l"]), *p["bn1_l"]))
    y_h = jax.nn.relu(_ref_bn(_ref_conv(x_h, p["w2_h2h"])
                              + upsample2(_ref_conv(x_l, p["w2_l2h"])), *p["bn2_h"]))
    y_l = jax.nn.relu(_ref_bn(_ref_conv(avg_pool2(x_h), p["w2_h2l"])
                              + _ref_conv(x_l, p["w2_l2l"]), *p["bn2_l"]))
    return jnp.transpose(y_h, (0, 3, 1, 2)), jnp.transpose(y_l, (0, 3, 1, 2))


# -------------------------------- param init ----------------------------------
def init_params(key, in_ch, out_ch, alpha_out=0.5):
    c_l = int(out_ch * alpha_out)
    c_h = out_ch - c_l
    keys = jax.random.split(key, 16)

    def conv_w(k, cin, cout):  # stored as HWIO (3,3,Cin,Cout)
        return 0.1 * jax.random.normal(k, (3, 3, cin, cout), jnp.float32)

    def bn(k, c):
        kg, kb, km, kv = jax.random.split(k, 4)
        gamma = 1.0 + 0.1 * jax.random.normal(kg, (c,), jnp.float32)
        beta = 0.1 * jax.random.normal(kb, (c,), jnp.float32)
        mean = 0.1 * jax.random.normal(km, (c,), jnp.float32)
        var = 0.5 + jnp.abs(jax.random.normal(kv, (c,), jnp.float32)) * 0.5
        return (gamma, beta, mean, var)

    return {
        # conv1: OctaveConvBN(in_ch, out_ch, alpha_in=0, alpha_out=0.5)
        "w1_h2h": conv_w(keys[0], in_ch, c_h),
        "w1_h2l": conv_w(keys[1], in_ch, c_l),
        "bn1_h": bn(keys[2], c_h),
        "bn1_l": bn(keys[3], c_l),
        # conv2: OctaveConvBN(out_ch, out_ch, alpha_in=0.5, alpha_out=0.5)
        "w2_h2h": conv_w(keys[4], c_h, c_h),
        "w2_l2h": conv_w(keys[5], c_l, c_h),
        "w2_h2l": conv_w(keys[6], c_h, c_l),
        "w2_l2l": conv_w(keys[7], c_l, c_l),
        "bn2_h": bn(keys[8], c_h),
        "bn2_l": bn(keys[9], c_l),
    }


# ----------------------------------- main --------------------------------------
if __name__ == "__main__":
    key = jax.random.PRNGKey(0)
    k_x, k_p = jax.random.split(key)

    B, Cin, H, W = 2, 4, 16, 16
    Cout = 8  # -> 4 high-freq + 4 low-freq channels

    x = jax.random.normal(k_x, (B, Cin, H, W), jnp.float32)   # NCHW like PyTorch
    params = init_params(k_p, Cin, Cout)

    fwd = jax.jit(double_oct_conv_forward)
    y_h, y_l = fwd(x, params)
    jax.block_until_ready((y_h, y_l))

    assert y_h.shape == (B, 4, H, W) and y_l.shape == (B, 4, H // 2, W // 2)

    r_h, r_l = reference_forward(x, params)
    assert jnp.allclose(y_h, r_h, atol=5e-2, rtol=5e-2), \
        f"high-freq mismatch: {jnp.max(jnp.abs(y_h - r_h))}"
    assert jnp.allclose(y_l, r_l, atol=5e-2, rtol=5e-2), \
        f"low-freq mismatch: {jnp.max(jnp.abs(y_l - r_l))}"

    print("KERNEL_OK")
</pallas_src>

<mosaic_0001>
module attributes {stable_mosaic.version = 11 : i64} {
  func.func @_conv_bn_kernel(%arg0: i32, %arg1: i32, %arg2: memref<1x4x10x4xbf16, #tpu.memory_space<vmem>>, %arg3: memref<1x1x2x10x4xbf16, #tpu.memory_space<vmem>>, %arg4: memref<9x4x4xbf16, #tpu.memory_space<vmem>>, %arg5: memref<1x4xf32, #tpu.memory_space<vmem>>, %arg6: memref<1x4x8x4xbf16, #tpu.memory_space<vmem>>) attributes {dimension_semantics = [#tpu.dimension_semantics<parallel>, #tpu.dimension_semantics<parallel>], iteration_bounds = array<i64: 2, 2>, scalar_prefetch = 0 : i64, scratch_operands = 0 : i64, tpu.core_type = #tpu.core_type<tc>, window_params = [{transform_indices = @transform_0, window_bounds = array<i64: 1, 4, 10, 4>}, {transform_indices = @transform_1, window_bounds = array<i64: 1, 1, 2, 10, 4>}, {pipeline_mode = #tpu.pipeline_mode<synchronous>, transform_indices = @transform_2, window_bounds = array<i64: 9, 4, 4>}, {pipeline_mode = #tpu.pipeline_mode<synchronous>, transform_indices = @transform_3, window_bounds = array<i64: 1, 4>}, {transform_indices = @transform_4, window_bounds = array<i64: 1, 4, 8, 4>}]} {
    %c0 = arith.constant 0 : index
    %c0_0 = arith.constant 0 : index
    %c0_1 = arith.constant 0 : index
    %c0_2 = arith.constant 0 : index
    %0 = vector.load %arg2[%c0, %c0_0, %c0_1, %c0_2] : memref<1x4x10x4xbf16, #tpu.memory_space<vmem>>, vector<1x4x10x4xbf16>
    %1 = vector.shape_cast %0 : vector<1x4x10x4xbf16> to vector<4x10x4xbf16>
    %c0_3 = arith.constant 0 : index
    %c0_4 = arith.constant 0 : index
    %c0_5 = arith.constant 0 : index
    %c0_6 = arith.constant 0 : index
    %c0_7 = arith.constant 0 : index
    %2 = vector.load %arg3[%c0_3, %c0_4, %c0_5, %c0_6, %c0_7] : memref<1x1x2x10x4xbf16, #tpu.memory_space<vmem>>, vector<1x1x2x10x4xbf16>
    %3 = vector.shape_cast %2 : vector<1x1x2x10x4xbf16> to vector<2x10x4xbf16>
    %4 = tpu.concatenate %1, %3 in 0 : vector<4x10x4xbf16>, vector<2x10x4xbf16> -> vector<6x10x4xbf16>
    %5 = vector.extract_strided_slice %4 {offsets = [0, 0, 0], sizes = [4, 8, 4], strides = [1, 1, 1]} : vector<6x10x4xbf16> to vector<4x8x4xbf16>
    %6 = vector.shape_cast %5 : vector<4x8x4xbf16> to vector<32x4xbf16>
    %c0_8 = arith.constant 0 : index
    %c0_9 = arith.constant 0 : index
    %c0_10 = arith.constant 0 : index
    %7 = vector.load %arg4[%c0_8, %c0_9, %c0_10] : memref<9x4x4xbf16, #tpu.memory_space<vmem>>, vector<1x4x4xbf16>
    %8 = vector.shape_cast %7 : vector<1x4x4xbf16> to vector<4x4xbf16>
    %cst = arith.constant dense<0.000000e+00> : vector<32x4xf32>
    %9 = tpu.matmul %6, %8, %cst {dimension_numbers = #tpu.dot_dimension_numbers<[1], [0], [0], [1], [0, 0, 1, 1], [], []>} : vector<32x4xbf16>, vector<4x4xbf16>, vector<32x4xf32> -> vector<32x4xf32>
    %10 = vector.extract_strided_slice %4 {offsets = [0, 1, 0], sizes = [4, 8, 4], strides = [1, 1, 1]} : vector<6x10x4xbf16> to vector<4x8x4xbf16>
    %11 = vector.shape_cast %10 : vector<4x8x4xbf16> to vector<32x4xbf16>
    %c1 = arith.constant 1 : index
    %c0_11 = arith.constant 0 : index
    %c0_12 = arith.constant 0 : index
    %12 = vector.load %arg4[%c1, %c0_11, %c0_12] : memref<9x4x4xbf16, #tpu.memory_space<vmem>>, vector<1x4x4xbf16>
    %13 = vector.shape_cast %12 : vector<1x4x4xbf16> to vector<4x4xbf16>
    %cst_13 = arith.constant dense<0.000000e+00> : vector<32x4xf32>
    %14 = tpu.matmul %11, %13, %cst_13 {dimension_numbers = #tpu.dot_dimension_numbers<[1], [0], [0], [1], [0, 0, 1, 1], [], []>} : vector<32x4xbf16>, vector<4x4xbf16>, vector<32x4xf32> -> vector<32x4xf32>
    %15 = arith.addf %9, %14 : vector<32x4xf32>
    %16 = vector.extract_strided_slice %4 {offsets = [0, 2, 0], sizes = [4, 8, 4], strides = [1, 1, 1]} : vector<6x10x4xbf16> to vector<4x8x4xbf16>
    %17 = vector.shape_cast %16 : vector<4x8x4xbf16> to vector<32x4xbf16>
    %c2 = arith.constant 2 : index
    %c0_14 = arith.constant 0 : index
    %c0_15 = arith.constant 0 : index
    %18 = vector.load %arg4[%c2, %c0_14, %c0_15] : memref<9x4x4xbf16, #tpu.memory_space<vmem>>, vector<1x4x4xbf16>
    %19 = vector.shape_cast %18 : vector<1x4x4xbf16> to vector<4x4xbf16>
    %cst_16 = arith.constant dense<0.000000e+00> : vector<32x4xf32>
    %20 = tpu.matmul %17, %19, %cst_16 {dimension_numbers = #tpu.dot_dimension_numbers<[1], [0], [0], [1], [0, 0, 1, 1], [], []>} : vector<32x4xbf16>, vector<4x4xbf16>, vector<32x4xf32> -> vector<32x4xf32>
    %21 = arith.addf %15, %20 : vector<32x4xf32>
    %22 = vector.extract_strided_slice %4 {offsets = [1, 0, 0], sizes = [4, 8, 4], strides = [1, 1, 1]} : vector<6x10x4xbf16> to vector<4x8x4xbf16>
    %23 = vector.shape_cast %22 : vector<4x8x4xbf16> to vector<32x4xbf16>
    %c3 = arith.constant 3 : index
    %c0_17 = arith.constant 0 : index
    %c0_18 = arith.constant 0 : index
    %24 = vector.load %arg4[%c3, %c0_17, %c0_18] : memref<9x4x4xbf16, #tpu.memory_space<vmem>>, vector<1x4x4xbf16>
    %25 = vector.shape_cast %24 : vector<1x4x4xbf16> to vector<4x4xbf16>
    %cst_19 = arith.constant dense<0.000000e+00> : vector<32x4xf32>
    %26 = tpu.matmul %23, %25, %cst_19 {dimension_numbers = #tpu.dot_dimension_numbers<[1], [0], [0], [1], [0, 0, 1, 1], [], []>} : vector<32x4xbf16>, vector<4x4xbf16>, vector<32x4xf32> -> vector<32x4xf32>
    %27 = arith.addf %21, %26 : vector<32x4xf32>
    %28 = vector.extract_strided_slice %4 {offsets = [1, 1, 0], sizes = [4, 8, 4], strides = [1, 1, 1]} : vector<6x10x4xbf16> to vector<4x8x4xbf16>
    %29 = vector.shape_cast %28 : vector<4x8x4xbf16> to vector<32x4xbf16>
    %c4 = arith.constant 4 : index
    %c0_20 = arith.constant 0 : index
    %c0_21 = arith.constant 0 : index
    %30 = vector.load %arg4[%c4, %c0_20, %c0_21] : memref<9x4x4xbf16, #tpu.memory_space<vmem>>, vector<1x4x4xbf16>
    %31 = vector.shape_cast %30 : vector<1x4x4xbf16> to vector<4x4xbf16>
    %cst_22 = arith.constant dense<0.000000e+00> : vector<32x4xf32>
    %32 = tpu.matmul %29, %31, %cst_22 {dimension_numbers = #tpu.dot_dimension_numbers<[1], [0], [0], [1], [0, 0, 1, 1], [], []>} : vector<32x4xbf16>, vector<4x4xbf16>, vector<32x4xf32> -> vector<32x4xf32>
    %33 = arith.addf %27, %32 : vector<32x4xf32>
    %34 = vector.extract_strided_slice %4 {offsets = [1, 2, 0], sizes = [4, 8, 4], strides = [1, 1, 1]} : vector<6x10x4xbf16> to vector<4x8x4xbf16>
    %35 = vector.shape_cast %34 : vector<4x8x4xbf16> to vector<32x4xbf16>
    %c5 = arith.constant 5 : index
    %c0_23 = arith.constant 0 : index
    %c0_24 = arith.constant 0 : index
    %36 = vector.load %arg4[%c5, %c0_23, %c0_24] : memref<9x4x4xbf16, #tpu.memory_space<vmem>>, vector<1x4x4xbf16>
    %37 = vector.shape_cast %36 : vector<1x4x4xbf16> to vector<4x4xbf16>
    %cst_25 = arith.constant dense<0.000000e+00> : vector<32x4xf32>
    %38 = tpu.matmul %35, %37, %cst_25 {dimension_numbers = #tpu.dot_dimension_numbers<[1], [0], [0], [1], [0, 0, 1, 1], [], []>} : vector<32x4xbf16>, vector<4x4xbf16>, vector<32x4xf32> -> vector<32x4xf32>
    %39 = arith.addf %33, %38 : vector<32x4xf32>
    %40 = vector.extract_strided_slice %4 {offsets = [2, 0, 0], sizes = [4, 8, 4], strides = [1, 1, 1]} : vector<6x10x4xbf16> to vector<4x8x4xbf16>
    %41 = vector.shape_cast %40 : vector<4x8x4xbf16> to vector<32x4xbf16>
    %c6 = arith.constant 6 : index
    %c0_26 = arith.constant 0 : index
    %c0_27 = arith.constant 0 : index
    %42 = vector.load %arg4[%c6, %c0_26, %c0_27] : memref<9x4x4xbf16, #tpu.memory_space<vmem>>, vector<1x4x4xbf16>
    %43 = vector.shape_cast %42 : vector<1x4x4xbf16> to vector<4x4xbf16>
    %cst_28 = arith.constant dense<0.000000e+00> : vector<32x4xf32>
    %44 = tpu.matmul %41, %43, %cst_28 {dimension_numbers = #tpu.dot_dimension_numbers<[1], [0], [0], [1], [0, 0, 1, 1], [], []>} : vector<32x4xbf16>, vector<4x4xbf16>, vector<32x4xf32> -> vector<32x4xf32>
    %45 = arith.addf %39, %44 : vector<32x4xf32>
    %46 = vector.extract_strided_slice %4 {offsets = [2, 1, 0], sizes = [4, 8, 4], strides = [1, 1, 1]} : vector<6x10x4xbf16> to vector<4x8x4xbf16>
    %47 = vector.shape_cast %46 : vector<4x8x4xbf16> to vector<32x4xbf16>
    %c7 = arith.constant 7 : index
    %c0_29 = arith.constant 0 : index
    %c0_30 = arith.constant 0 : index
    %48 = vector.load %arg4[%c7, %c0_29, %c0_30] : memref<9x4x4xbf16, #tpu.memory_space<vmem>>, vector<1x4x4xbf16>
    %49 = vector.shape_cast %48 : vector<1x4x4xbf16> to vector<4x4xbf16>
    %cst_31 = arith.constant dense<0.000000e+00> : vector<32x4xf32>
    %50 = tpu.matmul %47, %49, %cst_31 {dimension_numbers = #tpu.dot_dimension_numbers<[1], [0], [0], [1], [0, 0, 1, 1], [], []>} : vector<32x4xbf16>, vector<4x4xbf16>, vector<32x4xf32> -> vector<32x4xf32>
    %51 = arith.addf %45, %50 : vector<32x4xf32>
    %52 = vector.extract_strided_slice %4 {offsets = [2, 2, 0], sizes = [4, 8, 4], strides = [1, 1, 1]} : vector<6x10x4xbf16> to vector<4x8x4xbf16>
    %53 = vector.shape_cast %52 : vector<4x8x4xbf16> to vector<32x4xbf16>
    %c8 = arith.constant 8 : index
    %c0_32 = arith.constant 0 : index
    %c0_33 = arith.constant 0 : index
    %54 = vector.load %arg4[%c8, %c0_32, %c0_33] : memref<9x4x4xbf16, #tpu.memory_space<vmem>>, vector<1x4x4xbf16>
    %55 = vector.shape_cast %54 : vector<1x4x4xbf16> to vector<4x4xbf16>
    %cst_34 = arith.constant dense<0.000000e+00> : vector<32x4xf32>
    %56 = tpu.matmul %53, %55, %cst_34 {dimension_numbers = #tpu.dot_dimension_numbers<[1], [0], [0], [1], [0, 0, 1, 1], [], []>} : vector<32x4xbf16>, vector<4x4xbf16>, vector<32x4xf32> -> vector<32x4xf32>
    %57 = arith.addf %51, %56 : vector<32x4xf32>
    %c0_35 = arith.constant 0 : index
    %c0_36 = arith.constant 0 : index
    %58 = vector.load %arg5[%c0_35, %c0_36] : memref<1x4xf32, #tpu.memory_space<vmem>>, vector<1x4xf32>
    %59 = vector.broadcast %58 : vector<1x4xf32> to vector<32x4xf32>
    %60 = arith.addf %57, %59 : vector<32x4xf32>
    %cst_37 = arith.constant 0.000000e+00 : f32
    %61 = vector.broadcast %cst_37 : f32 to vector<32x4xf32>
    %62 = arith.maximumf %60, %61 : vector<32x4xf32>
    %63 = vector.shape_cast %62 : vector<32x4xf32> to vector<4x8x4xf32>
    %64 = arith.truncf %63 : vector<4x8x4xf32> to vector<4x8x4xbf16>
    %c0_38 = arith.constant 0 : index
    %c0_39 = arith.constant 0 : index
    %c0_40 = arith.constant 0 : index
    %c0_41 = arith.constant 0 : index
    %65 = vector.load %arg6[%c0_38, %c0_39, %c0_40, %c0_41] : memref<1x4x8x4xbf16, #tpu.memory_space<vmem>>, vector<1x4x8x4xbf16>
    %66 = vector.shape_cast %65 : vector<1x4x8x4xbf16> to vector<4x8x4xbf16>
    %67 = vector.shape_cast %64 : vector<4x8x4xbf16> to vector<1x4x8x4xbf16>
    tpu.vector_store %arg6[%c0_38, %c0_39, %c0_40, %c0_41], %67 {strides = array<i32>} : memref<1x4x8x4xbf16, #tpu.memory_space<vmem>>, vector<1x4x8x4xbf16>,
    return
  }
  func.func @transform_0(%arg0: i32, %arg1: i32) -> (i32, i32, i32, i32) {
    %c0_i32 = arith.constant 0 : i32
    %c0_i32_0 = arith.constant 0 : i32
    %c0_i32_1 = arith.constant 0 : i32
    return %arg0, %arg1, %c0_i32, %c0_i32_0 : i32, i32, i32, i32
  }
  func.func @transform_1(%arg0: i32, %arg1: i32) -> (i32, i32, i32, i32, i32) {
    %c0_i32 = arith.constant 0 : i32
    %c0_i32_0 = arith.constant 0 : i32
    %c0_i32_1 = arith.constant 0 : i32
    %c0_i32_2 = arith.constant 0 : i32
    return %arg0, %arg1, %c0_i32, %c0_i32_0, %c0_i32_1 : i32, i32, i32, i32, i32
  }
  func.func @transform_2(%arg0: i32, %arg1: i32) -> (i32, i32, i32) {
    %c0_i32 = arith.constant 0 : i32
    %c0_i32_0 = arith.constant 0 : i32
    %c0_i32_1 = arith.constant 0 : i32
    %c0_i32_2 = arith.constant 0 : i32
    return %c0_i32, %c0_i32_0, %c0_i32_1 : i32, i32, i32
  }
  func.func @transform_3(%arg0: i32, %arg1: i32) -> (i32, i32) {
    %c0_i32 = arith.constant 0 : i32
    %c0_i32_0 = arith.constant 0 : i32
    %c0_i32_1 = arith.constant 0 : i32
    return %c0_i32, %c0_i32_0 : i32, i32
  }
  func.func @transform_4(%arg0: i32, %arg1: i32) -> (i32, i32, i32, i32) {
    %c0_i32 = arith.constant 0 : i32
    %c0_i32_0 = arith.constant 0 : i32
    %c0_i32_1 = arith.constant 0 : i32
    return %arg0, %arg1, %c0_i32, %c0_i32_0 : i32, i32, i32, i32
  }
}

module attributes {stable_mosaic.version = 11 : i64} {
  func.func @_conv_nobias_kernel(%arg0: i32, %arg1: i32, %arg2: memref<1x4x10x4xbf16, #tpu.memory_space<vmem>>, %arg3: memref<1x1x2x10x4xbf16, #tpu.memory_space<vmem>>, %arg4: memref<9x4x8xbf16, #tpu.memory_space<vmem>>, %arg5: memref<1x4x8x8xbf16, #tpu.memory_space<vmem>>) attributes {dimension_semantics = [#tpu.dimension_semantics<parallel>, #tpu.dimension_semantics<parallel>], iteration_bounds = array<i64: 2, 2>, scalar_prefetch = 0 : i64, scratch_operands = 0 : i64, tpu.core_type = #tpu.core_type<tc>, window_params = [{transform_indices = @transform_0, window_bounds = array<i64: 1, 4, 10, 4>}, {transform_indices = @transform_1, window_bounds = array<i64: 1, 1, 2, 10, 4>}, {pipeline_mode = #tpu.pipeline_mode<synchronous>, transform_indices = @transform_2, window_bounds = array<i64: 9, 4, 8>}, {transform_indices = @transform_3, window_bounds = array<i64: 1, 4, 8, 8>}]} {
    %c0 = arith.constant 0 : index
    %c0_0 = arith.constant 0 : index
    %c0_1 = arith.constant 0 : index
    %c0_2 = arith.constant 0 : index
    %0 = vector.load %arg2[%c0, %c0_0, %c0_1, %c0_2] : memref<1x4x10x4xbf16, #tpu.memory_space<vmem>>, vector<1x4x10x4xbf16>
    %1 = vector.shape_cast %0 : vector<1x4x10x4xbf16> to vector<4x10x4xbf16>
    %c0_3 = arith.constant 0 : index
    %c0_4 = arith.constant 0 : index
    %c0_5 = arith.constant 0 : index
    %c0_6 = arith.constant 0 : index
    %c0_7 = arith.constant 0 : index
    %2 = vector.load %arg3[%c0_3, %c0_4, %c0_5, %c0_6, %c0_7] : memref<1x1x2x10x4xbf16, #tpu.memory_space<vmem>>, vector<1x1x2x10x4xbf16>
    %3 = vector.shape_cast %2 : vector<1x1x2x10x4xbf16> to vector<2x10x4xbf16>
    %4 = tpu.concatenate %1, %3 in 0 : vector<4x10x4xbf16>, vector<2x10x4xbf16> -> vector<6x10x4xbf16>
    %5 = vector.extract_strided_slice %4 {offsets = [0, 0, 0], sizes = [4, 8, 4], strides = [1, 1, 1]} : vector<6x10x4xbf16> to vector<4x8x4xbf16>
    %6 = vector.shape_cast %5 : vector<4x8x4xbf16> to vector<32x4xbf16>
    %c0_8 = arith.constant 0 : index
    %c0_9 = arith.constant 0 : index
    %c0_10 = arith.constant 0 : index
    %7 = vector.load %arg4[%c0_8, %c0_9, %c0_10] : memref<9x4x8xbf16, #tpu.memory_space<vmem>>, vector<1x4x8xbf16>
    %8 = vector.shape_cast %7 : vector<1x4x8xbf16> to vector<4x8xbf16>
    %cst = arith.constant dense<0.000000e+00> : vector<32x8xf32>
    %9 = tpu.matmul %6, %8, %cst {dimension_numbers = #tpu.dot_dimension_numbers<[1], [0], [0], [1], [0, 0, 1, 1], [], []>} : vector<32x4xbf16>, vector<4x8xbf16>, vector<32x8xf32> -> vector<32x8xf32>
    %10 = vector.extract_strided_slice %4 {offsets = [0, 1, 0], sizes = [4, 8, 4], strides = [1, 1, 1]} : vector<6x10x4xbf16> to vector<4x8x4xbf16>
    %11 = vector.shape_cast %10 : vector<4x8x4xbf16> to vector<32x4xbf16>
    %c1 = arith.constant 1 : index
    %c0_11 = arith.constant 0 : index
    %c0_12 = arith.constant 0 : index
    %12 = vector.load %arg4[%c1, %c0_11, %c0_12] : memref<9x4x8xbf16, #tpu.memory_space<vmem>>, vector<1x4x8xbf16>
    %13 = vector.shape_cast %12 : vector<1x4x8xbf16> to vector<4x8xbf16>
    %cst_13 = arith.constant dense<0.000000e+00> : vector<32x8xf32>
    %14 = tpu.matmul %11, %13, %cst_13 {dimension_numbers = #tpu.dot_dimension_numbers<[1], [0], [0], [1], [0, 0, 1, 1], [], []>} : vector<32x4xbf16>, vector<4x8xbf16>, vector<32x8xf32> -> vector<32x8xf32>
    %15 = arith.addf %9, %14 : vector<32x8xf32>
    %16 = vector.extract_strided_slice %4 {offsets = [0, 2, 0], sizes = [4, 8, 4], strides = [1, 1, 1]} : vector<6x10x4xbf16> to vector<4x8x4xbf16>
    %17 = vector.shape_cast %16 : vector<4x8x4xbf16> to vector<32x4xbf16>
    %c2 = arith.constant 2 : index
    %c0_14 = arith.constant 0 : index
    %c0_15 = arith.constant 0 : index
    %18 = vector.load %arg4[%c2, %c0_14, %c0_15] : memref<9x4x8xbf16, #tpu.memory_space<vmem>>, vector<1x4x8xbf16>
    %19 = vector.shape_cast %18 : vector<1x4x8xbf16> to vector<4x8xbf16>
    %cst_16 = arith.constant dense<0.000000e+00> : vector<32x8xf32>
    %20 = tpu.matmul %17, %19, %cst_16 {dimension_numbers = #tpu.dot_dimension_numbers<[1], [0], [0], [1], [0, 0, 1, 1], [], []>} : vector<32x4xbf16>, vector<4x8xbf16>, vector<32x8xf32> -> vector<32x8xf32>
    %21 = arith.addf %15, %20 : vector<32x8xf32>
    %22 = vector.extract_strided_slice %4 {offsets = [1, 0, 0], sizes = [4, 8, 4], strides = [1, 1, 1]} : vector<6x10x4xbf16> to vector<4x8x4xbf16>
    %23 = vector.shape_cast %22 : vector<4x8x4xbf16> to vector<32x4xbf16>
    %c3 = arith.constant 3 : index
    %c0_17 = arith.constant 0 : index
    %c0_18 = arith.constant 0 : index
    %24 = vector.load %arg4[%c3, %c0_17, %c0_18] : memref<9x4x8xbf16, #tpu.memory_space<vmem>>, vector<1x4x8xbf16>
    %25 = vector.shape_cast %24 : vector<1x4x8xbf16> to vector<4x8xbf16>
    %cst_19 = arith.constant dense<0.000000e+00> : vector<32x8xf32>
    %26 = tpu.matmul %23, %25, %cst_19 {dimension_numbers = #tpu.dot_dimension_numbers<[1], [0], [0], [1], [0, 0, 1, 1], [], []>} : vector<32x4xbf16>, vector<4x8xbf16>, vector<32x8xf32> -> vector<32x8xf32>
    %27 = arith.addf %21, %26 : vector<32x8xf32>
    %28 = vector.extract_strided_slice %4 {offsets = [1, 1, 0], sizes = [4, 8, 4], strides = [1, 1, 1]} : vector<6x10x4xbf16> to vector<4x8x4xbf16>
    %29 = vector.shape_cast %28 : vector<4x8x4xbf16> to vector<32x4xbf16>
    %c4 = arith.constant 4 : index
    %c0_20 = arith.constant 0 : index
    %c0_21 = arith.constant 0 : index
    %30 = vector.load %arg4[%c4, %c0_20, %c0_21] : memref<9x4x8xbf16, #tpu.memory_space<vmem>>, vector<1x4x8xbf16>
    %31 = vector.shape_cast %30 : vector<1x4x8xbf16> to vector<4x8xbf16>
    %cst_22 = arith.constant dense<0.000000e+00> : vector<32x8xf32>
    %32 = tpu.matmul %29, %31, %cst_22 {dimension_numbers = #tpu.dot_dimension_numbers<[1], [0], [0], [1], [0, 0, 1, 1], [], []>} : vector<32x4xbf16>, vector<4x8xbf16>, vector<32x8xf32> -> vector<32x8xf32>
    %33 = arith.addf %27, %32 : vector<32x8xf32>
    %34 = vector.extract_strided_slice %4 {offsets = [1, 2, 0], sizes = [4, 8, 4], strides = [1, 1, 1]} : vector<6x10x4xbf16> to vector<4x8x4xbf16>
    %35 = vector.shape_cast %34 : vector<4x8x4xbf16> to vector<32x4xbf16>
    %c5 = arith.constant 5 : index
    %c0_23 = arith.constant 0 : index
    %c0_24 = arith.constant 0 : index
    %36 = vector.load %arg4[%c5, %c0_23, %c0_24] : memref<9x4x8xbf16, #tpu.memory_space<vmem>>, vector<1x4x8xbf16>
    %37 = vector.shape_cast %36 : vector<1x4x8xbf16> to vector<4x8xbf16>
    %cst_25 = arith.constant dense<0.000000e+00> : vector<32x8xf32>
    %38 = tpu.matmul %35, %37, %cst_25 {dimension_numbers = #tpu.dot_dimension_numbers<[1], [0], [0], [1], [0, 0, 1, 1], [], []>} : vector<32x4xbf16>, vector<4x8xbf16>, vector<32x8xf32> -> vector<32x8xf32>
    %39 = arith.addf %33, %38 : vector<32x8xf32>
    %40 = vector.extract_strided_slice %4 {offsets = [2, 0, 0], sizes = [4, 8, 4], strides = [1, 1, 1]} : vector<6x10x4xbf16> to vector<4x8x4xbf16>
    %41 = vector.shape_cast %40 : vector<4x8x4xbf16> to vector<32x4xbf16>
    %c6 = arith.constant 6 : index
    %c0_26 = arith.constant 0 : index
    %c0_27 = arith.constant 0 : index
    %42 = vector.load %arg4[%c6, %c0_26, %c0_27] : memref<9x4x8xbf16, #tpu.memory_space<vmem>>, vector<1x4x8xbf16>
    %43 = vector.shape_cast %42 : vector<1x4x8xbf16> to vector<4x8xbf16>
    %cst_28 = arith.constant dense<0.000000e+00> : vector<32x8xf32>
    %44 = tpu.matmul %41, %43, %cst_28 {dimension_numbers = #tpu.dot_dimension_numbers<[1], [0], [0], [1], [0, 0, 1, 1], [], []>} : vector<32x4xbf16>, vector<4x8xbf16>, vector<32x8xf32> -> vector<32x8xf32>
    %45 = arith.addf %39, %44 : vector<32x8xf32>
    %46 = vector.extract_strided_slice %4 {offsets = [2, 1, 0], sizes = [4, 8, 4], strides = [1, 1, 1]} : vector<6x10x4xbf16> to vector<4x8x4xbf16>
    %47 = vector.shape_cast %46 : vector<4x8x4xbf16> to vector<32x4xbf16>
    %c7 = arith.constant 7 : index
    %c0_29 = arith.constant 0 : index
    %c0_30 = arith.constant 0 : index
    %48 = vector.load %arg4[%c7, %c0_29, %c0_30] : memref<9x4x8xbf16, #tpu.memory_space<vmem>>, vector<1x4x8xbf16>
    %49 = vector.shape_cast %48 : vector<1x4x8xbf16> to vector<4x8xbf16>
    %cst_31 = arith.constant dense<0.000000e+00> : vector<32x8xf32>
    %50 = tpu.matmul %47, %49, %cst_31 {dimension_numbers = #tpu.dot_dimension_numbers<[1], [0], [0], [1], [0, 0, 1, 1], [], []>} : vector<32x4xbf16>, vector<4x8xbf16>, vector<32x8xf32> -> vector<32x8xf32>
    %51 = arith.addf %45, %50 : vector<32x8xf32>
    %52 = vector.extract_strided_slice %4 {offsets = [2, 2, 0], sizes = [4, 8, 4], strides = [1, 1, 1]} : vector<6x10x4xbf16> to vector<4x8x4xbf16>
    %53 = vector.shape_cast %52 : vector<4x8x4xbf16> to vector<32x4xbf16>
    %c8 = arith.constant 8 : index
    %c0_32 = arith.constant 0 : index
    %c0_33 = arith.constant 0 : index
    %54 = vector.load %arg4[%c8, %c0_32, %c0_33] : memref<9x4x8xbf16, #tpu.memory_space<vmem>>, vector<1x4x8xbf16>
    %55 = vector.shape_cast %54 : vector<1x4x8xbf16> to vector<4x8xbf16>
    %cst_34 = arith.constant dense<0.000000e+00> : vector<32x8xf32>
    %56 = tpu.matmul %53, %55, %cst_34 {dimension_numbers = #tpu.dot_dimension_numbers<[1], [0], [0], [1], [0, 0, 1, 1], [], []>} : vector<32x4xbf16>, vector<4x8xbf16>, vector<32x8xf32> -> vector<32x8xf32>
    %57 = arith.addf %51, %56 : vector<32x8xf32>
    %58 = vector.shape_cast %57 : vector<32x8xf32> to vector<4x8x8xf32>
    %59 = arith.truncf %58 : vector<4x8x8xf32> to vector<4x8x8xbf16>
    %c0_35 = arith.constant 0 : index
    %c0_36 = arith.constant 0 : index
    %c0_37 = arith.constant 0 : index
    %c0_38 = arith.constant 0 : index
    %60 = vector.load %arg5[%c0_35, %c0_36, %c0_37, %c0_38] : memref<1x4x8x8xbf16, #tpu.memory_space<vmem>>, vector<1x4x8x8xbf16>
    %61 = vector.shape_cast %60 : vector<1x4x8x8xbf16> to vector<4x8x8xbf16>
    %62 = vector.shape_cast %59 : vector<4x8x8xbf16> to vector<1x4x8x8xbf16>
    tpu.vector_store %arg5[%c0_35, %c0_36, %c0_37, %c0_38], %62 {strides = array<i32>} : memref<1x4x8x8xbf16, #tpu.memory_space<vmem>>, vector<1x4x8x8xbf16>,
    return
  }
  func.func @transform_0(%arg0: i32, %arg1: i32) -> (i32, i32, i32, i32) {
    %c0_i32 = arith.constant 0 : i32
    %c0_i32_0 = arith.constant 0 : i32
    %c0_i32_1 = arith.constant 0 : i32
    return %arg0, %arg1, %c0_i32, %c0_i32_0 : i32, i32, i32, i32
  }
  func.func @transform_1(%arg0: i32, %arg1: i32) -> (i32, i32, i32, i32, i32) {
    %c0_i32 = arith.constant 0 : i32
    %c0_i32_0 = arith.constant 0 : i32
    %c0_i32_1 = arith.constant 0 : i32
    %c0_i32_2 = arith.constant 0 : i32
    return %arg0, %arg1, %c0_i32, %c0_i32_0, %c0_i32_1 : i32, i32, i32, i32, i32
  }
  func.func @transform_2(%arg0: i32, %arg1: i32) -> (i32, i32, i32) {
    %c0_i32 = arith.constant 0 : i32
    %c0_i32_0 = arith.constant 0 : i32
    %c0_i32_1 = arith.constant 0 : i32
    %c0_i32_2 = arith.constant 0 : i32
    return %c0_i32, %c0_i32_0, %c0_i32_1 : i32, i32, i32
  }
  func.func @transform_3(%arg0: i32, %arg1: i32) -> (i32, i32, i32, i32) {
    %c0_i32 = arith.constant 0 : i32
    %c0_i32_0 = arith.constant 0 : i32
    %c0_i32_1 = arith.constant 0 : i32
    return %arg0, %arg1, %c0_i32, %c0_i32_0 : i32, i32, i32, i32
  }
}

module attributes {stable_mosaic.version = 11 : i64} {
  func.func @_conv_bn_kernel(%arg0: i32, %arg1: i32, %arg2: memref<1x8x18x4xbf16, #tpu.memory_space<vmem>>, %arg3: memref<1x1x2x18x4xbf16, #tpu.memory_space<vmem>>, %arg4: memref<9x4x4xbf16, #tpu.memory_space<vmem>>, %arg5: memref<1x4xf32, #tpu.memory_space<vmem>>, %arg6: memref<1x8x16x4xbf16, #tpu.memory_space<vmem>>) attributes {dimension_semantics = [#tpu.dimension_semantics<parallel>, #tpu.dimension_semantics<parallel>], iteration_bounds = array<i64: 2, 2>, scalar_prefetch = 0 : i64, scratch_operands = 0 : i64, tpu.core_type = #tpu.core_type<tc>, window_params = [{transform_indices = @transform_0, window_bounds = array<i64: 1, 8, 18, 4>}, {transform_indices = @transform_1, window_bounds = array<i64: 1, 1, 2, 18, 4>}, {pipeline_mode = #tpu.pipeline_mode<synchronous>, transform_indices = @transform_2, window_bounds = array<i64: 9, 4, 4>}, {pipeline_mode = #tpu.pipeline_mode<synchronous>, transform_indices = @transform_3, window_bounds = array<i64: 1, 4>}, {transform_indices = @transform_4, window_bounds = array<i64: 1, 8, 16, 4>}]} {
    %c0 = arith.constant 0 : index
    %c0_0 = arith.constant 0 : index
    %c0_1 = arith.constant 0 : index
    %c0_2 = arith.constant 0 : index
    %0 = vector.load %arg2[%c0, %c0_0, %c0_1, %c0_2] : memref<1x8x18x4xbf16, #tpu.memory_space<vmem>>, vector<1x8x18x4xbf16>
    %1 = vector.shape_cast %0 : vector<1x8x18x4xbf16> to vector<8x18x4xbf16>
    %c0_3 = arith.constant 0 : index
    %c0_4 = arith.constant 0 : index
    %c0_5 = arith.constant 0 : index
    %c0_6 = arith.constant 0 : index
    %c0_7 = arith.constant 0 : index
    %2 = vector.load %arg3[%c0_3, %c0_4, %c0_5, %c0_6, %c0_7] : memref<1x1x2x18x4xbf16, #tpu.memory_space<vmem>>, vector<1x1x2x18x4xbf16>
    %3 = vector.shape_cast %2 : vector<1x1x2x18x4xbf16> to vector<2x18x4xbf16>
    %4 = tpu.concatenate %1, %3 in 0 : vector<8x18x4xbf16>, vector<2x18x4xbf16> -> vector<10x18x4xbf16>
    %5 = vector.extract_strided_slice %4 {offsets = [0, 0, 0], sizes = [8, 16, 4], strides = [1, 1, 1]} : vector<10x18x4xbf16> to vector<8x16x4xbf16>
    %6 = vector.shape_cast %5 : vector<8x16x4xbf16> to vector<128x4xbf16>
    %c0_8 = arith.constant 0 : index
    %c0_9 = arith.constant 0 : index
    %c0_10 = arith.constant 0 : index
    %7 = vector.load %arg4[%c0_8, %c0_9, %c0_10] : memref<9x4x4xbf16, #tpu.memory_space<vmem>>, vector<1x4x4xbf16>
    %8 = vector.shape_cast %7 : vector<1x4x4xbf16> to vector<4x4xbf16>
    %cst = arith.constant dense<0.000000e+00> : vector<128x4xf32>
    %9 = tpu.matmul %6, %8, %cst {dimension_numbers = #tpu.dot_dimension_numbers<[1], [0], [0], [1], [0, 0, 1, 1], [], []>} : vector<128x4xbf16>, vector<4x4xbf16>, vector<128x4xf32> -> vector<128x4xf32>
    %10 = vector.extract_strided_slice %4 {offsets = [0, 1, 0], sizes = [8, 16, 4], strides = [1, 1, 1]} : vector<10x18x4xbf16> to vector<8x16x4xbf16>
    %11 = vector.shape_cast %10 : vector<8x16x4xbf16> to vector<128x4xbf16>
    %c1 = arith.constant 1 : index
    %c0_11 = arith.constant 0 : index
    %c0_12 = arith.constant 0 : index
    %12 = vector.load %arg4[%c1, %c0_11, %c0_12] : memref<9x4x4xbf16, #tpu.memory_space<vmem>>, vector<1x4x4xbf16>
    %13 = vector.shape_cast %12 : vector<1x4x4xbf16> to vector<4x4xbf16>
    %cst_13 = arith.constant dense<0.000000e+00> : vector<128x4xf32>
    %14 = tpu.matmul %11, %13, %cst_13 {dimension_numbers = #tpu.dot_dimension_numbers<[1], [0], [0], [1], [0, 0, 1, 1], [], []>} : vector<128x4xbf16>, vector<4x4xbf16>, vector<128x4xf32> -> vector<128x4xf32>
    %15 = arith.addf %9, %14 : vector<128x4xf32>
    %16 = vector.extract_strided_slice %4 {offsets = [0, 2, 0], sizes = [8, 16, 4], strides = [1, 1, 1]} : vector<10x18x4xbf16> to vector<8x16x4xbf16>
    %17 = vector.shape_cast %16 : vector<8x16x4xbf16> to vector<128x4xbf16>
    %c2 = arith.constant 2 : index
    %c0_14 = arith.constant 0 : index
    %c0_15 = arith.constant 0 : index
    %18 = vector.load %arg4[%c2, %c0_14, %c0_15] : memref<9x4x4xbf16, #tpu.memory_space<vmem>>, vector<1x4x4xbf16>
    %19 = vector.shape_cast %18 : vector<1x4x4xbf16> to vector<4x4xbf16>
    %cst_16 = arith.constant dense<0.000000e+00> : vector<128x4xf32>
    %20 = tpu.matmul %17, %19, %cst_16 {dimension_numbers = #tpu.dot_dimension_numbers<[1], [0], [0], [1], [0, 0, 1, 1], [], []>} : vector<128x4xbf16>, vector<4x4xbf16>, vector<128x4xf32> -> vector<128x4xf32>
    %21 = arith.addf %15, %20 : vector<128x4xf32>
    %22 = vector.extract_strided_slice %4 {offsets = [1, 0, 0], sizes = [8, 16, 4], strides = [1, 1, 1]} : vector<10x18x4xbf16> to vector<8x16x4xbf16>
    %23 = vector.shape_cast %22 : vector<8x16x4xbf16> to vector<128x4xbf16>
    %c3 = arith.constant 3 : index
    %c0_17 = arith.constant 0 : index
    %c0_18 = arith.constant 0 : index
    %24 = vector.load %arg4[%c3, %c0_17, %c0_18] : memref<9x4x4xbf16, #tpu.memory_space<vmem>>, vector<1x4x4xbf16>
    %25 = vector.shape_cast %24 : vector<1x4x4xbf16> to vector<4x4xbf16>
    %cst_19 = arith.constant dense<0.000000e+00> : vector<128x4xf32>
    %26 = tpu.matmul %23, %25, %cst_19 {dimension_numbers = #tpu.dot_dimension_numbers<[1], [0], [0], [1], [0, 0, 1, 1], [], []>} : vector<128x4xbf16>, vector<4x4xbf16>, vector<128x4xf32> -> vector<128x4xf32>
    %27 = arith.addf %21, %26 : vector<128x4xf32>
    %28 = vector.extract_strided_slice %4 {offsets = [1, 1, 0], sizes = [8, 16, 4], strides = [1, 1, 1]} : vector<10x18x4xbf16> to vector<8x16x4xbf16>
    %29 = vector.shape_cast %28 : vector<8x16x4xbf16> to vector<128x4xbf16>
    %c4 = arith.constant 4 : index
    %c0_20 = arith.constant 0 : index
    %c0_21 = arith.constant 0 : index
    %30 = vector.load %arg4[%c4, %c0_20, %c0_21] : memref<9x4x4xbf16, #tpu.memory_space<vmem>>, vector<1x4x4xbf16>
    %31 = vector.shape_cast %30 : vector<1x4x4xbf16> to vector<4x4xbf16>
    %cst_22 = arith.constant dense<0.000000e+00> : vector<128x4xf32>
    %32 = tpu.matmul %29, %31, %cst_22 {dimension_numbers = #tpu.dot_dimension_numbers<[1], [0], [0], [1], [0, 0, 1, 1], [], []>} : vector<128x4xbf16>, vector<4x4xbf16>, vector<128x4xf32> -> vector<128x4xf32>
    %33 = arith.addf %27, %32 : vector<128x4xf32>
    %34 = vector.extract_strided_slice %4 {offsets = [1, 2, 0], sizes = [8, 16, 4], strides = [1, 1, 1]} : vector<10x18x4xbf16> to vector<8x16x4xbf16>
    %35 = vector.shape_cast %34 : vector<8x16x4xbf16> to vector<128x4xbf16>
    %c5 = arith.constant 5 : index
    %c0_23 = arith.constant 0 : index
    %c0_24 = arith.constant 0 : index
    %36 = vector.load %arg4[%c5, %c0_23, %c0_24] : memref<9x4x4xbf16, #tpu.memory_space<vmem>>, vector<1x4x4xbf16>
    %37 = vector.shape_cast %36 : vector<1x4x4xbf16> to vector<4x4xbf16>
    %cst_25 = arith.constant dense<0.000000e+00> : vector<128x4xf32>
    %38 = tpu.matmul %35, %37, %cst_25 {dimension_numbers = #tpu.dot_dimension_numbers<[1], [0], [0], [1], [0, 0, 1, 1], [], []>} : vector<128x4xbf16>, vector<4x4xbf16>, vector<128x4xf32> -> vector<128x4xf32>
    %39 = arith.addf %33, %38 : vector<128x4xf32>
    %40 = vector.extract_strided_slice %4 {offsets = [2, 0, 0], sizes = [8, 16, 4], strides = [1, 1, 1]} : vector<10x18x4xbf16> to vector<8x16x4xbf16>
    %41 = vector.shape_cast %40 : vector<8x16x4xbf16> to vector<128x4xbf16>
    %c6 = arith.constant 6 : index
    %c0_26 = arith.constant 0 : index
    %c0_27 = arith.constant 0 : index
    %42 = vector.load %arg4[%c6, %c0_26, %c0_27] : memref<9x4x4xbf16, #tpu.memory_space<vmem>>, vector<1x4x4xbf16>
    %43 = vector.shape_cast %42 : vector<1x4x4xbf16> to vector<4x4xbf16>
    %cst_28 = arith.constant dense<0.000000e+00> : vector<128x4xf32>
    %44 = tpu.matmul %41, %43, %cst_28 {dimension_numbers = #tpu.dot_dimension_numbers<[1], [0], [0], [1], [0, 0, 1, 1], [], []>} : vector<128x4xbf16>, vector<4x4xbf16>, vector<128x4xf32> -> vector<128x4xf32>
    %45 = arith.addf %39, %44 : vector<128x4xf32>
    %46 = vector.extract_strided_slice %4 {offsets = [2, 1, 0], sizes = [8, 16, 4], strides = [1, 1, 1]} : vector<10x18x4xbf16> to vector<8x16x4xbf16>
    %47 = vector.shape_cast %46 : vector<8x16x4xbf16> to vector<128x4xbf16>
    %c7 = arith.constant 7 : index
    %c0_29 = arith.constant 0 : index
    %c0_30 = arith.constant 0 : index
    %48 = vector.load %arg4[%c7, %c0_29, %c0_30] : memref<9x4x4xbf16, #tpu.memory_space<vmem>>, vector<1x4x4xbf16>
    %49 = vector.shape_cast %48 : vector<1x4x4xbf16> to vector<4x4xbf16>
    %cst_31 = arith.constant dense<0.000000e+00> : vector<128x4xf32>
    %50 = tpu.matmul %47, %49, %cst_31 {dimension_numbers = #tpu.dot_dimension_numbers<[1], [0], [0], [1], [0, 0, 1, 1], [], []>} : vector<128x4xbf16>, vector<4x4xbf16>, vector<128x4xf32> -> vector<128x4xf32>
    %51 = arith.addf %45, %50 : vector<128x4xf32>
    %52 = vector.extract_strided_slice %4 {offsets = [2, 2, 0], sizes = [8, 16, 4], strides = [1, 1, 1]} : vector<10x18x4xbf16> to vector<8x16x4xbf16>
    %53 = vector.shape_cast %52 : vector<8x16x4xbf16> to vector<128x4xbf16>
    %c8 = arith.constant 8 : index
    %c0_32 = arith.constant 0 : index
    %c0_33 = arith.constant 0 : index
    %54 = vector.load %arg4[%c8, %c0_32, %c0_33] : memref<9x4x4xbf16, #tpu.memory_space<vmem>>, vector<1x4x4xbf16>
    %55 = vector.shape_cast %54 : vector<1x4x4xbf16> to vector<4x4xbf16>
    %cst_34 = arith.constant dense<0.000000e+00> : vector<128x4xf32>
    %56 = tpu.matmul %53, %55, %cst_34 {dimension_numbers = #tpu.dot_dimension_numbers<[1], [0], [0], [1], [0, 0, 1, 1], [], []>} : vector<128x4xbf16>, vector<4x4xbf16>, vector<128x4xf32> -> vector<128x4xf32>
    %57 = arith.addf %51, %56 : vector<128x4xf32>
    %c0_35 = arith.constant 0 : index
    %c0_36 = arith.constant 0 : index
    %58 = vector.load %arg5[%c0_35, %c0_36] : memref<1x4xf32, #tpu.memory_space<vmem>>, vector<1x4xf32>
    %59 = vector.broadcast %58 : vector<1x4xf32> to vector<128x4xf32>
    %60 = arith.addf %57, %59 : vector<128x4xf32>
    %cst_37 = arith.constant 0.000000e+00 : f32
    %61 = vector.broadcast %cst_37 : f32 to vector<128x4xf32>
    %62 = arith.maximumf %60, %61 : vector<128x4xf32>
    %63 = vector.shape_cast %62 : vector<128x4xf32> to vector<8x16x4xf32>
    %64 = arith.truncf %63 : vector<8x16x4xf32> to vector<8x16x4xbf16>
    %c0_38 = arith.constant 0 : index
    %c0_39 = arith.constant 0 : index
    %c0_40 = arith.constant 0 : index
    %c0_41 = arith.constant 0 : index
    %65 = vector.load %arg6[%c0_38, %c0_39, %c0_40, %c0_41] : memref<1x8x16x4xbf16, #tpu.memory_space<vmem>>, vector<1x8x16x4xbf16>
    %66 = vector.shape_cast %65 : vector<1x8x16x4xbf16> to vector<8x16x4xbf16>
    %67 = vector.shape_cast %64 : vector<8x16x4xbf16> to vector<1x8x16x4xbf16>
    tpu.vector_store %arg6[%c0_38, %c0_39, %c0_40, %c0_41], %67 {strides = array<i32>} : memref<1x8x16x4xbf16, #tpu.memory_space<vmem>>, vector<1x8x16x4xbf16>,
    return
  }
  func.func @transform_0(%arg0: i32, %arg1: i32) -> (i32, i32, i32, i32) {
    %c0_i32 = arith.constant 0 : i32
    %c0_i32_0 = arith.constant 0 : i32
    %c0_i32_1 = arith.constant 0 : i32
    return %arg0, %arg1, %c0_i32, %c0_i32_0 : i32, i32, i32, i32
  }
  func.func @transform_1(%arg0: i32, %arg1: i32) -> (i32, i32, i32, i32, i32) {
    %c0_i32 = arith.constant 0 : i32
    %c0_i32_0 = arith.constant 0 : i32
    %c0_i32_1 = arith.constant 0 : i32
    %c0_i32_2 = arith.constant 0 : i32
    return %arg0, %arg1, %c0_i32, %c0_i32_0, %c0_i32_1 : i32, i32, i32, i32, i32
  }
  func.func @transform_2(%arg0: i32, %arg1: i32) -> (i32, i32, i32) {
    %c0_i32 = arith.constant 0 : i32
    %c0_i32_0 = arith.constant 0 : i32
    %c0_i32_1 = arith.constant 0 : i32
    %c0_i32_2 = arith.constant 0 : i32
    return %c0_i32, %c0_i32_0, %c0_i32_1 : i32, i32, i32
  }
  func.func @transform_3(%arg0: i32, %arg1: i32) -> (i32, i32) {
    %c0_i32 = arith.constant 0 : i32
    %c0_i32_0 = arith.constant 0 : i32
    %c0_i32_1 = arith.constant 0 : i32
    return %c0_i32, %c0_i32_0 : i32, i32
  }
  func.func @transform_4(%arg0: i32, %arg1: i32) -> (i32, i32, i32, i32) {
    %c0_i32 = arith.constant 0 : i32
    %c0_i32_0 = arith.constant 0 : i32
    %c0_i32_1 = arith.constant 0 : i32
    return %arg0, %arg1, %c0_i32, %c0_i32_0 : i32, i32, i32, i32
  }
}

module attributes {stable_mosaic.version = 11 : i64} {
  func.func @_conv_bn_add_kernel(%arg0: i32, %arg1: i32, %arg2: memref<1x8x18x4xbf16, #tpu.memory_space<vmem>>, %arg3: memref<1x1x2x18x4xbf16, #tpu.memory_space<vmem>>, %arg4: memref<9x4x4xbf16, #tpu.memory_space<vmem>>, %arg5: memref<1x4xf32, #tpu.memory_space<vmem>>, %arg6: memref<1x4x16x4xbf16, #tpu.memory_space<vmem>>, %arg7: memref<1x8x16x4xf32, #tpu.memory_space<vmem>>) attributes {dimension_semantics = [#tpu.dimension_semantics<parallel>, #tpu.dimension_semantics<parallel>], iteration_bounds = array<i64: 2, 2>, scalar_prefetch = 0 : i64, scratch_operands = 0 : i64, tpu.core_type = #tpu.core_type<tc>, window_params = [{transform_indices = @transform_0, window_bounds = array<i64: 1, 8, 18, 4>}, {transform_indices = @transform_1, window_bounds = array<i64: 1, 1, 2, 18, 4>}, {pipeline_mode = #tpu.pipeline_mode<synchronous>, transform_indices = @transform_2, window_bounds = array<i64: 9, 4, 4>}, {pipeline_mode = #tpu.pipeline_mode<synchronous>, transform_indices = @transform_3, window_bounds = array<i64: 1, 4>}, {transform_indices = @transform_4, window_bounds = array<i64: 1, 4, 16, 4>}, {transform_indices = @transform_5, window_bounds = array<i64: 1, 8, 16, 4>}]} {
    %c0 = arith.constant 0 : index
    %c0_0 = arith.constant 0 : index
    %c0_1 = arith.constant 0 : index
    %c0_2 = arith.constant 0 : index
    %0 = vector.load %arg2[%c0, %c0_0, %c0_1, %c0_2] : memref<1x8x18x4xbf16, #tpu.memory_space<vmem>>, vector<1x8x18x4xbf16>
    %1 = vector.shape_cast %0 : vector<1x8x18x4xbf16> to vector<8x18x4xbf16>
    %c0_3 = arith.constant 0 : index
    %c0_4 = arith.constant 0 : index
    %c0_5 = arith.constant 0 : index
    %c0_6 = arith.constant 0 : index
    %c0_7 = arith.constant 0 : index
    %2 = vector.load %arg3[%c0_3, %c0_4, %c0_5, %c0_6, %c0_7] : memref<1x1x2x18x4xbf16, #tpu.memory_space<vmem>>, vector<1x1x2x18x4xbf16>
    %3 = vector.shape_cast %2 : vector<1x1x2x18x4xbf16> to vector<2x18x4xbf16>
    %4 = tpu.concatenate %1, %3 in 0 : vector<8x18x4xbf16>, vector<2x18x4xbf16> -> vector<10x18x4xbf16>
    %5 = vector.extract_strided_slice %4 {offsets = [0, 0, 0], sizes = [8, 16, 4], strides = [1, 1, 1]} : vector<10x18x4xbf16> to vector<8x16x4xbf16>
    %6 = vector.shape_cast %5 : vector<8x16x4xbf16> to vector<128x4xbf16>
    %c0_8 = arith.constant 0 : index
    %c0_9 = arith.constant 0 : index
    %c0_10 = arith.constant 0 : index
    %7 = vector.load %arg4[%c0_8, %c0_9, %c0_10] : memref<9x4x4xbf16, #tpu.memory_space<vmem>>, vector<1x4x4xbf16>
    %8 = vector.shape_cast %7 : vector<1x4x4xbf16> to vector<4x4xbf16>
    %cst = arith.constant dense<0.000000e+00> : vector<128x4xf32>
    %9 = tpu.matmul %6, %8, %cst {dimension_numbers = #tpu.dot_dimension_numbers<[1], [0], [0], [1], [0, 0, 1, 1], [], []>} : vector<128x4xbf16>, vector<4x4xbf16>, vector<128x4xf32> -> vector<128x4xf32>
    %10 = vector.extract_strided_slice %4 {offsets = [0, 1, 0], sizes = [8, 16, 4], strides = [1, 1, 1]} : vector<10x18x4xbf16> to vector<8x16x4xbf16>
    %11 = vector.shape_cast %10 : vector<8x16x4xbf16> to vector<128x4xbf16>
    %c1 = arith.constant 1 : index
    %c0_11 = arith.constant 0 : index
    %c0_12 = arith.constant 0 : index
    %12 = vector.load %arg4[%c1, %c0_11, %c0_12] : memref<9x4x4xbf16, #tpu.memory_space<vmem>>, vector<1x4x4xbf16>
    %13 = vector.shape_cast %12 : vector<1x4x4xbf16> to vector<4x4xbf16>
    %cst_13 = arith.constant dense<0.000000e+00> : vector<128x4xf32>
    %14 = tpu.matmul %11, %13, %cst_13 {dimension_numbers = #tpu.dot_dimension_numbers<[1], [0], [0], [1], [0, 0, 1, 1], [], []>} : vector<128x4xbf16>, vector<4x4xbf16>, vector<128x4xf32> -> vector<128x4xf32>
    %15 = arith.addf %9, %14 : vector<128x4xf32>
    %16 = vector.extract_strided_slice %4 {offsets = [0, 2, 0], sizes = [8, 16, 4], strides = [1, 1, 1]} : vector<10x18x4xbf16> to vector<8x16x4xbf16>
    %17 = vector.shape_cast %16 : vector<8x16x4xbf16> to vector<128x4xbf16>
    %c2 = arith.constant 2 : index
    %c0_14 = arith.constant 0 : index
    %c0_15 = arith.constant 0 : index
    %18 = vector.load %arg4[%c2, %c0_14, %c0_15] : memref<9x4x4xbf16, #tpu.memory_space<vmem>>, vector<1x4x4xbf16>
    %19 = vector.shape_cast %18 : vector<1x4x4xbf16> to vector<4x4xbf16>
    %cst_16 = arith.constant dense<0.000000e+00> : vector<128x4xf32>
    %20 = tpu.matmul %17, %19, %cst_16 {dimension_numbers = #tpu.dot_dimension_numbers<[1], [0], [0], [1], [0, 0, 1, 1], [], []>} : vector<128x4xbf16>, vector<4x4xbf16>, vector<128x4xf32> -> vector<128x4xf32>
    %21 = arith.addf %15, %20 : vector<128x4xf32>
    %22 = vector.extract_strided_slice %4 {offsets = [1, 0, 0], sizes = [8, 16, 4], strides = [1, 1, 1]} : vector<10x18x4xbf16> to vector<8x16x4xbf16>
    %23 = vector.shape_cast %22 : vector<8x16x4xbf16> to vector<128x4xbf16>
    %c3 = arith.constant 3 : index
    %c0_17 = arith.constant 0 : index
    %c0_18 = arith.constant 0 : index
    %24 = vector.load %arg4[%c3, %c0_17, %c0_18] : memref<9x4x4xbf16, #tpu.memory_space<vmem>>, vector<1x4x4xbf16>
    %25 = vector.shape_cast %24 : vector<1x4x4xbf16> to vector<4x4xbf16>
    %cst_19 = arith.constant dense<0.000000e+00> : vector<128x4xf32>
    %26 = tpu.matmul %23, %25, %cst_19 {dimension_numbers = #tpu.dot_dimension_numbers<[1], [0], [0], [1], [0, 0, 1, 1], [], []>} : vector<128x4xbf16>, vector<4x4xbf16>, vector<128x4xf32> -> vector<128x4xf32>
    %27 = arith.addf %21, %26 : vector<128x4xf32>
    %28 = vector.extract_strided_slice %4 {offsets = [1, 1, 0], sizes = [8, 16, 4], strides = [1, 1, 1]} : vector<10x18x4xbf16> to vector<8x16x4xbf16>
    %29 = vector.shape_cast %28 : vector<8x16x4xbf16> to vector<128x4xbf16>
    %c4 = arith.constant 4 : index
    %c0_20 = arith.constant 0 : index
    %c0_21 = arith.constant 0 : index
    %30 = vector.load %arg4[%c4, %c0_20, %c0_21] : memref<9x4x4xbf16, #tpu.memory_space<vmem>>, vector<1x4x4xbf16>
    %31 = vector.shape_cast %30 : vector<1x4x4xbf16> to vector<4x4xbf16>
    %cst_22 = arith.constant dense<0.000000e+00> : vector<128x4xf32>
    %32 = tpu.matmul %29, %31, %cst_22 {dimension_numbers = #tpu.dot_dimension_numbers<[1], [0], [0], [1], [0, 0, 1, 1], [], []>} : vector<128x4xbf16>, vector<4x4xbf16>, vector<128x4xf32> -> vector<128x4xf32>
    %33 = arith.addf %27, %32 : vector<128x4xf32>
    %34 = vector.extract_strided_slice %4 {offsets = [1, 2, 0], sizes = [8, 16, 4], strides = [1, 1, 1]} : vector<10x18x4xbf16> to vector<8x16x4xbf16>
    %35 = vector.shape_cast %34 : vector<8x16x4xbf16> to vector<128x4xbf16>
    %c5 = arith.constant 5 : index
    %c0_23 = arith.constant 0 : index
    %c0_24 = arith.constant 0 : index
    %36 = vector.load %arg4[%c5, %c0_23, %c0_24] : memref<9x4x4xbf16, #tpu.memory_space<vmem>>, vector<1x4x4xbf16>
    %37 = vector.shape_cast %36 : vector<1x4x4xbf16> to vector<4x4xbf16>
    %cst_25 = arith.constant dense<0.000000e+00> : vector<128x4xf32>
    %38 = tpu.matmul %35, %37, %cst_25 {dimension_numbers = #tpu.dot_dimension_numbers<[1], [0], [0], [1], [0, 0, 1, 1], [], []>} : vector<128x4xbf16>, vector<4x4xbf16>, vector<128x4xf32> -> vector<128x4xf32>
    %39 = arith.addf %33, %38 : vector<128x4xf32>
    %40 = vector.extract_strided_slice %4 {offsets = [2, 0, 0], sizes = [8, 16, 4], strides = [1, 1, 1]} : vector<10x18x4xbf16> to vector<8x16x4xbf16>
    %41 = vector.shape_cast %40 : vector<8x16x4xbf16> to vector<128x4xbf16>
    %c6 = arith.constant 6 : index
    %c0_26 = arith.constant 0 : index
    %c0_27 = arith.constant 0 : index
    %42 = vector.load %arg4[%c6, %c0_26, %c0_27] : memref<9x4x4xbf16, #tpu.memory_space<vmem>>, vector<1x4x4xbf16>
    %43 = vector.shape_cast %42 : vector<1x4x4xbf16> to vector<4x4xbf16>
    %cst_28 = arith.constant dense<0.000000e+00> : vector<128x4xf32>
    %44 = tpu.matmul %41, %43, %cst_28 {dimension_numbers = #tpu.dot_dimension_numbers<[1], [0], [0], [1], [0, 0, 1, 1], [], []>} : vector<128x4xbf16>, vector<4x4xbf16>, vector<128x4xf32> -> vector<128x4xf32>
    %45 = arith.addf %39, %44 : vector<128x4xf32>
    %46 = vector.extract_strided_slice %4 {offsets = [2, 1, 0], sizes = [8, 16, 4], strides = [1, 1, 1]} : vector<10x18x4xbf16> to vector<8x16x4xbf16>
    %47 = vector.shape_cast %46 : vector<8x16x4xbf16> to vector<128x4xbf16>
    %c7 = arith.constant 7 : index
    %c0_29 = arith.constant 0 : index
    %c0_30 = arith.constant 0 : index
    %48 = vector.load %arg4[%c7, %c0_29, %c0_30] : memref<9x4x4xbf16, #tpu.memory_space<vmem>>, vector<1x4x4xbf16>
    %49 = vector.shape_cast %48 : vector<1x4x4xbf16> to vector<4x4xbf16>
    %cst_31 = arith.constant dense<0.000000e+00> : vector<128x4xf32>
    %50 = tpu.matmul %47, %49, %cst_31 {dimension_numbers = #tpu.dot_dimension_numbers<[1], [0], [0], [1], [0, 0, 1, 1], [], []>} : vector<128x4xbf16>, vector<4x4xbf16>, vector<128x4xf32> -> vector<128x4xf32>
    %51 = arith.addf %45, %50 : vector<128x4xf32>
    %52 = vector.extract_strided_slice %4 {offsets = [2, 2, 0], sizes = [8, 16, 4], strides = [1, 1, 1]} : vector<10x18x4xbf16> to vector<8x16x4xbf16>
    %53 = vector.shape_cast %52 : vector<8x16x4xbf16> to vector<128x4xbf16>
    %c8 = arith.constant 8 : index
    %c0_32 = arith.constant 0 : index
    %c0_33 = arith.constant 0 : index
    %54 = vector.load %arg4[%c8, %c0_32, %c0_33] : memref<9x4x4xbf16, #tpu.memory_space<vmem>>, vector<1x4x4xbf16>
    %55 = vector.shape_cast %54 : vector<1x4x4xbf16> to vector<4x4xbf16>
    %cst_34 = arith.constant dense<0.000000e+00> : vector<128x4xf32>
    %56 = tpu.matmul %53, %55, %cst_34 {dimension_numbers = #tpu.dot_dimension_numbers<[1], [0], [0], [1], [0, 0, 1, 1], [], []>} : vector<128x4xbf16>, vector<4x4xbf16>, vector<128x4xf32> -> vector<128x4xf32>
    %57 = arith.addf %51, %56 : vector<128x4xf32>
    %58 = vector.shape_cast %57 : vector<128x4xf32> to vector<8x16x4xf32>
    %c0_35 = arith.constant 0 : index
    %c0_36 = arith.constant 0 : index
    %c0_37 = arith.constant 0 : index
    %c0_38 = arith.constant 0 : index
    %59 = vector.load %arg6[%c0_35, %c0_36, %c0_37, %c0_38] : memref<1x4x16x4xbf16, #tpu.memory_space<vmem>>, vector<1x4x16x4xbf16>
    %60 = vector.shape_cast %59 : vector<1x4x16x4xbf16> to vector<4x16x4xbf16>
    %61 = vector.shape_cast %60 : vector<4x16x4xbf16> to vector<4x1x16x4xbf16>
    %62 = vector.shape_cast %61 : vector<4x1x16x4xbf16> to vector<4x1x16x4xbf16>
    %63 = vector.broadcast %62 : vector<4x1x16x4xbf16> to vector<4x2x16x4xbf16>
    %64 = vector.shape_cast %63 : vector<4x2x16x4xbf16> to vector<8x16x4xbf16>
    %65 = arith.extf %64 : vector<8x16x4xbf16> to vector<8x16x4xf32>
    %66 = arith.addf %58, %65 : vector<8x16x4xf32>
    %c0_39 = arith.constant 0 : index
    %c0_40 = arith.constant 0 : index
    %67 = vector.load %arg5[%c0_39, %c0_40] : memref<1x4xf32, #tpu.memory_space<vmem>>, vector<1x4xf32>
    %68 = vector.shape_cast %67 : vector<1x4xf32> to vector<1x1x4xf32>
    %69 = vector.broadcast %68 : vector<1x1x4xf32> to vector<8x16x4xf32>
    %70 = arith.addf %66, %69 : vector<8x16x4xf32>
    %cst_41 = arith.constant 0.000000e+00 : f32
    %71 = vector.broadcast %cst_41 : f32 to vector<8x16x4xf32>
    %72 = arith.maximumf %70, %71 : vector<8x16x4xf32>
    %c0_42 = arith.constant 0 : index
    %c0_43 = arith.constant 0 : index
    %c0_44 = arith.constant 0 : index
    %c0_45 = arith.constant 0 : index
    %73 = vector.load %arg7[%c0_42, %c0_43, %c0_44, %c0_45] : memref<1x8x16x4xf32, #tpu.memory_space<vmem>>, vector<1x8x16x4xf32>
    %74 = vector.shape_cast %73 : vector<1x8x16x4xf32> to vector<8x16x4xf32>
    %75 = vector.shape_cast %72 : vector<8x16x4xf32> to vector<1x8x16x4xf32>
    tpu.vector_store %arg7[%c0_42, %c0_43, %c0_44, %c0_45], %75 {strides = array<i32>} : memref<1x8x16x4xf32, #tpu.memory_space<vmem>>, vector<1x8x16x4xf32>,
    return
  }
  func.func @transform_0(%arg0: i32, %arg1: i32) -> (i32, i32, i32, i32) {
    %c0_i32 = arith.constant 0 : i32
    %c0_i32_0 = arith.constant 0 : i32
    %c0_i32_1 = arith.constant 0 : i32
    return %arg0, %arg1, %c0_i32, %c0_i32_0 : i32, i32, i32, i32
  }
  func.func @transform_1(%arg0: i32, %arg1: i32) -> (i32, i32, i32, i32, i32) {
    %c0_i32 = arith.constant 0 : i32
    %c0_i32_0 = arith.constant 0 : i32
    %c0_i32_1 = arith.constant 0 : i32
    %c0_i32_2 = arith.constant 0 : i32
    return %arg0, %arg1, %c0_i32, %c0_i32_0, %c0_i32_1 : i32, i32, i32, i32, i32
  }
  func.func @transform_2(%arg0: i32, %arg1: i32) -> (i32, i32, i32) {
    %c0_i32 = arith.constant 0 : i32
    %c0_i32_0 = arith.constant 0 : i32
    %c0_i32_1 = arith.constant 0 : i32
    %c0_i32_2 = arith.constant 0 : i32
    return %c0_i32, %c0_i32_0, %c0_i32_1 : i32, i32, i32
  }
  func.func @transform_3(%arg0: i32, %arg1: i32) -> (i32, i32) {
    %c0_i32 = arith.constant 0 : i32
    %c0_i32_0 = arith.constant 0 : i32
    %c0_i32_1 = arith.constant 0 : i32
    return %c0_i32, %c0_i32_0 : i32, i32
  }
  func.func @transform_4(%arg0: i32, %arg1: i32) -> (i32, i32, i32, i32) {
    %c0_i32 = arith.constant 0 : i32
    %c0_i32_0 = arith.constant 0 : i32
    %c0_i32_1 = arith.constant 0 : i32
    return %arg0, %arg1, %c0_i32, %c0_i32_0 : i32, i32, i32, i32
  }
  func.func @transform_5(%arg0: i32, %arg1: i32) -> (i32, i32, i32, i32) {
    %c0_i32 = arith.constant 0 : i32
    %c0_i32_0 = arith.constant 0 : i32
    %c0_i32_1 = arith.constant 0 : i32
    return %arg0, %arg1, %c0_i32, %c0_i32_0 : i32, i32, i32, i32
  }
}

module attributes {stable_mosaic.version = 11 : i64} {
  func.func @_conv_bn_add_kernel(%arg0: i32, %arg1: i32, %arg2: memref<1x4x10x4xbf16, #tpu.memory_space<vmem>>, %arg3: memref<1x1x2x10x4xbf16, #tpu.memory_space<vmem>>, %arg4: memref<9x4x4xbf16, #tpu.memory_space<vmem>>, %arg5: memref<1x4xf32, #tpu.memory_space<vmem>>, %arg6: memref<1x4x8x4xbf16, #tpu.memory_space<vmem>>, %arg7: memref<1x4x8x4xf32, #tpu.memory_space<vmem>>) attributes {dimension_semantics = [#tpu.dimension_semantics<parallel>, #tpu.dimension_semantics<parallel>], iteration_bounds = array<i64: 2, 2>, scalar_prefetch = 0 : i64, scratch_operands = 0 : i64, tpu.core_type = #tpu.core_type<tc>, window_params = [{transform_indices = @transform_0, window_bounds = array<i64: 1, 4, 10, 4>}, {transform_indices = @transform_1, window_bounds = array<i64: 1, 1, 2, 10, 4>}, {pipeline_mode = #tpu.pipeline_mode<synchronous>, transform_indices = @transform_2, window_bounds = array<i64: 9, 4, 4>}, {pipeline_mode = #tpu.pipeline_mode<synchronous>, transform_indices = @transform_3, window_bounds = array<i64: 1, 4>}, {transform_indices = @transform_4, window_bounds = array<i64: 1, 4, 8, 4>}, {transform_indices = @transform_5, window_bounds = array<i64: 1, 4, 8, 4>}]} {
    %c0 = arith.constant 0 : index
    %c0_0 = arith.constant 0 : index
    %c0_1 = arith.constant 0 : index
    %c0_2 = arith.constant 0 : index
    %0 = vector.load %arg2[%c0, %c0_0, %c0_1, %c0_2] : memref<1x4x10x4xbf16, #tpu.memory_space<vmem>>, vector<1x4x10x4xbf16>
    %1 = vector.shape_cast %0 : vector<1x4x10x4xbf16> to vector<4x10x4xbf16>
    %c0_3 = arith.constant 0 : index
    %c0_4 = arith.constant 0 : index
    %c0_5 = arith.constant 0 : index
    %c0_6 = arith.constant 0 : index
    %c0_7 = arith.constant 0 : index
    %2 = vector.load %arg3[%c0_3, %c0_4, %c0_5, %c0_6, %c0_7] : memref<1x1x2x10x4xbf16, #tpu.memory_space<vmem>>, vector<1x1x2x10x4xbf16>
    %3 = vector.shape_cast %2 : vector<1x1x2x10x4xbf16> to vector<2x10x4xbf16>
    %4 = tpu.concatenate %1, %3 in 0 : vector<4x10x4xbf16>, vector<2x10x4xbf16> -> vector<6x10x4xbf16>
    %5 = vector.extract_strided_slice %4 {offsets = [0, 0, 0], sizes = [4, 8, 4], strides = [1, 1, 1]} : vector<6x10x4xbf16> to vector<4x8x4xbf16>
    %6 = vector.shape_cast %5 : vector<4x8x4xbf16> to vector<32x4xbf16>
    %c0_8 = arith.constant 0 : index
    %c0_9 = arith.constant 0 : index
    %c0_10 = arith.constant 0 : index
    %7 = vector.load %arg4[%c0_8, %c0_9, %c0_10] : memref<9x4x4xbf16, #tpu.memory_space<vmem>>, vector<1x4x4xbf16>
    %8 = vector.shape_cast %7 : vector<1x4x4xbf16> to vector<4x4xbf16>
    %cst = arith.constant dense<0.000000e+00> : vector<32x4xf32>
    %9 = tpu.matmul %6, %8, %cst {dimension_numbers = #tpu.dot_dimension_numbers<[1], [0], [0], [1], [0, 0, 1, 1], [], []>} : vector<32x4xbf16>, vector<4x4xbf16>, vector<32x4xf32> -> vector<32x4xf32>
    %10 = vector.extract_strided_slice %4 {offsets = [0, 1, 0], sizes = [4, 8, 4], strides = [1, 1, 1]} : vector<6x10x4xbf16> to vector<4x8x4xbf16>
    %11 = vector.shape_cast %10 : vector<4x8x4xbf16> to vector<32x4xbf16>
    %c1 = arith.constant 1 : index
    %c0_11 = arith.constant 0 : index
    %c0_12 = arith.constant 0 : index
    %12 = vector.load %arg4[%c1, %c0_11, %c0_12] : memref<9x4x4xbf16, #tpu.memory_space<vmem>>, vector<1x4x4xbf16>
    %13 = vector.shape_cast %12 : vector<1x4x4xbf16> to vector<4x4xbf16>
    %cst_13 = arith.constant dense<0.000000e+00> : vector<32x4xf32>
    %14 = tpu.matmul %11, %13, %cst_13 {dimension_numbers = #tpu.dot_dimension_numbers<[1], [0], [0], [1], [0, 0, 1, 1], [], []>} : vector<32x4xbf16>, vector<4x4xbf16>, vector<32x4xf32> -> vector<32x4xf32>
    %15 = arith.addf %9, %14 : vector<32x4xf32>
    %16 = vector.extract_strided_slice %4 {offsets = [0, 2, 0], sizes = [4, 8, 4], strides = [1, 1, 1]} : vector<6x10x4xbf16> to vector<4x8x4xbf16>
    %17 = vector.shape_cast %16 : vector<4x8x4xbf16> to vector<32x4xbf16>
    %c2 = arith.constant 2 : index
    %c0_14 = arith.constant 0 : index
    %c0_15 = arith.constant 0 : index
    %18 = vector.load %arg4[%c2, %c0_14, %c0_15] : memref<9x4x4xbf16, #tpu.memory_space<vmem>>, vector<1x4x4xbf16>
    %19 = vector.shape_cast %18 : vector<1x4x4xbf16> to vector<4x4xbf16>
    %cst_16 = arith.constant dense<0.000000e+00> : vector<32x4xf32>
    %20 = tpu.matmul %17, %19, %cst_16 {dimension_numbers = #tpu.dot_dimension_numbers<[1], [0], [0], [1], [0, 0, 1, 1], [], []>} : vector<32x4xbf16>, vector<4x4xbf16>, vector<32x4xf32> -> vector<32x4xf32>
    %21 = arith.addf %15, %20 : vector<32x4xf32>
    %22 = vector.extract_strided_slice %4 {offsets = [1, 0, 0], sizes = [4, 8, 4], strides = [1, 1, 1]} : vector<6x10x4xbf16> to vector<4x8x4xbf16>
    %23 = vector.shape_cast %22 : vector<4x8x4xbf16> to vector<32x4xbf16>
    %c3 = arith.constant 3 : index
    %c0_17 = arith.constant 0 : index
    %c0_18 = arith.constant 0 : index
    %24 = vector.load %arg4[%c3, %c0_17, %c0_18] : memref<9x4x4xbf16, #tpu.memory_space<vmem>>, vector<1x4x4xbf16>
    %25 = vector.shape_cast %24 : vector<1x4x4xbf16> to vector<4x4xbf16>
    %cst_19 = arith.constant dense<0.000000e+00> : vector<32x4xf32>
    %26 = tpu.matmul %23, %25, %cst_19 {dimension_numbers = #tpu.dot_dimension_numbers<[1], [0], [0], [1], [0, 0, 1, 1], [], []>} : vector<32x4xbf16>, vector<4x4xbf16>, vector<32x4xf32> -> vector<32x4xf32>
    %27 = arith.addf %21, %26 : vector<32x4xf32>
    %28 = vector.extract_strided_slice %4 {offsets = [1, 1, 0], sizes = [4, 8, 4], strides = [1, 1, 1]} : vector<6x10x4xbf16> to vector<4x8x4xbf16>
    %29 = vector.shape_cast %28 : vector<4x8x4xbf16> to vector<32x4xbf16>
    %c4 = arith.constant 4 : index
    %c0_20 = arith.constant 0 : index
    %c0_21 = arith.constant 0 : index
    %30 = vector.load %arg4[%c4, %c0_20, %c0_21] : memref<9x4x4xbf16, #tpu.memory_space<vmem>>, vector<1x4x4xbf16>
    %31 = vector.shape_cast %30 : vector<1x4x4xbf16> to vector<4x4xbf16>
    %cst_22 = arith.constant dense<0.000000e+00> : vector<32x4xf32>
    %32 = tpu.matmul %29, %31, %cst_22 {dimension_numbers = #tpu.dot_dimension_numbers<[1], [0], [0], [1], [0, 0, 1, 1], [], []>} : vector<32x4xbf16>, vector<4x4xbf16>, vector<32x4xf32> -> vector<32x4xf32>
    %33 = arith.addf %27, %32 : vector<32x4xf32>
    %34 = vector.extract_strided_slice %4 {offsets = [1, 2, 0], sizes = [4, 8, 4], strides = [1, 1, 1]} : vector<6x10x4xbf16> to vector<4x8x4xbf16>
    %35 = vector.shape_cast %34 : vector<4x8x4xbf16> to vector<32x4xbf16>
    %c5 = arith.constant 5 : index
    %c0_23 = arith.constant 0 : index
    %c0_24 = arith.constant 0 : index
    %36 = vector.load %arg4[%c5, %c0_23, %c0_24] : memref<9x4x4xbf16, #tpu.memory_space<vmem>>, vector<1x4x4xbf16>
    %37 = vector.shape_cast %36 : vector<1x4x4xbf16> to vector<4x4xbf16>
    %cst_25 = arith.constant dense<0.000000e+00> : vector<32x4xf32>
    %38 = tpu.matmul %35, %37, %cst_25 {dimension_numbers = #tpu.dot_dimension_numbers<[1], [0], [0], [1], [0, 0, 1, 1], [], []>} : vector<32x4xbf16>, vector<4x4xbf16>, vector<32x4xf32> -> vector<32x4xf32>
    %39 = arith.addf %33, %38 : vector<32x4xf32>
    %40 = vector.extract_strided_slice %4 {offsets = [2, 0, 0], sizes = [4, 8, 4], strides = [1, 1, 1]} : vector<6x10x4xbf16> to vector<4x8x4xbf16>
    %41 = vector.shape_cast %40 : vector<4x8x4xbf16> to vector<32x4xbf16>
    %c6 = arith.constant 6 : index
    %c0_26 = arith.constant 0 : index
    %c0_27 = arith.constant 0 : index
    %42 = vector.load %arg4[%c6, %c0_26, %c0_27] : memref<9x4x4xbf16, #tpu.memory_space<vmem>>, vector<1x4x4xbf16>
    %43 = vector.shape_cast %42 : vector<1x4x4xbf16> to vector<4x4xbf16>
    %cst_28 = arith.constant dense<0.000000e+00> : vector<32x4xf32>
    %44 = tpu.matmul %41, %43, %cst_28 {dimension_numbers = #tpu.dot_dimension_numbers<[1], [0], [0], [1], [0, 0, 1, 1], [], []>} : vector<32x4xbf16>, vector<4x4xbf16>, vector<32x4xf32> -> vector<32x4xf32>
    %45 = arith.addf %39, %44 : vector<32x4xf32>
    %46 = vector.extract_strided_slice %4 {offsets = [2, 1, 0], sizes = [4, 8, 4], strides = [1, 1, 1]} : vector<6x10x4xbf16> to vector<4x8x4xbf16>
    %47 = vector.shape_cast %46 : vector<4x8x4xbf16> to vector<32x4xbf16>
    %c7 = arith.constant 7 : index
    %c0_29 = arith.constant 0 : index
    %c0_30 = arith.constant 0 : index
    %48 = vector.load %arg4[%c7, %c0_29, %c0_30] : memref<9x4x4xbf16, #tpu.memory_space<vmem>>, vector<1x4x4xbf16>
    %49 = vector.shape_cast %48 : vector<1x4x4xbf16> to vector<4x4xbf16>
    %cst_31 = arith.constant dense<0.000000e+00> : vector<32x4xf32>
    %50 = tpu.matmul %47, %49, %cst_31 {dimension_numbers = #tpu.dot_dimension_numbers<[1], [0], [0], [1], [0, 0, 1, 1], [], []>} : vector<32x4xbf16>, vector<4x4xbf16>, vector<32x4xf32> -> vector<32x4xf32>
    %51 = arith.addf %45, %50 : vector<32x4xf32>
    %52 = vector.extract_strided_slice %4 {offsets = [2, 2, 0], sizes = [4, 8, 4], strides = [1, 1, 1]} : vector<6x10x4xbf16> to vector<4x8x4xbf16>
    %53 = vector.shape_cast %52 : vector<4x8x4xbf16> to vector<32x4xbf16>
    %c8 = arith.constant 8 : index
    %c0_32 = arith.constant 0 : index
    %c0_33 = arith.constant 0 : index
    %54 = vector.load %arg4[%c8, %c0_32, %c0_33] : memref<9x4x4xbf16, #tpu.memory_space<vmem>>, vector<1x4x4xbf16>
    %55 = vector.shape_cast %54 : vector<1x4x4xbf16> to vector<4x4xbf16>
    %cst_34 = arith.constant dense<0.000000e+00> : vector<32x4xf32>
    %56 = tpu.matmul %53, %55, %cst_34 {dimension_numbers = #tpu.dot_dimension_numbers<[1], [0], [0], [1], [0, 0, 1, 1], [], []>} : vector<32x4xbf16>, vector<4x4xbf16>, vector<32x4xf32> -> vector<32x4xf32>
    %57 = arith.addf %51, %56 : vector<32x4xf32>
    %58 = vector.shape_cast %57 : vector<32x4xf32> to vector<4x8x4xf32>
    %c0_35 = arith.constant 0 : index
    %c0_36 = arith.constant 0 : index
    %c0_37 = arith.constant 0 : index
    %c0_38 = arith.constant 0 : index
    %59 = vector.load %arg6[%c0_35, %c0_36, %c0_37, %c0_38] : memref<1x4x8x4xbf16, #tpu.memory_space<vmem>>, vector<1x4x8x4xbf16>
    %60 = vector.shape_cast %59 : vector<1x4x8x4xbf16> to vector<4x8x4xbf16>
    %61 = arith.extf %60 : vector<4x8x4xbf16> to vector<4x8x4xf32>
    %62 = arith.addf %58, %61 : vector<4x8x4xf32>
    %c0_39 = arith.constant 0 : index
    %c0_40 = arith.constant 0 : index
    %63 = vector.load %arg5[%c0_39, %c0_40] : memref<1x4xf32, #tpu.memory_space<vmem>>, vector<1x4xf32>
    %64 = vector.shape_cast %63 : vector<1x4xf32> to vector<1x1x4xf32>
    %65 = vector.broadcast %64 : vector<1x1x4xf32> to vector<4x8x4xf32>
    %66 = arith.addf %62, %65 : vector<4x8x4xf32>
    %cst_41 = arith.constant 0.000000e+00 : f32
    %67 = vector.broadcast %cst_41 : f32 to vector<4x8x4xf32>
    %68 = arith.maximumf %66, %67 : vector<4x8x4xf32>
    %c0_42 = arith.constant 0 : index
    %c0_43 = arith.constant 0 : index
    %c0_44 = arith.constant 0 : index
    %c0_45 = arith.constant 0 : index
    %69 = vector.load %arg7[%c0_42, %c0_43, %c0_44, %c0_45] : memref<1x4x8x4xf32, #tpu.memory_space<vmem>>, vector<1x4x8x4xf32>
    %70 = vector.shape_cast %69 : vector<1x4x8x4xf32> to vector<4x8x4xf32>
    %71 = vector.shape_cast %68 : vector<4x8x4xf32> to vector<1x4x8x4xf32>
    tpu.vector_store %arg7[%c0_42, %c0_43, %c0_44, %c0_45], %71 {strides = array<i32>} : memref<1x4x8x4xf32, #tpu.memory_space<vmem>>, vector<1x4x8x4xf32>,
    return
  }
  func.func @transform_0(%arg0: i32, %arg1: i32) -> (i32, i32, i32, i32) {
    %c0_i32 = arith.constant 0 : i32
    %c0_i32_0 = arith.constant 0 : i32
    %c0_i32_1 = arith.constant 0 : i32
    return %arg0, %arg1, %c0_i32, %c0_i32_0 : i32, i32, i32, i32
  }
  func.func @transform_1(%arg0: i32, %arg1: i32) -> (i32, i32, i32, i32, i32) {
    %c0_i32 = arith.constant 0 : i32
    %c0_i32_0 = arith.constant 0 : i32
    %c0_i32_1 = arith.constant 0 : i32
    %c0_i32_2 = arith.constant 0 : i32
    return %arg0, %arg1, %c0_i32, %c0_i32_0, %c0_i32_1 : i32, i32, i32, i32, i32
  }
  func.func @transform_2(%arg0: i32, %arg1: i32) -> (i32, i32, i32) {
    %c0_i32 = arith.constant 0 : i32
    %c0_i32_0 = arith.constant 0 : i32
    %c0_i32_1 = arith.constant 0 : i32
    %c0_i32_2 = arith.constant 0 : i32
    return %c0_i32, %c0_i32_0, %c0_i32_1 : i32, i32, i32
  }
  func.func @transform_3(%arg0: i32, %arg1: i32) -> (i32, i32) {
    %c0_i32 = arith.constant 0 : i32
    %c0_i32_0 = arith.constant 0 : i32
    %c0_i32_1 = arith.constant 0 : i32
    return %c0_i32, %c0_i32_0 : i32, i32
  }
  func.func @transform_4(%arg0: i32, %arg1: i32) -> (i32, i32, i32, i32) {
    %c0_i32 = arith.constant 0 : i32
    %c0_i32_0 = arith.constant 0 : i32
    %c0_i32_1 = arith.constant 0 : i32
    return %arg0, %arg1, %c0_i32, %c0_i32_0 : i32, i32, i32, i32
  }
  func.func @transform_5(%arg0: i32, %arg1: i32) -> (i32, i32, i32, i32) {
    %c0_i32 = arith.constant 0 : i32
    %c0_i32_0 = arith.constant 0 : i32
    %c0_i32_1 = arith.constant 0 : i32
    return %arg0, %arg1, %c0_i32, %c0_i32_0 : i32, i32, i32, i32
  }
}

</mosaic_0001>

<bundles_post_ra>
// kernel: double_oct_conv_forward.7
= control target key start
LH: loop header
LB: loop body
LE: loop exit
PB: predicated region body
PF: predicated region fallthrough
CT: control target
= control target key end

     0   :  { %s1007_s12 = smov 0   ;;  %s1009_s13 = smov 0   ;;  %s1241_s0 = inlined_call_operand.vmem [shape: bf16[2,10,10,4], index: 0, kind: input, shape index: {}]   ;;  %s1242_s1 = inlined_call_operand.vmem [shape: bf16[2,2,2,10,4], index: 1, kind: input, shape index: {}]   ;;  %s1243_s2 = inlined_call_operand.vmem [shape: bf16[9,4,8], index: 2, kind: input, shape index: {}]   ;;  %s1244_s3 = inlined_call_operand.vmem [shape: bf16[2,8,8,8], index: 3, kind: output, shape index: {}]  }
   0x1   :  { %s1011_s14 = smov 0   ;;  %s1013_s15 = smov 0  }
   0x2   :  { %s1015_s16 = smov 0  }
   0x3 LB: > { %s22_s17 = sadd.s32 1, %s977_s14  ;;  %s25_s18 = sadd.s32 1, %s981_s15  ;;  %s985_s16 = sphi %s1015_s16, %s13_s16   ;;  %s981_s15 = sphi %s1013_s15, %s1252_s15   ;;  %s977_s14 = sphi %s1011_s14, %s1251_s14   ;;  %s973_s13 = sphi %s1009_s13, %s1250_s13   ;;  %s969_s12 = sphi %s1007_s12, %s1249_s12  }
   0x4   : > { %p23_p0 = scmp.ge.s32.totalorder %s22_s17, 2  ;;  %p861_p1 = scmp.ge.s32.totalorder %s985_s16, 1 }
   0x5   : > { %p185_p2 = scmp.lt.s32.totalorder %s985_s16, 5 }
   0x6   : > { %s1254_s17 = smov (%p23_p0, %s22_s17), 0  ;;  %s1256_s18 = smov (!%p23_p0, %s25_s18), %s981_s15 }
   0x7   : > { %p186_p3 = pnand %p861_p1, %p185_p2  ;;  %p27_p4 = scmp.ge.s32.totalorder %s1256_s18, 2 }
   0x8   : > { %s1043_s21 = sshll.u32 (!%p186_p3), %s969_s12, 2  ;;  %p238_p5 = scmp.lt.s32.totalorder (!%p186_p3), %s973_s13, 1 }
   0x9   : > { %s1258_s18 = smov (%p27_p4, %s1256_s18), 0  ;;  %189 = sbr.rel (%p186_p3) target bundleno = 248 (0xf8), region = 32 }
   0xa   : > { %p240_p6 = scmp.lt.s32.totalorder (!%p186_p3), %s1043_s21, 9  ;;  %p255_p7 = scmp.lt.s32.totalorder (!%p186_p3), %s969_s12, 1 }
   0xb   : > { %p265_p8 = scmp.lt.s32.totalorder (!%p186_p3), %s1043_s21, 7 }
   0xe   : > { %v871_v0 = vld [vmem:[%s1243_s2 + $0x2] sm:$0x3]  ;;  %vm360_vm0 = vcmask 1041408   ;;  %s1260_s13 = smov (!%p238_p5, %s973_s13), 1  ;;  %v285_v2 = vld [vmem:[%s1243_s2] sm:$0x3] }
   0xf   : > { %v362_v1 = vsel %vm360_vm0, %v871_v0, 0  ;;  %v880_v3 = vld [vmem:[%s1243_s2 + $0x4] sm:$0x3]  ;;  %s241_s26 = scalar_select %p240_p6, %s1043_s21, 9  ;;  %v400_v4 = vsel %vm360_vm0, %v285_v2, 0  ;;  %vm425_vm3 = vcmask 1042432  }
  0x10   : > { %371 = vmatpush.bf16.msra.mxu0 %v362_v1  ;;  %905 = vmatpush.bf16.msra.mxu1 %v362_v1  ;;  %v459_v5 = vsel %vm360_vm0, %v880_v3, 0  ;;  %v883_v6 = vld [vmem:[%s1243_s2 + $0x6] sm:$0x3]  ;;  %s906_s29 = smul.u32 20, %s1260_s13  ;;  %v886_v8 = vld [vmem:[%s1243_s2 + $0x8] sm:$0x3] }
  0x11   : > { %468 = vmatpush.bf16.msra.mxu2 %v459_v5  ;;  %v497_v7 = vsel %vm360_vm0, %v883_v6, 0  ;;  %v893_v9 = vld [vmem:[%s1243_s2 + $0xc] sm:$0x3]  ;;  %s863_s7 = sshll.u32 %s241_s26, 1  ;;  %v548_v10 = vsel %vm360_vm0, %v886_v8, 0  ;;  %vm426_vm4 = vcmask 1046532  }
  0x12   : > { %506 = vmatpush.bf16.msra.mxu3 %v497_v7  ;;  %v624_v11 = vsel %vm360_vm0, %v893_v9, 0  ;;  %v896_v12 = vld [vmem:[%s1243_s2 + $0xe] sm:$0x3]  ;;  %s244_s10 = sadd.s32 %s906_s29, %s863_s7  ;;  %vm286_vm1 = vsmask.f32 3328  ;;  %s866_s23 = sshll.u32 %s1260_s13, 3  ;;  %vm1114_vm6 = vmor %vm425_vm3, %vm426_vm4 }
  0x13   : > { %v671_v13 = vsel %vm360_vm0, %v896_v12, 0  ;;  %s864_s11 = sshll.u32 %s244_s10, 2  ;;  %vm287_vm2 = vsmask.f32 7440  ;;  %s1262_s12 = smov (!%p255_p7, %s969_s12), 1  ;;  %vm353_vm7 = vcmask 31744  }
  0x14   : > { %409 = vmatpush.bf16.msrb.mxu1 %v400_v4  ;;  %557 = vmatpush.bf16.msrb.mxu0 %v548_v10  ;;  %s246_s22 = scalar_lea.vmem %s1241_s0, %s864_s11  ;;  %vm1107_vm5 = vmor %vm286_vm1, %vm287_vm2  ;;  %s865_s24 = sshll.u32 %s1262_s12, 2  ;;  %v890_v10 = vld [vmem:[%s1243_s2 + $0xa] sm:$0x3]  ;;  %vm738_vm8 = vcmask 60416  }
  0x15   : > { %633 = vmatpush.bf16.msrb.mxu2 %v624_v11  ;;  %v1080_v14 = vld [vmem:[%s246_s22] sm:$0xf]  ;;  %v274_v15 = vld [vmem:[%s246_s22 + $0x4] sm:$0x1]  ;;  %v1082_v16 = vld [vmem:[%s246_s22 + $0x8] sm:$0xf]  ;;  %s259_s25 = sadd.s32 %s866_s23, %s865_s24 }
  0x16   : > { %680 = vmatpush.bf16.msrb.mxu3 %v671_v13  ;;  %v276_v17 = vld [vmem:[%s246_s22 + $0xc] sm:$0x1]  ;;  %v290_v18 = vshrl.u32 %v1080_v14, 16  ;;  %v293_v19 = vshll.u32 %v1080_v14, 16  ;;  %v299_v20 = vshll.u32 %v274_v15, 16  ;;  %v304_v21 = vshrl.u32 %v1082_v16, 16 }
  0x17   : > { %v307_v22 = vshll.u32 %v1082_v16, 16  ;;  %v313_v23 = vshll.u32 %v276_v17, 16  ;;  %v1088_v24 = vld [vmem:[%s246_s22 + $0x10] sm:$0xf]  ;;  %v1090_v25 = vld [vmem:[%s246_s22 + $0x14] sm:$0x1]  ;;  %v388_v26 = vunpack.c.l.b16 %v1082_v16 }
  0x18   : > { %v292_v27 = vrot.slane %v290_v18, 4  ;;  %v295_v28 = vrot.slane %v293_v19, 5  ;;  %v301_v29 = vrot.slane %v299_v20, 5  ;;  %v306_v30 = vrot.slane %v304_v21, 4  ;;  %v1093_v31 = vld [vmem:[%s246_s22 + $0x18] sm:$0xf] }
  0x19   : > { %v309_v32 = vrot.slane %v307_v22, 5  ;;  %v315_v33 = vrot.slane %v313_v23, 5  ;;  %v1095_v34 = vld [vmem:[%s246_s22 + $0x1c] sm:$0x1]  ;;  %v318_v35 = vshrl.u32 %v1088_v24, 16  ;;  %v321_v36 = vshll.u32 %v1088_v24, 16 }
  0x1a   : > { %v296_v37 = vor.u32 %v295_v28, %v292_v27  ;;  %v327_v38 = vshll.u32 %v1090_v25, 16  ;;  %v332_v39 = vshrl.u32 %v1093_v31, 16  ;;  %v335_v40 = vshll.u32 %v1093_v31, 16  ;;  %s867_s12 = sshll.u32 %s259_s25, 2  ;;  %v900_v13 = vld [vmem:[%s1243_s2 + $0x10] sm:$0x3] }
  0x1b   : > { %v310_v42 = vor.u32 %v309_v32, %v306_v30  ;;  %v320_v43 = vrot.slane %v318_v35, 4  ;;  %v323_v44 = vrot.slane %v321_v36, 5  ;;  %v341_v45 = vshll.u32 %v1095_v34, 16  ;;  %s1148_s30 = scalar_lea.vmem %s1242_s1, %s867_s12  ;;  %s1264_s21 = smov (!%p265_p8, %s1043_s21), 7 }
  0x1c   : > { %v297_v46 = vrot.slane %v296_v37, 4  ;;  %v329_v47 = vrot.slane %v327_v38, 5  ;;  %v334_v48 = vrot.slane %v332_v39, 4  ;;  %v337_v49 = vrot.slane %v335_v40, 5  ;;  %v1160_v19 = vld [vmem:[%s1148_s30] sm:$0xf]  ;;  %s268_s6 = sadd.s32 %s866_s23, %s1264_s21 }
  0x1d   : > { %v311_v50 = vrot.slane %v310_v42, 4  ;;  %v324_v51 = vor.u32 %v323_v44, %v320_v43  ;;  %v343_v52 = vrot.slane %v341_v45, 5  ;;  %v876_v54 = vrot.slane %v1080_v14, 9  ;;  %v282_v38 = vld [vmem:[%s1148_s30 + $0x4] sm:$0x1]  ;;  %s870_s7 = sshll.u32 %s268_s6, 2 }
  0x1e   : > { %v302_v55 = vsel %vm1107_vm5, %v297_v46, %v301_v29  ;;  %v338_v56 = vor.u32 %v337_v49, %v334_v48  ;;  %v430_v57 = vrot.slane %v274_v15, 5  ;;  %v877_v58 = vrot.slane %v1082_v16, 9  ;;  %s1216_s10 = scalar_lea.vmem %s1244_s3, %s870_s7 }
  0x1f   : > { %v316_v59 = vsel %vm1107_vm5, %v311_v50, %v315_v33  ;;  %v347_v60 = vunpack.c.l.b16 %v302_v55  ;;  %v325_v61 = vrot.slane %v324_v51, 4  ;;  %v434_v62 = vrot.slane %v276_v17, 5 }
  0x20   : > { %v348_v63 = vunpack.c.l.b16 %v316_v59  ;;  %v339_v0 = vrot.slane %v338_v56, 4  ;;  %v431_v1 = vsel %vm1114_vm6, %v876_v54, %v430_v57  ;;  %v389_v2 = vunpack.c.l.b16 %v1088_v24 }
  0x21   : > { %v330_v3 = vsel %vm1107_vm5, %v325_v61, %v329_v47  ;;  %v1133_v4 = vsel %vm1114_vm6, %v877_v58, %v434_v62  ;;  %v446_v5 = vunpack.c.l.b16 %v431_v1  ;;  %v590_v18 = vsel %vm360_vm0, %v890_v10, 0 }
  0x22   : > { %v351_v6 = vpack.c.b16 %v348_v63, %v347_v60  ;;  %v344_v7 = vsel %vm1107_vm5, %v339_v0, %v343_v52  ;;  %v349_v8 = vunpack.c.l.b16 %v330_v3  ;;  %v447_v9 = vunpack.c.l.b16 %v1133_v4 }
  0x23   : > { %v350_v11 = vunpack.c.l.b16 %v344_v7  ;;  %v488_v12 = vpack.c.b16 %v389_v2, %v388_v26  ;;  %v709_v20 = vsel %vm360_vm0, %v900_v13, 0  ;;  %v878_v21 = vrot.slane %v1088_v24, 9 }
  0x24   : > { %872 = vmatmul.msk.bf16.vlgmr.msra.gmra.mxu0 %vm353_vm7, %v351_v6  ;;  %v450_v15 = vpack.c.b16 %v447_v9, %v446_v5  ;;  %v438_v22 = vrot.slane %v1090_v25, 5  ;;  %v879_v23 = vrot.slane %v1093_v31, 9  ;;  %v442_v27 = vrot.slane %v1095_v34, 5 }
  0x25   : > { %v352_v17 = vpack.c.b16 %v350_v11, %v349_v8  ;;  %884 = vmatmul.msk.bf16.vlgmr.msra.gmra.mxu3 %vm353_vm7, %v488_v12  ;;  %718 = vmatpush.bf16.msra.mxu0 %v709_v20  ;;  %v523_v28 = vshrl.u32 %v1160_v19, 16  ;;  %v526_v29 = vshll.u32 %v1160_v19, 16  ;;  %v390_v33 = vunpack.c.l.b16 %v1093_v31 }
  0x26   : > { %881 = vmatmul.msk.bf16.vlgmr.msra.gmra.mxu2 %vm353_vm7, %v450_v15  ;;  %v439_v30 = vsel %vm1114_vm6, %v878_v21, %v438_v22  ;;  %v443_v32 = vsel %vm1114_vm6, %v879_v23, %v442_v27  ;;  %v487_v25 = vunpack.c.l.b16 %v1160_v19  ;;  %v387_v39 = vunpack.c.l.b16 %v1080_v14  ;;  %v283_v14 = vld [vmem:[%s1148_s30 + $0x8] sm:$0xf] }
  0x27   : > { %873 = vmatmul.msk.bf16.vlgmr.msra.gmra.mxu1 %vm353_vm7, %v352_v17  ;;  %v525_v35 = vrot.slane %v523_v28, 4  ;;  %v528_v36 = vrot.slane %v526_v29, 5  ;;  %v448_v37 = vunpack.c.l.b16 %v439_v30  ;;  %v449_v34 = vunpack.c.l.b16 %v443_v32 }
  0x28   : > { %599 = vmatpush.bf16.msra.mxu1 %v590_v18  ;;  %v539_v40 = vpack.c.b16 %v349_v8, %v348_v63  ;;  %v489_v42 = vpack.c.b16 %v487_v25, %v390_v33  ;;  %v532_v44 = vshll.u32 %v282_v38, 16  ;;  %v391_v46 = vpack.c.b16 %v388_v26, %v387_v39  ;;  %v284_v26 = vld [vmem:[%s1148_s30 + $0xc] sm:$0x1] }
  0x29   : > { %v529_v43 = vor.u32 %v528_v36, %v525_v35  ;;  %v451_v45 = vpack.c.b16 %v449_v34, %v448_v37  ;;  %v650_v49 = vshrl.u32 %v283_v14, 16  ;;  %v653_v50 = vshll.u32 %v283_v14, 16 }
  0x2a   : > { %v534_v47 = vrot.slane %v532_v44, 5  ;;  %v659_v56 = vshll.u32 %v284_v26, 16  ;;  %v392_v57 = vpack.c.b16 %v390_v33, %v389_v2  ;;  %v618_v62 = vunpack.c.l.b16 %v283_v14 }
  0x2b   : > { %v530_v31 = vrot.slane %v529_v43, 4  ;;  %v652_v52 = vrot.slane %v650_v49, 4  ;;  %v655_v16 = vrot.slane %v653_v50, 5  ;;  %v581_v24 = vpack.c.b16 %v448_v37, %v447_v9 }
  0x2c   : > { %v661_v59 = vrot.slane %v659_v56, 5  ;;  %v619_v0 = vpack.c.b16 %v618_v62, %v487_v25  ;;  %v889_v1 = vrot.slane %v1160_v19, 9  ;;  %v576_v2 = vrot.slane %v282_v38, 5 }
  0x2d   : > { %v535_v48 = vsel %vm1107_vm5, %v530_v31, %v534_v47  ;;  %v656_v55 = vor.u32 %v655_v16, %v652_v52  ;;  %v899_v3 = vrot.slane %v283_v14, 9  ;;  %v699_v5 = vrot.slane %v284_v26, 5 }
  0x2e   : > { %v538_v51 = vunpack.c.l.b16 %v535_v48  ;;  %v577_v41 = vsel %vm1114_vm6, %v889_v1, %v576_v2 }
  0x2f   : > { %v657_v58 = vrot.slane %v656_v55, 4  ;;  %v700_v4 = vsel %vm1114_vm6, %v899_v3, %v699_v5  ;;  %v580_v6 = vunpack.c.l.b16 %v577_v41 }
  0x30   : > { %v540_v54 = vpack.c.b16 %v538_v51, %v350_v11  ;;  %v703_v7 = vunpack.c.l.b16 %v700_v4 }
  0x31   : > { %v662_v60 = vsel %vm1107_vm5, %v657_v58, %v661_v59  ;;  %v582_v9 = vpack.c.b16 %v580_v6, %v449_v34 }
  0x32   : > { %v665_v61 = vunpack.c.l.b16 %v662_v60  ;;  %v704_v8 = vpack.c.b16 %v703_v7, %v580_v6 }
  0x34   : > { %887 = vmatmul.msk.bf16.vlgmr.msrb.gmra.mxu0 %vm353_vm7, %v539_v40  ;;  %v666_v63 = vpack.c.b16 %v665_v61, %v538_v51 }
  0x35   : > { %885 = vmatmul.msk.bf16.gmra.mxu3 %vm353_vm7, %v489_v42 }
  0x36   : > { %882 = vmatmul.msk.bf16.gmra.mxu2 %vm353_vm7, %v451_v45 }
  0x37   : > { %874 = vmatmul.msk.bf16.vlgmr.msrb.gmra.mxu1 %vm353_vm7, %v391_v46 }
  0x44   : > { %888 = vmatmul.msk.bf16.gmra.mxu0 %vm353_vm7, %v540_v54 }
  0x45   : > { %897 = vmatmul.msk.bf16.vlgmr.msrb.gmra.mxu3 %vm353_vm7, %v352_v17 }
  0x46   : > { %894 = vmatmul.msk.bf16.vlgmr.msrb.gmra.mxu2 %vm353_vm7, %v392_v57 }
  0x47   : > { %875 = vmatmul.msk.bf16.gmra.mxu1 %vm353_vm7, %v392_v57 }
  0x54   : > { %901 = vmatmul.msk.bf16.vlgmr.msra.gmra.mxu0 %vm353_vm7, %v451_v45 }
  0x55   : > { %898 = vmatmul.msk.bf16.gmra.mxu3 %vm353_vm7, %v666_v63 }
  0x56   : > { %895 = vmatmul.msk.bf16.gmra.mxu2 %vm353_vm7, %v619_v0 }
  0x57   : > { %891 = vmatmul.msk.bf16.vlgmr.msra.gmra.mxu1 %vm353_vm7, %v581_v24 }
  0x64   : > { %902 = vmatmul.msk.bf16.gmra.mxu0 %vm353_vm7, %v704_v8 }
  0x67   : > { %892 = vmatmul.msk.bf16.gmra.mxu1 %vm353_vm7, %v582_v9 }
  0xa1   : > { %v373_v10 = vpop.f32.mrf.mxu0 }
  0xa4   : > { %v378_v11 = vpop.f32.mrf.mxu1 }
  0xa8   : > { %v508_v15 = vpop.f32.mrf.mxu3 }
  0xa9   : > { %v375_v12 = vpop.f32.mrf.mxu0  ;;  %v470_v13 = vpop.f32.mrf.mxu2 }
  0xac   : > { %v380_v17 = vpop.f32.mrf.mxu1 }
  0xb0   : > { %v510_v53 = vpop.f32.mrf.mxu3 }
  0xb1   : > { %v559_v18 = vpop.f32.mrf.mxu0  ;;  %v472_v19 = vpop.f32.mrf.mxu2 }
  0xb4   : > { %v411_v20 = vpop.f32.mrf.mxu1 }
  0xb5   : > { %v412_v32 = vadd.f32 %v411_v20, %v373_v10 }
  0xb7   : > { %v480_v35 = vadd.f32 %v470_v13, %v412_v32 }
  0xb8   : > { %v513_v27 = vpop.f32.mrf.mxu3 }
  0xb9   : > { %v561_v21 = vpop.f32.mrf.mxu0  ;;  %v475_v23 = vpop.f32.mrf.mxu2  ;;  %v518_v37 = vadd.f32 %v508_v15, %v480_v35 }
  0xbb   : > { %v569_v40 = vadd.f32 %v559_v18, %v518_v37 }
  0xbc   : > { %v413_v22 = vpop.f32.mrf.mxu1 }
  0xbd   : > { %v414_v34 = vadd.f32 %v413_v22, %v375_v12 }
  0xbf   : > { %v481_v42 = vadd.f32 %v472_v19, %v414_v34 }
  0xc0   : > { %v515_v33 = vpop.f32.mrf.mxu3 }
  0xc1   : > { %v564_v28 = vpop.f32.mrf.mxu0  ;;  %v477_v30 = vpop.f32.mrf.mxu2  ;;  %v519_v46 = vadd.f32 %v510_v53, %v481_v42 }
  0xc3   : > { %v570_v49 = vadd.f32 %v561_v21, %v519_v46 }
  0xc4   : > { %v416_v29 = vpop.f32.mrf.mxu1 }
  0xc5   : > { %v417_v31 = vadd.f32 %v416_v29, %v378_v11 }
  0xc7   : > { %v482_v50 = vadd.f32 %v475_v23, %v417_v31 }
  0xc8   : > { %v682_v39 = vpop.f32.mrf.mxu3 }
  0xc9   : > { %v566_v25 = vpop.f32.mrf.mxu0  ;;  %v635_v38 = vpop.f32.mrf.mxu2  ;;  %v520_v56 = vadd.f32 %v513_v27, %v482_v50 }
  0xcb   : > { %v571_v60 = vadd.f32 %v564_v28, %v520_v56 }
  0xcc   : > { %v418_v36 = vpop.f32.mrf.mxu1 }
  0xcd   : > { %v419_v57 = vadd.f32 %v418_v36, %v380_v17 }
  0xcf   : > { %v483_v61 = vadd.f32 %v477_v30, %v419_v57 }
  0xd0   : > { %v684_v52 = vpop.f32.mrf.mxu3 }
  0xd1   : > { %v720_v44 = vpop.f32.mrf.mxu0  ;;  %v637_v48 = vpop.f32.mrf.mxu2  ;;  %v521_v3 = vadd.f32 %v515_v33, %v483_v61 }
  0xd3   : > { %v572_v6 = vadd.f32 %v566_v25, %v521_v3 }
  0xd4   : > { %v601_v43 = vpop.f32.mrf.mxu1 }
  0xd5   : > { %v611_v45 = vadd.f32 %v601_v43, %v569_v40 }
  0xd7   : > { %v645_v47 = vadd.f32 %v635_v38, %v611_v45 }
  0xd8   : > { %v687_v2 = vpop.f32.mrf.mxu3 }
  0xd9   : > { %v692_v14 = vadd.f32 %v682_v39, %v645_v47  ;;  %v722_v55 = vpop.f32.mrf.mxu0  ;;  %v640_v63 = vpop.f32.mrf.mxu2 }
  0xdb   : > { %v730_v51 = vadd.f32 %v720_v44, %v692_v14 }
  0xdc   : > { %v603_v16 = vpop.f32.mrf.mxu1 }
  0xdd   : > { %v734_v26 = vpack.c.bf16 %v730_v51, %v730_v51  ;;  %v612_v54 = vadd.f32 %v603_v16, %v570_v49 }
  0xdf   : > { %739 = vst.msk [vmem:[%s1216_s10] sm:$0xf] %vm738_vm8, %v734_v26  ;;  %v646_v58 = vadd.f32 %v637_v48, %v612_v54 }
  0xe0   : > { %v689_v13 = vpop.f32.mrf.mxu3 }
  0xe1   : > { %v693_v59 = vadd.f32 %v684_v52, %v646_v58  ;;  %v725_v41 = vpop.f32.mrf.mxu0  ;;  %v642_v11 = vpop.f32.mrf.mxu2 }
  0xe3   : > { %v731_v62 = vadd.f32 %v722_v55, %v693_v59 }
  0xe4   : > { %v606_v0 = vpop.f32.mrf.mxu1 }
  0xe5   : > { %v735_v24 = vpack.c.bf16 %v731_v62, %v731_v62  ;;  %v613_v1 = vadd.f32 %v606_v0, %v571_v60 }
  0xe7   : > { %740 = vst.msk [vmem:[%s1216_s10 + $0x4] sm:$0xf] %vm738_vm8, %v735_v24  ;;  %v647_v5 = vadd.f32 %v640_v63, %v613_v1 }
  0xe9   : > { %v694_v4 = vadd.f32 %v687_v2, %v647_v5  ;;  %v727_v17 = vpop.f32.mrf.mxu0 }
  0xeb   : > { %v732_v7 = vadd.f32 %v725_v41, %v694_v4 }
  0xec   : > { %v608_v8 = vpop.f32.mrf.mxu1 }
  0xed   : > { %v736_v9 = vpack.c.bf16 %v732_v7, %v732_v7  ;;  %v614_v10 = vadd.f32 %v608_v8, %v572_v6 }
  0xef   : > { %741 = vst.msk [vmem:[%s1216_s10 + $0x8] sm:$0xf] %vm738_vm8, %v736_v9  ;;  %v648_v12 = vadd.f32 %v642_v11, %v614_v10 }
  0xf1   : > { %v695_v15 = vadd.f32 %v689_v13, %v648_v12 }
  0xf3   : > { %v733_v18 = vadd.f32 %v727_v17, %v695_v15 }
  0xf5   : > { %v737_v19 = vpack.c.bf16 %v733_v18, %v733_v18 }
  0xf7   : > { %742 = vst.msk [vmem:[%s1216_s10 + $0xc] sm:$0xf] %vm738_vm8, %v737_v19 }
  0xf8 PF: > { %s13_s16 = sadd.s32 1, %s985_s16   ;;  %s1249_s12 = smov %s977_s14 }
  0xf9   : > { %p10_p9 = scmp.ge.s32.totalorder %s13_s16, 6   ;;  %s1250_s13 = smov %s981_s15 }
  0xfa   : > { %s1251_s14 = smov %s1254_s17  ;;  %s1252_s15 = smov %s1258_s18 }
  0xfb   :  { %12 = sbr.rel (!%p10_p9) target bundleno = 3 (0x3), region = 73 }

// kernel: double_oct_conv_forward.6
= control target key start
LH: loop header
LB: loop body
LE: loop exit
PB: predicated region body
PF: predicated region fallthrough
CT: control target
= control target key end

     0   :  { %s1052_s15 = smov 0   ;;  %s1054_s16 = smov 0   ;;  %s1289_s0 = inlined_call_operand.vmem [shape: bf16[2,10,10,4], index: 0, kind: input, shape index: {}]   ;;  %s1290_s1 = inlined_call_operand.vmem [shape: bf16[2,2,2,10,4], index: 1, kind: input, shape index: {}]   ;;  %s1291_s2 = inlined_call_operand.vmem [shape: bf16[9,4,4], index: 2, kind: input, shape index: {}]   ;;  %s1292_s3 = inlined_call_operand.vmem [shape: f32[1,4], index: 3, kind: input, shape index: {}]   ;;  %s1293_s4 = inlined_call_operand.vmem [shape: bf16[2,8,8,4], index: 4, kind: output, shape index: {}]  }
   0x1   :  { %s1056_s17 = smov 0   ;;  %s1058_s18 = smov 0  }
   0x2   :  { %s1060_s19 = smov 0  }
   0x3 LB: > { %s23_s20 = sadd.s32 1, %s1017_s17  ;;  %s26_s21 = sadd.s32 1, %s1021_s18  ;;  %s1025_s19 = sphi %s1060_s19, %s14_s19   ;;  %s1021_s18 = sphi %s1058_s18, %s1301_s18   ;;  %s1017_s17 = sphi %s1056_s17, %s1300_s17   ;;  %s1013_s16 = sphi %s1054_s16, %s1299_s16   ;;  %s1009_s15 = sphi %s1052_s15, %s1298_s15  }
   0x4   : > { %p24_p0 = scmp.ge.s32.totalorder %s23_s20, 2  ;;  %p900_p1 = scmp.ge.s32.totalorder %s1025_s19, 1 }
   0x5   : > { %p210_p2 = scmp.lt.s32.totalorder %s1025_s19, 5 }
   0x6   : > { %s1303_s20 = smov (%p24_p0, %s23_s20), 0  ;;  %s1305_s21 = smov (!%p24_p0, %s26_s21), %s1021_s18 }
   0x7   : > { %p211_p3 = pnand %p900_p1, %p210_p2  ;;  %p28_p4 = scmp.ge.s32.totalorder %s1305_s21, 2 }
   0x8   : > { %s1088_s24 = sshll.u32 (!%p211_p3), %s1009_s15, 2  ;;  %p265_p5 = scmp.lt.s32.totalorder (!%p211_p3), %s1013_s16, 1 }
   0x9   : > { %s1307_s21 = smov (%p28_p4, %s1305_s21), 0  ;;  %214 = sbr.rel (%p211_p3) target bundleno = 252 (0xfc), region = 36 }
   0xa   : > { %p267_p6 = scmp.lt.s32.totalorder (!%p211_p3), %s1088_s24, 9  ;;  %p282_p7 = scmp.lt.s32.totalorder (!%p211_p3), %s1009_s15, 1 }
   0xb   : > { %p292_p8 = scmp.lt.s32.totalorder (!%p211_p3), %s1088_s24, 7 }
   0xe   : > { %v910_v0 = vld [vmem:[%s1291_s2 + $0x2] sm:$0x3]  ;;  %vm387_vm0 = vcmask 1041408   ;;  %s1309_s16 = smov (!%p265_p5, %s1013_s16), 1  ;;  %v312_v2 = vld [vmem:[%s1291_s2] sm:$0x3] }
   0xf   : > { %v389_v1 = vsel %vm387_vm0, %v910_v0, 0  ;;  %v919_v3 = vld [vmem:[%s1291_s2 + $0x4] sm:$0x3]  ;;  %s268_s29 = scalar_select %p267_p6, %s1088_s24, 9  ;;  %v427_v4 = vsel %vm387_vm0, %v312_v2, 0  ;;  %vm452_vm3 = vcmask 1042432  }
  0x10   : > { %398 = vmatpush.bf16.msra.mxu0 %v389_v1  ;;  %944 = vmatpush.bf16.msra.mxu1 %v389_v1  ;;  %v486_v5 = vsel %vm387_vm0, %v919_v3, 0  ;;  %v922_v6 = vld [vmem:[%s1291_s2 + $0x6] sm:$0x3]  ;;  %s945_s6 = smul.u32 20, %s1309_s16  ;;  %v925_v8 = vld [vmem:[%s1291_s2 + $0x8] sm:$0x3] }
  0x11   : > { %495 = vmatpush.bf16.msra.mxu2 %v486_v5  ;;  %v524_v7 = vsel %vm387_vm0, %v922_v6, 0  ;;  %v932_v9 = vld [vmem:[%s1291_s2 + $0xc] sm:$0x3]  ;;  %s902_s11 = sshll.u32 %s268_s29, 1  ;;  %v575_v10 = vsel %vm387_vm0, %v925_v8, 0  ;;  %vm453_vm4 = vcmask 1046532  }
  0x12   : > { %533 = vmatpush.bf16.msra.mxu3 %v524_v7  ;;  %v651_v11 = vsel %vm387_vm0, %v932_v9, 0  ;;  %v935_v12 = vld [vmem:[%s1291_s2 + $0xe] sm:$0x3]  ;;  %s271_s14 = sadd.s32 %s945_s6, %s902_s11  ;;  %vm313_vm1 = vsmask.f32 3328  ;;  %s905_s27 = sshll.u32 %s1309_s16, 3  ;;  %vm1159_vm6 = vmor %vm452_vm3, %vm453_vm4 }
  0x13   : > { %v698_v13 = vsel %vm387_vm0, %v935_v12, 0  ;;  %s903_s22 = sshll.u32 %s271_s14, 2  ;;  %vm314_vm2 = vsmask.f32 7440  ;;  %s1311_s15 = smov (!%p282_p7, %s1009_s15), 1  ;;  %vm380_vm7 = vcmask 31744  }
  0x14   : > { %436 = vmatpush.bf16.msrb.mxu1 %v427_v4  ;;  %584 = vmatpush.bf16.msrb.mxu0 %v575_v10  ;;  %s273_s26 = scalar_lea.vmem %s1289_s0, %s903_s22  ;;  %vm1152_vm5 = vmor %vm313_vm1, %vm314_vm2  ;;  %s904_s28 = sshll.u32 %s1311_s15, 2  ;;  %v929_v10 = vld [vmem:[%s1291_s2 + $0xa] sm:$0x3]  ;;  %vm777_vm8 = vcmask 27648  }
  0x15   : > { %660 = vmatpush.bf16.msrb.mxu2 %v651_v11  ;;  %v1125_v14 = vld [vmem:[%s273_s26] sm:$0xf]  ;;  %v301_v15 = vld [vmem:[%s273_s26 + $0x4] sm:$0x1]  ;;  %v1127_v16 = vld [vmem:[%s273_s26 + $0x8] sm:$0xf]  ;;  %s286_s29 = sadd.s32 %s905_s27, %s904_s28 }
  0x16   : > { %707 = vmatpush.bf16.msrb.mxu3 %v698_v13  ;;  %v303_v17 = vld [vmem:[%s273_s26 + $0xc] sm:$0x1]  ;;  %v317_v18 = vshrl.u32 %v1125_v14, 16  ;;  %v320_v19 = vshll.u32 %v1125_v14, 16  ;;  %v326_v20 = vshll.u32 %v301_v15, 16  ;;  %v331_v21 = vshrl.u32 %v1127_v16, 16 }
  0x17   : > { %v334_v22 = vshll.u32 %v1127_v16, 16  ;;  %v340_v23 = vshll.u32 %v303_v17, 16  ;;  %v1133_v24 = vld [vmem:[%s273_s26 + $0x10] sm:$0xf]  ;;  %v1135_v25 = vld [vmem:[%s273_s26 + $0x14] sm:$0x1]  ;;  %v415_v26 = vunpack.c.l.b16 %v1127_v16 }
  0x18   : > { %v319_v27 = vrot.slane %v317_v18, 4  ;;  %v322_v28 = vrot.slane %v320_v19, 5  ;;  %v328_v29 = vrot.slane %v326_v20, 5  ;;  %v333_v30 = vrot.slane %v331_v21, 4  ;;  %v1138_v31 = vld [vmem:[%s273_s26 + $0x18] sm:$0xf] }
  0x19   : > { %v336_v32 = vrot.slane %v334_v22, 5  ;;  %v342_v33 = vrot.slane %v340_v23, 5  ;;  %v1140_v34 = vld [vmem:[%s273_s26 + $0x1c] sm:$0x1]  ;;  %v345_v35 = vshrl.u32 %v1133_v24, 16  ;;  %v348_v36 = vshll.u32 %v1133_v24, 16 }
  0x1a   : > { %v323_v37 = vor.u32 %v322_v28, %v319_v27  ;;  %v354_v38 = vshll.u32 %v1135_v25, 16  ;;  %v359_v39 = vshrl.u32 %v1138_v31, 16  ;;  %v362_v40 = vshll.u32 %v1138_v31, 16  ;;  %s906_s15 = sshll.u32 %s286_s29, 2  ;;  %v939_v13 = vld [vmem:[%s1291_s2 + $0x10] sm:$0x3] }
  0x1b   : > { %v337_v42 = vor.u32 %v336_v32, %v333_v30  ;;  %v347_v43 = vrot.slane %v345_v35, 4  ;;  %v350_v44 = vrot.slane %v348_v36, 5  ;;  %v368_v45 = vshll.u32 %v1140_v34, 16  ;;  %s1193_s8 = scalar_lea.vmem %s1290_s1, %s906_s15  ;;  %s1313_s24 = smov (!%p292_p8, %s1088_s24), 7 }
  0x1c   : > { %v324_v46 = vrot.slane %v323_v37, 4  ;;  %v356_v47 = vrot.slane %v354_v38, 5  ;;  %v361_v48 = vrot.slane %v359_v39, 4  ;;  %v364_v49 = vrot.slane %v362_v40, 5  ;;  %v1205_v19 = vld [vmem:[%s1193_s8] sm:$0xf]  ;;  %s295_s13 = sadd.s32 %s905_s27, %s1313_s24 }
  0x1d   : > { %v338_v50 = vrot.slane %v337_v42, 4  ;;  %v351_v51 = vor.u32 %v350_v44, %v347_v43  ;;  %v370_v52 = vrot.slane %v368_v45, 5  ;;  %v915_v54 = vrot.slane %v1125_v14, 9  ;;  %v309_v38 = vld [vmem:[%s1193_s8 + $0x4] sm:$0x1]  ;;  %s909_s14 = sshll.u32 %s295_s13, 2 }
  0x1e   : > { %v329_v55 = vsel %vm1152_vm5, %v324_v46, %v328_v29  ;;  %v365_v56 = vor.u32 %v364_v49, %v361_v48  ;;  %v457_v57 = vrot.slane %v301_v15, 5  ;;  %v916_v58 = vrot.slane %v1127_v16, 9  ;;  %s1264_s25 = scalar_lea.vmem %s1293_s4, %s909_s14 }
  0x1f   : > { %v343_v59 = vsel %vm1152_vm5, %v338_v50, %v342_v33  ;;  %v374_v60 = vunpack.c.l.b16 %v329_v55  ;;  %v352_v61 = vrot.slane %v351_v51, 4  ;;  %v461_v62 = vrot.slane %v303_v17, 5 }
  0x20   : > { %v375_v63 = vunpack.c.l.b16 %v343_v59  ;;  %v366_v0 = vrot.slane %v365_v56, 4  ;;  %v458_v1 = vsel %vm1159_vm6, %v915_v54, %v457_v57  ;;  %v416_v2 = vunpack.c.l.b16 %v1133_v24 }
  0x21   : > { %v357_v3 = vsel %vm1152_vm5, %v352_v61, %v356_v47  ;;  %v1178_v4 = vsel %vm1159_vm6, %v916_v58, %v461_v62  ;;  %v473_v5 = vunpack.c.l.b16 %v458_v1  ;;  %v617_v18 = vsel %vm387_vm0, %v929_v10, 0 }
  0x22   : > { %v378_v6 = vpack.c.b16 %v375_v63, %v374_v60  ;;  %v371_v7 = vsel %vm1152_vm5, %v366_v0, %v370_v52  ;;  %v376_v8 = vunpack.c.l.b16 %v357_v3  ;;  %v474_v9 = vunpack.c.l.b16 %v1178_v4 }
  0x23   : > { %v377_v11 = vunpack.c.l.b16 %v371_v7  ;;  %v515_v12 = vpack.c.b16 %v416_v2, %v415_v26  ;;  %v736_v20 = vsel %vm387_vm0, %v939_v13, 0  ;;  %v917_v21 = vrot.slane %v1133_v24, 9 }
  0x24   : > { %911 = vmatmul.msk.bf16.vlgmr.msra.gmra.mxu0 %vm380_vm7, %v378_v6  ;;  %v477_v15 = vpack.c.b16 %v474_v9, %v473_v5  ;;  %v465_v22 = vrot.slane %v1135_v25, 5  ;;  %v918_v23 = vrot.slane %v1138_v31, 9  ;;  %v469_v27 = vrot.slane %v1140_v34, 5 }
  0x25   : > { %v379_v17 = vpack.c.b16 %v377_v11, %v376_v8  ;;  %923 = vmatmul.msk.bf16.vlgmr.msra.gmra.mxu3 %vm380_vm7, %v515_v12  ;;  %745 = vmatpush.bf16.msra.mxu0 %v736_v20  ;;  %v550_v28 = vshrl.u32 %v1205_v19, 16  ;;  %v553_v29 = vshll.u32 %v1205_v19, 16  ;;  %v417_v33 = vunpack.c.l.b16 %v1138_v31 }
  0x26   : > { %920 = vmatmul.msk.bf16.vlgmr.msra.gmra.mxu2 %vm380_vm7, %v477_v15  ;;  %v466_v30 = vsel %vm1159_vm6, %v917_v21, %v465_v22  ;;  %v470_v32 = vsel %vm1159_vm6, %v918_v23, %v469_v27  ;;  %v514_v25 = vunpack.c.l.b16 %v1205_v19  ;;  %v414_v39 = vunpack.c.l.b16 %v1125_v14  ;;  %v310_v14 = vld [vmem:[%s1193_s8 + $0x8] sm:$0xf] }
  0x27   : > { %912 = vmatmul.msk.bf16.vlgmr.msra.gmra.mxu1 %vm380_vm7, %v379_v17  ;;  %v552_v35 = vrot.slane %v550_v28, 4  ;;  %v555_v36 = vrot.slane %v553_v29, 5  ;;  %v475_v37 = vunpack.c.l.b16 %v466_v30  ;;  %v476_v34 = vunpack.c.l.b16 %v470_v32 }
  0x28   : > { %626 = vmatpush.bf16.msra.mxu1 %v617_v18  ;;  %v566_v40 = vpack.c.b16 %v376_v8, %v375_v63  ;;  %v516_v42 = vpack.c.b16 %v514_v25, %v417_v33  ;;  %v559_v44 = vshll.u32 %v309_v38, 16  ;;  %v418_v46 = vpack.c.b16 %v415_v26, %v414_v39  ;;  %v311_v26 = vld [vmem:[%s1193_s8 + $0xc] sm:$0x1] }
  0x29   : > { %v556_v43 = vor.u32 %v555_v36, %v552_v35  ;;  %v478_v45 = vpack.c.b16 %v476_v34, %v475_v37  ;;  %v677_v49 = vshrl.u32 %v310_v14, 16  ;;  %v680_v50 = vshll.u32 %v310_v14, 16 }
  0x2a   : > { %v561_v47 = vrot.slane %v559_v44, 5  ;;  %v686_v56 = vshll.u32 %v311_v26, 16  ;;  %v419_v57 = vpack.c.b16 %v417_v33, %v416_v2  ;;  %v645_v62 = vunpack.c.l.b16 %v310_v14 }
  0x2b   : > { %v557_v31 = vrot.slane %v556_v43, 4  ;;  %v679_v52 = vrot.slane %v677_v49, 4  ;;  %v682_v16 = vrot.slane %v680_v50, 5  ;;  %v608_v24 = vpack.c.b16 %v475_v37, %v474_v9 }
  0x2c   : > { %v688_v59 = vrot.slane %v686_v56, 5  ;;  %v646_v0 = vpack.c.b16 %v645_v62, %v514_v25  ;;  %v928_v1 = vrot.slane %v1205_v19, 9  ;;  %v603_v2 = vrot.slane %v309_v38, 5 }
  0x2d   : > { %v562_v48 = vsel %vm1152_vm5, %v557_v31, %v561_v47  ;;  %v683_v55 = vor.u32 %v682_v16, %v679_v52  ;;  %v938_v3 = vrot.slane %v310_v14, 9  ;;  %v726_v5 = vrot.slane %v311_v26, 5 }
  0x2e   : > { %v565_v51 = vunpack.c.l.b16 %v562_v48  ;;  %v604_v41 = vsel %vm1159_vm6, %v928_v1, %v603_v2  ;;  %v986_v48 = vld [vmem:[%s1292_s3] ss:$0 sm:$0xff] }
  0x2f   : > { %v684_v58 = vrot.slane %v683_v55, 4  ;;  %v727_v4 = vsel %vm1159_vm6, %v938_v3, %v726_v5  ;;  %v607_v6 = vunpack.c.l.b16 %v604_v41 }
  0x30   : > { %v567_v54 = vpack.c.b16 %v565_v51, %v377_v11  ;;  %v730_v7 = vunpack.c.l.b16 %v727_v4 }
  0x31   : > { %v689_v60 = vsel %vm1152_vm5, %v684_v58, %v688_v59  ;;  %v609_v9 = vpack.c.b16 %v607_v6, %v476_v34 }
  0x32   : > { %v692_v61 = vunpack.c.l.b16 %v689_v60  ;;  %v731_v8 = vpack.c.b16 %v730_v7, %v607_v6 }
  0x34   : > { %926 = vmatmul.msk.bf16.vlgmr.msrb.gmra.mxu0 %vm380_vm7, %v566_v40  ;;  %v693_v63 = vpack.c.b16 %v692_v61, %v565_v51 }
  0x35   : > { %924 = vmatmul.msk.bf16.gmra.mxu3 %vm380_vm7, %v516_v42 }
  0x36   : > { %921 = vmatmul.msk.bf16.gmra.mxu2 %vm380_vm7, %v478_v45 }
  0x37   : > { %913 = vmatmul.msk.bf16.vlgmr.msrb.gmra.mxu1 %vm380_vm7, %v418_v46 }
  0x44   : > { %927 = vmatmul.msk.bf16.gmra.mxu0 %vm380_vm7, %v567_v54 }
  0x45   : > { %936 = vmatmul.msk.bf16.vlgmr.msrb.gmra.mxu3 %vm380_vm7, %v379_v17 }
  0x46   : > { %933 = vmatmul.msk.bf16.vlgmr.msrb.gmra.mxu2 %vm380_vm7, %v419_v57 }
  0x47   : > { %914 = vmatmul.msk.bf16.gmra.mxu1 %vm380_vm7, %v419_v57 }
  0x54   : > { %940 = vmatmul.msk.bf16.vlgmr.msra.gmra.mxu0 %vm380_vm7, %v478_v45 }
  0x55   : > { %937 = vmatmul.msk.bf16.gmra.mxu3 %vm380_vm7, %v693_v63 }
  0x56   : > { %934 = vmatmul.msk.bf16.gmra.mxu2 %vm380_vm7, %v646_v0 }
  0x57   : > { %930 = vmatmul.msk.bf16.vlgmr.msra.gmra.mxu1 %vm380_vm7, %v608_v24 }
  0x64   : > { %941 = vmatmul.msk.bf16.gmra.mxu0 %vm380_vm7, %v731_v8 }
  0x67   : > { %931 = vmatmul.msk.bf16.gmra.mxu1 %vm380_vm7, %v609_v9 }
  0xa1   : > { %v400_v10 = vpop.f32.mrf.mxu0 }
  0xa4   : > { %v405_v11 = vpop.f32.mrf.mxu1 }
  0xa8   : > { %v535_v15 = vpop.f32.mrf.mxu3 }
  0xa9   : > { %v402_v12 = vpop.f32.mrf.mxu0  ;;  %v497_v13 = vpop.f32.mrf.mxu2 }
  0xac   : > { %v407_v17 = vpop.f32.mrf.mxu1 }
  0xb0   : > { %v537_v21 = vpop.f32.mrf.mxu3 }
  0xb1   : > { %v586_v18 = vpop.f32.mrf.mxu0  ;;  %v499_v19 = vpop.f32.mrf.mxu2 }
  0xb4   : > { %v438_v20 = vpop.f32.mrf.mxu1 }
  0xb5   : > { %v439_v32 = vadd.f32 %v438_v20, %v400_v10 }
  0xb7   : > { %v507_v35 = vadd.f32 %v497_v13, %v439_v32 }
  0xb8   : > { %v540_v27 = vpop.f32.mrf.mxu3 }
  0xb9   : > { %v588_v53 = vpop.f32.mrf.mxu0  ;;  %v502_v23 = vpop.f32.mrf.mxu2  ;;  %v545_v37 = vadd.f32 %v535_v15, %v507_v35 }
  0xbb   : > { %v596_v40 = vadd.f32 %v586_v18, %v545_v37 }
  0xbc   : > { %v440_v22 = vpop.f32.mrf.mxu1 }
  0xbd   : > { %v441_v34 = vadd.f32 %v440_v22, %v402_v12 }
  0xbf   : > { %v508_v42 = vadd.f32 %v499_v19, %v441_v34 }
  0xc0   : > { %v542_v33 = vpop.f32.mrf.mxu3 }
  0xc1   : > { %v591_v28 = vpop.f32.mrf.mxu0  ;;  %v504_v30 = vpop.f32.mrf.mxu2  ;;  %v546_v46 = vadd.f32 %v537_v21, %v508_v42 }
  0xc3   : > { %v597_v50 = vadd.f32 %v588_v53, %v546_v46 }
  0xc4   : > { %v443_v29 = vpop.f32.mrf.mxu1 }
  0xc5   : > { %v444_v31 = vadd.f32 %v443_v29, %v405_v11 }
  0xc7   : > { %v509_v51 = vadd.f32 %v502_v23, %v444_v31 }
  0xc8   : > { %v709_v39 = vpop.f32.mrf.mxu3 }
  0xc9   : > { %v593_v25 = vpop.f32.mrf.mxu0  ;;  %v662_v38 = vpop.f32.mrf.mxu2  ;;  %v547_v57 = vadd.f32 %v540_v27, %v509_v51 }
  0xcb   : > { %v598_v63 = vadd.f32 %v591_v28, %v547_v57 }
  0xcc   : > { %v445_v36 = vpop.f32.mrf.mxu1 }
  0xcd   : > { %v446_v58 = vadd.f32 %v445_v36, %v407_v17 }
  0xcf   : > { %v510_v0 = vadd.f32 %v504_v30, %v446_v58 }
  0xd0   : > { %v711_v16 = vpop.f32.mrf.mxu3 }
  0xd1   : > { %v747_v44 = vpop.f32.mrf.mxu0  ;;  %v664_v49 = vpop.f32.mrf.mxu2  ;;  %v548_v4 = vadd.f32 %v542_v33, %v510_v0 }
  0xd3   : > { %v599_v11 = vadd.f32 %v593_v25, %v548_v4 }
  0xd4   : > { %v628_v43 = vpop.f32.mrf.mxu1 }
  0xd5   : > { %v638_v45 = vadd.f32 %v628_v43, %v596_v40 }
  0xd7   : > { %v672_v47 = vadd.f32 %v662_v38, %v638_v45 }
  0xd8   : > { %v714_v41 = vpop.f32.mrf.mxu3 }
  0xd9   : > { %v719_v14 = vadd.f32 %v709_v39, %v672_v47  ;;  %v749_v56 = vpop.f32.mrf.mxu0  ;;  %v667_v1 = vpop.f32.mrf.mxu2 }
  0xdb   : > { %v757_v52 = vadd.f32 %v747_v44, %v719_v14 }
  0xdc   : > { %v630_v26 = vpop.f32.mrf.mxu1 }
  0xdd   : > { %v765_v54 = vadd.f32 %v986_v48, %v757_v52  ;;  %v639_v55 = vadd.f32 %v630_v26, %v597_v50 }
  0xdf   : > { %v769_v59 = vmax.f32 %v765_v54, 0.0  ;;  %v673_v60 = vadd.f32 %v664_v49, %v639_v55 }
  0xe0   : > { %v716_v21 = vpop.f32.mrf.mxu3 }
  0xe1   : > { %v773_v61 = vpack.c.bf16 %v769_v59, %v769_v59  ;;  %v720_v62 = vadd.f32 %v711_v16, %v673_v60  ;;  %v752_v8 = vpop.f32.mrf.mxu0  ;;  %v669_v18 = vpop.f32.mrf.mxu2 }
  0xe3   : > { %778 = vst.msk [vmem:[%s1264_s25] sm:$0xf] %vm777_vm8, %v773_v61  ;;  %v758_v24 = vadd.f32 %v749_v56, %v720_v62 }
  0xe4   : > { %v633_v2 = vpop.f32.mrf.mxu1 }
  0xe5   : > { %v766_v3 = vadd.f32 %v986_v48, %v758_v24  ;;  %v640_v5 = vadd.f32 %v633_v2, %v598_v63 }
  0xe7   : > { %v770_v6 = vmax.f32 %v766_v3, 0.0  ;;  %v674_v7 = vadd.f32 %v667_v1, %v640_v5 }
  0xe9   : > { %v774_v9 = vpack.c.bf16 %v770_v6, %v770_v6  ;;  %v721_v10 = vadd.f32 %v714_v41, %v674_v7  ;;  %v754_v23 = vpop.f32.mrf.mxu0 }
  0xeb   : > { %779 = vst.msk [vmem:[%s1264_s25 + $0x4] sm:$0xf] %vm777_vm8, %v774_v9  ;;  %v759_v12 = vadd.f32 %v752_v8, %v721_v10 }
  0xec   : > { %v635_v13 = vpop.f32.mrf.mxu1 }
  0xed   : > { %v767_v15 = vadd.f32 %v986_v48, %v759_v12  ;;  %v641_v17 = vadd.f32 %v635_v13, %v599_v11 }
  0xef   : > { %v771_v19 = vmax.f32 %v767_v15, 0.0  ;;  %v675_v20 = vadd.f32 %v669_v18, %v641_v17 }
  0xf1   : > { %v775_v53 = vpack.c.bf16 %v771_v19, %v771_v19  ;;  %v722_v22 = vadd.f32 %v716_v21, %v675_v20 }
  0xf3   : > { %780 = vst.msk [vmem:[%s1264_s25 + $0x8] sm:$0xf] %vm777_vm8, %v775_v53  ;;  %v760_v27 = vadd.f32 %v754_v23, %v722_v22 }
  0xf5   : > { %v768_v28 = vadd.f32 %v986_v48, %v760_v27 }
  0xf7   : > { %v772_v29 = vmax.f32 %v768_v28, 0.0 }
  0xf9   : > { %v776_v30 = vpack.c.bf16 %v772_v29, %v772_v29 }
  0xfb   : > { %781 = vst.msk [vmem:[%s1264_s25 + $0xc] sm:$0xf] %vm777_vm8, %v776_v30 }
  0xfc PF: > { %s14_s19 = sadd.s32 1, %s1025_s19   ;;  %s1298_s15 = smov %s1017_s17 }
  0xfd   : > { %p11_p9 = scmp.ge.s32.totalorder %s14_s19, 6   ;;  %s1299_s16 = smov %s1021_s18 }
  0xfe   : > { %s1300_s17 = smov %s1303_s20  ;;  %s1301_s18 = smov %s1307_s21 }
  0xff   :  { %13 = sbr.rel (!%p11_p9) target bundleno = 3 (0x3), region = 77 }

// kernel: double_oct_conv_forward.5
= control target key start
LH: loop header
LB: loop body
LE: loop exit
PB: predicated region body
PF: predicated region fallthrough
CT: control target
= control target key end

     0   :  { %s1913_s15 = smov 0   ;;  %s1915_s16 = smov 0   ;;  %s2605_s0 = inlined_call_operand.vmem [shape: bf16[2,18,18,4], index: 0, kind: input, shape index: {}]   ;;  %s2606_s1 = inlined_call_operand.vmem [shape: bf16[2,2,2,18,4], index: 1, kind: input, shape index: {}]   ;;  %s2607_s2 = inlined_call_operand.vmem [shape: bf16[9,4,4], index: 2, kind: input, shape index: {}]   ;;  %s2608_s3 = inlined_call_operand.vmem [shape: f32[1,4], index: 3, kind: input, shape index: {}]   ;;  %s2609_s4 = inlined_call_operand.vmem [shape: bf16[2,16,16,4], index: 4, kind: output, shape index: {}]  }
   0x1   :  { %s1917_s17 = smov 0   ;;  %s1919_s18 = smov 0  }
   0x2   :  { %s1921_s19 = smov 0  }
   0x3 LB: > { %s23_s20 = sadd.s32 1, %s1878_s17  ;;  %s26_s21 = sadd.s32 1, %s1882_s18  ;;  %s1886_s19 = sphi %s1921_s19, %s14_s19   ;;  %s1882_s18 = sphi %s1919_s18, %s2617_s18   ;;  %s1878_s17 = sphi %s1917_s17, %s2616_s17   ;;  %s1874_s16 = sphi %s1915_s16, %s2615_s16   ;;  %s1870_s15 = sphi %s1913_s15, %s2614_s15  }
   0x4   : > { %p24_p0 = scmp.ge.s32.totalorder %s23_s20, 2  ;;  %p1650_p1 = scmp.ge.s32.totalorder %s1886_s19, 1 }
   0x5   : > { %p210_p2 = scmp.lt.s32.totalorder %s1886_s19, 5 }
   0x6   : > { %s2619_s20 = smov (%p24_p0, %s23_s20), 0  ;;  %s2621_s21 = smov (!%p24_p0, %s26_s21), %s1882_s18 }
   0x7   : > { %p211_p3 = pnand %p1650_p1, %p210_p2  ;;  %p28_p4 = scmp.ge.s32.totalorder %s2621_s21, 2 }
   0x8   : > { %s1949_s24 = sshll.u32 (!%p211_p3), %s1870_s15, 3  ;;  %p266_p5 = scmp.lt.s32.totalorder (!%p211_p3), %s1874_s16, 1 }
   0x9   : > { %s2623_s21 = smov (%p28_p4, %s2621_s21), 0  ;;  %214 = sbr.rel (%p211_p3) target bundleno = 471 (0x1d7), region = 36 }
   0xa   : > { %p268_p6 = scmp.lt.s32.totalorder (!%p211_p3), %s1949_s24, 17  ;;  %p283_p7 = scmp.lt.s32.totalorder (!%p211_p3), %s1870_s15, 1 }
   0xb   : > { %p293_p8 = scmp.lt.s32.totalorder (!%p211_p3), %s1949_s24, 15 }
   0xe   : > { %v1658_v0 = vld [vmem:[%s2607_s2 + $0x2] sm:$0x3]  ;;  %vm579_vm0 = vcmask 1041408   ;;  %s2625_s16 = smov (!%p266_p5, %s1874_s16), 1  ;;  %v1715_v2 = vld [vmem:[%s2607_s2 + $0x4] sm:$0x3] }
   0xf   : > { %v581_v1 = vsel %vm579_vm0, %v1658_v0, 0  ;;  %s269_s27 = scalar_select %p268_p6, %s1949_s24, 17  ;;  %v866_v3 = vsel %vm579_vm0, %v1715_v2, 0  ;;  %v1724_v4 = vld [vmem:[%s2607_s2 + $0x6] sm:$0x3]  ;;  %vm554_vm3 = vcmask 31744  }
  0x10   : > { %1800 = vmatpush.bf16.msra.mxu1 %v581_v1  ;;  %1801 = vmatpush.bf16.msra.mxu2 %v581_v1  ;;  %s1804_s28 = smul.u32 54, %s2625_s16  ;;  %v332_v5 = vld [vmem:[%s2607_s2] sm:$0x3]  ;;  %v1737_v6 = vld [vmem:[%s2607_s2 + $0x8] sm:$0x3]  ;;  %v944_v7 = vsel %vm579_vm0, %v1724_v4, 0 }
  0x11   : > { %1802 = vmatpush.bf16.msra.mxu3 %v581_v1  ;;  %590 = vmatpush.bf16.msra.mxu0 %v581_v1  ;;  %s1803_s29 = smul.u32 3, %s269_s27  ;;  %v697_v8 = vsel %vm579_vm0, %v332_v5, 0  ;;  %v1044_v9 = vsel %vm579_vm0, %v1737_v6, 0  ;;  %vm333_vm1 = vsmask.f32 3328  ;;  %vm756_vm5 = vcmask 1042432  }
  0x12   : > { %vm334_vm2 = vsmask.f32 7440  ;;  %vm757_vm6 = vcmask 1046532   ;;  %s2627_s15 = smov (!%p283_p7, %s1870_s15), 1  ;;  %s1806_s6 = smul.u32 12, %s2625_s16  ;;  %vm1509_vm8 = vcmask 27648  }
  0x13   : > { %s272_s10 = sadd.s32 %s1804_s28, %s1803_s29  ;;  %vm2014_vm4 = vmor %vm333_vm1, %vm334_vm2  ;;  %s1805_s5 = smul.u32 6, %s2627_s15 }
  0x14   : > { %875 = vmatpush.bf16.msrb.mxu2 %v866_v3  ;;  %s1652_s11 = sshll.u32 %s272_s10, 2  ;;  %706 = vmatpush.bf16.msrb.mxu1 %v697_v8  ;;  %vm2168_vm7 = vmor %vm756_vm5, %vm757_vm6  ;;  %s2629_s24 = smov (!%p293_p8, %s1949_s24), 15 }
  0x15   : > { %953 = vmatpush.bf16.msrb.mxu3 %v944_v7  ;;  %s1976_s14 = scalar_lea.vmem %s2605_s0, %s1652_s11  ;;  %1053 = vmatpush.bf16.msrb.mxu0 %v1044_v9  ;;  %s287_s7 = sadd.s32 %s1806_s6, %s1805_s5 }
  0x16   : > { %v1979_v10 = vld [vmem:[%s1976_s14 + $0x18] sm:$0xf]  ;;  %v1982_v11 = vld [vmem:[%s1976_s14 + $0x1c] sm:$0xf]  ;;  %v1985_v12 = vld [vmem:[%s1976_s14 + $0x20] sm:$0x1] }
  0x17   : > { %v385_v13 = vshrl.u32 %v1979_v10, 16  ;;  %v388_v14 = vshll.u32 %v1979_v10, 16  ;;  %v394_v15 = vshll.u32 %v1982_v11, 16  ;;  %v398_v16 = vshrl.u32 %v1982_v11, 16  ;;  %v1992_v17 = vld [vmem:[%s1976_s14 + $0x30] sm:$0xf] }
  0x18   : > { %v404_v18 = vshll.u32 %v1985_v12, 16  ;;  %v1996_v19 = vld [vmem:[%s1976_s14 + $0x34] sm:$0xf]  ;;  %v1999_v20 = vld [vmem:[%s1976_s14 + $0x38] sm:$0x1]  ;;  %v433_v21 = vshrl.u32 %v1992_v17, 16 }
  0x19   : > { %v387_v22 = vrot.slane %v385_v13, 4  ;;  %v390_v23 = vrot.slane %v388_v14, 5  ;;  %v396_v24 = vrot.slane %v394_v15, 5  ;;  %v400_v25 = vrot.slane %v398_v16, 4  ;;  %v2003_v26 = vld [vmem:[%s1976_s14 + $0x48] sm:$0xf] }
  0x1a   : > { %v406_v27 = vrot.slane %v404_v18, 5  ;;  %v435_v28 = vrot.slane %v433_v21, 4  ;;  %v436_v29 = vshll.u32 %v1992_v17, 16  ;;  %v442_v30 = vshll.u32 %v1996_v19, 16  ;;  %v2010_v35 = vld [vmem:[%s1976_s14 + $0x4c] sm:$0xf] }
  0x1b   : > { %v391_v31 = vor.u32 %v390_v23, %v387_v22  ;;  %v401_v32 = vor.u32 %v400_v25, %v396_v24  ;;  %v446_v33 = vshrl.u32 %v1996_v19, 16  ;;  %v452_v34 = vshll.u32 %v1999_v20, 16  ;;  %v2021_v46 = vld [vmem:[%s1976_s14 + $0x50] sm:$0x1]  ;;  %v2030_v54 = vld [vmem:[%s1976_s14] sm:$0xf] }
  0x1c   : > { %v438_v37 = vrot.slane %v436_v29, 5  ;;  %v444_v38 = vrot.slane %v442_v30, 5  ;;  %v481_v39 = vshrl.u32 %v2003_v26, 16  ;;  %v484_v40 = vshll.u32 %v2003_v26, 16  ;;  %v2038_v2 = vld [vmem:[%s1976_s14 + $0x4] sm:$0xf] }
  0x1d   : > { %v392_v41 = vrot.slane %v391_v31, 4  ;;  %v402_v42 = vrot.slane %v401_v32, 4  ;;  %v448_v43 = vrot.slane %v446_v33, 4  ;;  %v454_v44 = vrot.slane %v452_v34, 5  ;;  %v2044_v8 = vld [vmem:[%s1976_s14 + $0x8] sm:$0x1] }
  0x1e   : > { %v439_v45 = vor.u32 %v438_v37, %v435_v28  ;;  %v483_v47 = vrot.slane %v481_v39, 4  ;;  %v486_v48 = vrot.slane %v484_v40, 5  ;;  %v490_v49 = vshll.u32 %v2010_v35, 16  ;;  %v2052_v16 = vld [vmem:[%s1976_s14 + $0x24] sm:$0xf]  ;;  %s1653_s8 = sshll.u32 %s287_s7, 2 }
  0x1f   : > { %v397_v50 = vsel %vm2014_vm4, %v392_v41, %v396_v24  ;;  %v407_v51 = vsel %vm2014_vm4, %v402_v42, %v406_v27  ;;  %v449_v52 = vor.u32 %v448_v43, %v444_v38  ;;  %v494_v53 = vshrl.u32 %v2010_v35, 16  ;;  %v2061_v29 = vld [vmem:[%s1976_s14 + $0x28] sm:$0xf]  ;;  %v2066_v33 = vld [vmem:[%s1976_s14 + $0x2c] sm:$0x1]  ;;  %s2302_s10 = scalar_lea.vmem %s2606_s1, %s1653_s8  ;;  %s1655_s11 = sshll.u32 %s2629_s24, 1 }
  0x20   : > { %v534_v55 = vunpack.c.l.b16 %v397_v50  ;;  %v535_v56 = vunpack.c.l.b16 %v407_v51  ;;  %v440_v57 = vrot.slane %v439_v45, 4  ;;  %v487_v58 = vor.u32 %v486_v48, %v483_v47  ;;  %v2073_v41 = vld [vmem:[%s1976_s14 + $0x3c] sm:$0xf]  ;;  %s1656_s12 = sshll.u32 %s2625_s16, 5 }
  0x21   : > { %v450_v59 = vrot.slane %v449_v52, 4  ;;  %v492_v60 = vrot.slane %v490_v49, 5  ;;  %v496_v61 = vrot.slane %v494_v53, 4  ;;  %v500_v62 = vshll.u32 %v2021_v46, 16  ;;  %s297_s22 = sadd.s32 %s1656_s12, %s1655_s11 }
  0x22   : > { %v2033_v63 = vpack.c.b16 %v535_v56, %v534_v55  ;;  %v445_v0 = vsel %vm2014_vm4, %v440_v57, %v444_v38  ;;  %v488_v1 = vrot.slane %v487_v58, 4  ;;  %v337_v3 = vshrl.u32 %v2030_v54, 16  ;;  %v2081_v55 = vld [vmem:[%s1976_s14 + $0x40] sm:$0xf]  ;;  %s1657_s23 = sshll.u32 %s297_s22, 2 }
  0x23   : > { %v455_v4 = vsel %vm2014_vm4, %v450_v59, %v454_v44  ;;  %v538_v5 = vunpack.c.l.b16 %v445_v0  ;;  %v497_v6 = vor.u32 %v496_v61, %v492_v60  ;;  %v502_v7 = vrot.slane %v500_v62, 5  ;;  %v2093_v62 = vld [vmem:[%s1976_s14 + $0x54] sm:$0xf]  ;;  %s2527_s25 = scalar_lea.vmem %s2609_s4, %s1657_s23 }
  0x24   : > { %1661 = vmatmul.msk.bf16.vlgmr.msra.gmra.mxu1 %vm554_vm3, %v2033_v63  ;;  %v539_v9 = vunpack.c.l.b16 %v455_v4  ;;  %v493_v13 = vsel %vm2014_vm4, %v488_v1, %v492_v60  ;;  %v339_v14 = vrot.slane %v337_v3, 4  ;;  %v340_v15 = vshll.u32 %v2030_v54, 16  ;;  %v2089_v60 = vld [vmem:[%s1976_s14 + $0x44] sm:$0x1] }
  0x25   : > { %v498_v18 = vrot.slane %v497_v6, 4  ;;  %v542_v21 = vunpack.c.l.b16 %v493_v13  ;;  %v346_v22 = vshll.u32 %v2038_v2, 16  ;;  %v350_v23 = vshrl.u32 %v2038_v2, 16 }
  0x26   : > { %v2056_v24 = vpack.c.b16 %v539_v9, %v538_v5  ;;  %v342_v25 = vrot.slane %v340_v15, 5  ;;  %v356_v27 = vshll.u32 %v2044_v8, 16  ;;  %v764_v28 = vrot.slane %v2044_v8, 5 }
  0x27   : > { %v503_v30 = vsel %vm2014_vm4, %v498_v18, %v502_v7  ;;  %v348_v31 = vrot.slane %v346_v22, 5  ;;  %v352_v32 = vrot.slane %v350_v23, 4  ;;  %v409_v34 = vshrl.u32 %v2052_v16, 16 }
  0x28   : > { %1663 = vmatmul.msk.bf16.vlgmr.msra.gmra.mxu2 %vm554_vm3, %v2056_v24  ;;  %v543_v37 = vunpack.c.l.b16 %v503_v30  ;;  %v343_v38 = vor.u32 %v342_v25, %v339_v14  ;;  %v358_v39 = vrot.slane %v356_v27, 5  ;;  %v412_v40 = vshll.u32 %v2052_v16, 16  ;;  %v2104_v27 = vld [vmem:[%s1976_s14 + $0x58] sm:$0xf]  ;;  %v2107_v30 = vld [vmem:[%s1976_s14 + $0x5c] sm:$0x1] }
  0x29   : > { %v353_v42 = vor.u32 %v352_v32, %v348_v31  ;;  %v411_v43 = vrot.slane %v409_v34, 4  ;;  %v418_v44 = vshll.u32 %v2061_v29, 16  ;;  %v422_v45 = vshrl.u32 %v2061_v29, 16 }
  0x2a   : > { %v2077_v47 = vpack.c.b16 %v543_v37, %v542_v21  ;;  %v344_v48 = vrot.slane %v343_v38, 4  ;;  %v414_v49 = vrot.slane %v412_v40, 5  ;;  %v428_v50 = vshll.u32 %v2066_v33, 16  ;;  %v2112_v38 = vld [vmem:[%s1976_s14 + $0xc] sm:$0xf] }
  0x2b   : > { %v354_v51 = vrot.slane %v353_v42, 4  ;;  %v420_v52 = vrot.slane %v418_v44, 5  ;;  %v424_v53 = vrot.slane %v422_v45, 4  ;;  %v457_v56 = vshrl.u32 %v2073_v41, 16 }
  0x2c   : > { %1665 = vmatmul.msk.bf16.vlgmr.msra.gmra.mxu3 %vm554_vm3, %v2077_v47  ;;  %v349_v57 = vsel %vm2014_vm4, %v344_v48, %v348_v31  ;;  %v415_v58 = vor.u32 %v414_v49, %v411_v43  ;;  %v430_v59 = vrot.slane %v428_v50, 5  ;;  %v460_v61 = vshll.u32 %v2073_v41, 16 }
  0x2d   : > { %v359_v0 = vsel %vm2014_vm4, %v354_v51, %v358_v39  ;;  %v530_v1 = vunpack.c.l.b16 %v349_v57  ;;  %v425_v3 = vor.u32 %v424_v53, %v420_v52  ;;  %v459_v4 = vrot.slane %v457_v56, 4  ;;  %v2124_v53 = vld [vmem:[%s1976_s14 + $0x10] sm:$0xf] }
  0x2e   : > { %v531_v5 = vunpack.c.l.b16 %v359_v0  ;;  %v416_v6 = vrot.slane %v415_v58, 4  ;;  %v462_v7 = vrot.slane %v460_v61, 5  ;;  %v466_v9 = vshll.u32 %v2081_v55, 16  ;;  %v2128_v0 = vld [vmem:[%s1976_s14 + $0x14] sm:$0x1] }
  0x2f   : > { %v426_v13 = vrot.slane %v425_v3, 4  ;;  %v470_v14 = vshrl.u32 %v2081_v55, 16  ;;  %v476_v15 = vshll.u32 %v2089_v60, 16  ;;  %v505_v18 = vshrl.u32 %v2093_v62, 16 }
  0x30   : > { %v546_v21 = vpack.c.b16 %v531_v5, %v530_v1  ;;  %v421_v22 = vsel %vm2014_vm4, %v416_v6, %v420_v52  ;;  %v463_v23 = vor.u32 %v462_v7, %v459_v4  ;;  %v468_v25 = vrot.slane %v466_v9, 5 }
  0x31   : > { %v431_v31 = vsel %vm2014_vm4, %v426_v13, %v430_v59  ;;  %v536_v32 = vunpack.c.l.b16 %v421_v22  ;;  %v472_v34 = vrot.slane %v470_v14, 4  ;;  %v478_v37 = vrot.slane %v476_v15, 5 }
  0x32   : > { %1659 = vmatmul.msk.bf16.vlgmr.msra.gmra.mxu0 %vm554_vm3, %v546_v21  ;;  %v537_v39 = vunpack.c.l.b16 %v431_v31  ;;  %v464_v40 = vrot.slane %v463_v23, 4  ;;  %v507_v42 = vrot.slane %v505_v18, 4  ;;  %v508_v43 = vshll.u32 %v2093_v62, 16  ;;  %v1756_v31 = vld [vmem:[%s2607_s2 + $0xc] sm:$0x3] }
  0x33   : > { %v473_v44 = vor.u32 %v472_v34, %v468_v25  ;;  %v514_v45 = vshll.u32 %v2104_v27, 16  ;;  %v518_v48 = vshrl.u32 %v2104_v27, 16  ;;  %v524_v49 = vshll.u32 %v2107_v30, 16 }
  0x34   : > { %v2119_v50 = vpack.c.b16 %v537_v39, %v536_v32  ;;  %v469_v51 = vsel %vm2014_vm4, %v464_v40, %v468_v25  ;;  %v510_v52 = vrot.slane %v508_v43, 5  ;;  %v361_v56 = vshrl.u32 %v2112_v38, 16  ;;  %v1769_v40 = vld [vmem:[%s2607_s2 + $0xe] sm:$0x3] }
  0x35   : > { %v474_v57 = vrot.slane %v473_v44, 4  ;;  %v540_v58 = vunpack.c.l.b16 %v469_v51  ;;  %v516_v59 = vrot.slane %v514_v45, 5  ;;  %v520_v61 = vrot.slane %v518_v48, 4 }
  0x36   : > { %1662 = vmatmul.msk.bf16.gmra.mxu1 %vm554_vm3, %v2119_v50  ;;  %v511_v1 = vor.u32 %v510_v52, %v507_v42  ;;  %v526_v3 = vrot.slane %v524_v49, 5  ;;  %v363_v4 = vrot.slane %v361_v56, 4  ;;  %v364_v5 = vshll.u32 %v2112_v38, 16  ;;  %v1747_v42 = vld [vmem:[%s2607_s2 + $0xa] sm:$0x3] }
  0x37   : > { %v479_v6 = vsel %vm2014_vm4, %v474_v57, %v478_v37  ;;  %v521_v7 = vor.u32 %v520_v61, %v516_v59  ;;  %v370_v9 = vshll.u32 %v2124_v53, 16  ;;  %v374_v13 = vshrl.u32 %v2124_v53, 16  ;;  %v1779_v56 = vld [vmem:[%s2607_s2 + $0x10] sm:$0x3] }
  0x38   : > { %v541_v14 = vunpack.c.l.b16 %v479_v6  ;;  %v512_v15 = vrot.slane %v511_v1, 4  ;;  %v366_v18 = vrot.slane %v364_v5, 5  ;;  %v380_v21 = vshll.u32 %v2128_v0, 16 }
  0x39   : > { %v522_v22 = vrot.slane %v521_v7, 4  ;;  %v372_v23 = vrot.slane %v370_v9, 5  ;;  %v376_v25 = vrot.slane %v374_v13, 4  ;;  %v1707_v51 = vrot.slane %v2030_v54, 9 }
  0x3a   : > { %v2141_v32 = vpack.c.b16 %v541_v14, %v540_v58  ;;  %v517_v34 = vsel %vm2014_vm4, %v512_v15, %v516_v59  ;;  %v367_v37 = vor.u32 %v366_v18, %v363_v4  ;;  %v382_v39 = vrot.slane %v380_v21, 5  ;;  %v1790_v15 = vld [vmem:[%s1976_s14] sm:$0xff] }
  0x3b   : > { %v527_v43 = vsel %vm2014_vm4, %v522_v22, %v526_v3  ;;  %v544_v44 = vunpack.c.l.b16 %v517_v34  ;;  %v377_v45 = vor.u32 %v376_v25, %v372_v23  ;;  %v761_v52 = vrot.slane %v2038_v2, 5 }
  0x3c   : > { %1664 = vmatmul.msk.bf16.gmra.mxu2 %vm554_vm3, %v2141_v32  ;;  %v545_v48 = vunpack.c.l.b16 %v527_v43  ;;  %v368_v49 = vrot.slane %v367_v37, 4  ;;  %v1206_v58 = vsel %vm579_vm0, %v1756_v31, 0  ;;  %v1306_v59 = vsel %vm579_vm0, %v1769_v40, 0 }
  0x3d   : > { %v378_v57 = vrot.slane %v377_v45, 4  ;;  %v1128_v61 = vsel %vm579_vm0, %v1747_v42, 0  ;;  %v763_v2 = vrot.slane %v761_v52, 4  ;;  %1215 = vmatpush.bf16.msra.mxu2 %v1206_v58  ;;  %1315 = vmatpush.bf16.msra.mxu3 %v1306_v59  ;;  %v1390_v6 = vsel %vm579_vm0, %v1779_v56, 0  ;;  %v1791_v42 = vld [vmem:[%s1976_s14 + $0xc] sm:$0xff] }
  0x3e   : > { %v2163_v1 = vpack.c.b16 %v545_v48, %v544_v44  ;;  %v373_v3 = vsel %vm2014_vm4, %v368_v49, %v372_v23  ;;  %1137 = vmatpush.bf16.msra.mxu1 %v1128_v61  ;;  %1399 = vmatpush.bf16.msra.mxu0 %v1390_v6  ;;  %v762_v9 = vsel %vm2168_vm7, %v1707_v51, %v761_v52  ;;  %v1709_v22 = vrot.slane %v1979_v10, 9 }
  0x3f   : > { %v383_v4 = vsel %vm2014_vm4, %v378_v57, %v382_v39  ;;  %v532_v5 = vunpack.c.l.b16 %v373_v3  ;;  %v765_v13 = vsel %vm2168_vm7, %v763_v2, %v764_v28  ;;  %v817_v18 = vunpack.c.l.b16 %v762_v9  ;;  %v2244_v3 = vld [vmem:[%s1976_s14 + $0x30] sm:$0xff] }
  0x40   : > { %1666 = vmatmul.msk.bf16.gmra.mxu3 %vm554_vm3, %v2163_v1  ;;  %v533_v7 = vunpack.c.l.b16 %v383_v4  ;;  %v818_v21 = vunpack.c.l.b16 %v765_v13  ;;  %v775_v23 = vrot.slane %v1982_v11, 5  ;;  %v778_v25 = vrot.slane %v1985_v12, 5  ;;  %v2264_v13 = vld [vmem:[%s1976_s14 + $0x3c] sm:$0xff] }
  0x41   : > { %v768_v34 = vrot.slane %v2124_v53, 5  ;;  %v1708_v10 = vrot.slane %v2112_v38, 9  ;;  %v771_v12 = vrot.slane %v2128_v0, 5  ;;  %v1710_v38 = vrot.slane %v2052_v16, 9  ;;  %v2219_v16 = vld [vmem:[%s1976_s14 + $0x18] sm:$0xff] }
  0x42   : > { %v547_v14 = vpack.c.b16 %v533_v7, %v532_v5  ;;  %v833_v31 = vpack.c.b16 %v818_v21, %v817_v18  ;;  %v776_v8 = vsel %vm2168_vm7, %v1709_v22, %v775_v23  ;;  %v777_v28 = vrot.slane %v775_v23, 4 }
  0x43   : > { %v821_v37 = vunpack.c.l.b16 %v776_v8  ;;  %v770_v11 = vrot.slane %v768_v34, 4  ;;  %v769_v53 = vsel %vm2168_vm7, %v1708_v10, %v768_v34  ;;  %v782_v0 = vrot.slane %v2061_v29, 5 }
  0x44   : > { %1660 = vmatmul.msk.bf16.gmra.mxu0 %vm554_vm3, %v547_v14  ;;  %v779_v39 = vsel %vm2168_vm7, %v777_v28, %v778_v25  ;;  %v819_v45 = vunpack.c.l.b16 %v769_v53  ;;  %v785_v49 = vrot.slane %v2066_v33, 5  ;;  %v2232_v33 = vld [vmem:[%s1976_s14 + $0x24] sm:$0xff]  ;;  %v789_v61 = vrot.slane %v1996_v19, 5 }
  0x45   : > { %v822_v40 = vunpack.c.l.b16 %v779_v39  ;;  %v772_v44 = vsel %vm2168_vm7, %v770_v11, %v771_v12  ;;  %v783_v52 = vsel %vm2168_vm7, %v1710_v38, %v782_v0  ;;  %v784_v56 = vrot.slane %v782_v0, 4  ;;  %v2287_v25 = vld [vmem:[%s1976_s14 + $0x48] sm:$0xff]  ;;  %v2307_v39 = vld [vmem:[%s2302_s10] sm:$0xf]  ;;  %v2328_v38 = vld [vmem:[%s1976_s14 + $0x54] sm:$0xff] }
  0x46   : > { %1699 = vmatmul.msk.bf16.vlgmr.msrb.gmra.mxu1 %vm554_vm3, %v1790_v15  ;;  %v820_v48 = vunpack.c.l.b16 %v772_v44  ;;  %v823_v57 = vunpack.c.l.b16 %v783_v52  ;;  %v1711_v2 = vrot.slane %v1992_v17, 9  ;;  %v791_v4 = vrot.slane %v789_v61, 4 }
  0x47   : > { %v2198_v43 = vpack.c.b16 %v822_v40, %v821_v37  ;;  %v786_v58 = vsel %vm2168_vm7, %v784_v56, %v785_v49  ;;  %v792_v5 = vrot.slane %v1999_v20, 5  ;;  %v796_v20 = vrot.slane %v2081_v55, 5  ;;  %v2310_v40 = vld [vmem:[%s2302_s10 + $0x4] sm:$0xf] }
  0x48   : > { %v2210_v51 = vpack.c.b16 %v820_v48, %v819_v45  ;;  %v824_v59 = vunpack.c.l.b16 %v786_v58  ;;  %v790_v6 = vsel %vm2168_vm7, %v1711_v2, %v789_v61  ;;  %v799_v18 = vrot.slane %v2089_v60, 5  ;;  %v2333_v61 = vld [vmem:[%s2302_s10 + $0x8] sm:$0x1] }
  0x49   : > { %v793_v19 = vsel %vm2168_vm7, %v791_v4, %v792_v5  ;;  %v825_v7 = vunpack.c.l.b16 %v790_v6  ;;  %v798_v15 = vrot.slane %v796_v20, 4  ;;  %v803_v23 = vrot.slane %v2010_v35, 5 }
  0x4a   : > { %v2221_v29 = vpack.c.b16 %v824_v59, %v823_v57  ;;  %v826_v9 = vunpack.c.l.b16 %v793_v19  ;;  %v806_v28 = vrot.slane %v2021_v46, 5  ;;  %v1012_v10 = vshrl.u32 %v2307_v39, 16 }
  0x4b   : > { %v800_v55 = vsel %vm2168_vm7, %v798_v15, %v799_v18  ;;  %v805_v8 = vrot.slane %v803_v23, 4  ;;  %v1015_v11 = vshll.u32 %v2307_v39, 16  ;;  %v1021_v12 = vshll.u32 %v2310_v40, 16 }
  0x4c   : > { %1716 = vmatmul.msk.bf16.vlgmr.msrb.gmra.mxu2 %vm554_vm3, %v833_v31  ;;  %v2258_v17 = vpack.c.b16 %v826_v9, %v825_v7  ;;  %v1713_v31 = vrot.slane %v2003_v26, 9  ;;  %v810_v44 = vrot.slane %v2104_v27, 5  ;;  %v1025_v45 = vshrl.u32 %v2310_v40, 16 }
  0x4d   : > { %v807_v37 = vsel %vm2168_vm7, %v805_v8, %v806_v28  ;;  %v1014_v0 = vrot.slane %v1012_v10, 4  ;;  %v1017_v49 = vrot.slane %v1015_v11, 5  ;;  %v1023_v52 = vrot.slane %v1021_v12, 5  ;;  %v2365_v8 = vld [vmem:[%s2302_s10] sm:$0xff] }
  0x4e   : > { %v804_v35 = vsel %vm2168_vm7, %v1713_v31, %v803_v23  ;;  %v830_v46 = vunpack.c.l.b16 %v807_v37  ;;  %v1714_v56 = vrot.slane %v2093_v62, 9  ;;  %v812_v57 = vrot.slane %v810_v44, 4 }
  0x4f   : > { %v829_v26 = vunpack.c.l.b16 %v804_v35  ;;  %v813_v58 = vrot.slane %v2107_v30, 5  ;;  %v1027_v59 = vrot.slane %v1025_v45, 4  ;;  %v1018_v4 = vor.u32 %v1017_v49, %v1014_v0 }
  0x50   : > { %1729 = vmatmul.msk.bf16.vlgmr.msrb.gmra.mxu3 %vm554_vm3, %v1791_v42  ;;  %v811_v5 = vsel %vm2168_vm7, %v1714_v56, %v810_v44  ;;  %v1031_v19 = vshll.u32 %v2333_v61, 16 }
  0x51   : > { %v814_v6 = vsel %vm2168_vm7, %v812_v57, %v813_v58  ;;  %v1028_v62 = vor.u32 %v1027_v59, %v1023_v52  ;;  %v831_v7 = vunpack.c.l.b16 %v811_v5 }
  0x52   : > { %v832_v9 = vunpack.c.l.b16 %v814_v6  ;;  %v1033_v18 = vrot.slane %v1031_v19, 5 }
  0x53   : > { %v1029_v15 = vrot.slane %v1028_v62, 4 }
  0x54   : > { %1738 = vmatmul.msk.bf16.vlgmr.msrb.gmra.mxu0 %vm554_vm3, %v547_v14  ;;  %v1712_v14 = vrot.slane %v2073_v41, 9  ;;  %v828_v41 = vunpack.c.l.b16 %v800_v55  ;;  %v2352_v55 = vpack.c.b16 %v832_v9, %v831_v7 }
  0x55   : > { %v1034_v23 = vsel %vm2014_vm4, %v1029_v15, %v1033_v18 }
  0x56   : > { %1700 = vmatmul.msk.bf16.gmra.mxu1 %vm554_vm3, %v1791_v42  ;;  %v797_v21 = vsel %vm2168_vm7, %v1712_v14, %v796_v20  ;;  %v2314_v42 = vpack.c.b16 %v830_v46, %v829_v26  ;;  %v1019_v14 = vrot.slane %v1018_v4, 4  ;;  %v1038_v35 = vunpack.c.l.b16 %v1034_v23 }
  0x57   : > { %v827_v22 = vunpack.c.l.b16 %v797_v21 }
  0x59   : > { %v2280_v60 = vpack.c.b16 %v828_v41, %v827_v22  ;;  %v1024_v41 = vsel %vm2014_vm4, %v1019_v14, %v1023_v52 }
  0x5a   : > { %v1037_v28 = vunpack.c.l.b16 %v1024_v41 }
  0x5c   : > { %1717 = vmatmul.msk.bf16.gmra.mxu2 %vm554_vm3, %v2210_v51  ;;  %v2371_v26 = vpack.c.b16 %v1038_v35, %v1037_v28 }
  0x60   : > { %1730 = vmatmul.msk.bf16.gmra.mxu3 %vm554_vm3, %v2219_v16 }
  0x64   : > { %1739 = vmatmul.msk.bf16.gmra.mxu0 %vm554_vm3, %v2033_v63 }
  0x66   : > { %1701 = vmatmul.msk.bf16.gmra.mxu1 %vm554_vm3, %v2219_v16 }
  0x6c   : > { %1718 = vmatmul.msk.bf16.gmra.mxu2 %vm554_vm3, %v2198_v43 }
  0x70   : > { %1731 = vmatmul.msk.bf16.gmra.mxu3 %vm554_vm3, %v2232_v33 }
  0x74   : > { %1740 = vmatmul.msk.bf16.gmra.mxu0 %vm554_vm3, %v2119_v50 }
  0x76   : > { %1702 = vmatmul.msk.bf16.gmra.mxu1 %vm554_vm3, %v2232_v33 }
  0x7c   : > { %1719 = vmatmul.msk.bf16.gmra.mxu2 %vm554_vm3, %v2221_v29 }
  0x80   : > { %1732 = vmatmul.msk.bf16.gmra.mxu3 %vm554_vm3, %v2244_v3 }
  0x84   : > { %1741 = vmatmul.msk.bf16.gmra.mxu0 %vm554_vm3, %v2056_v24 }
  0x86   : > { %1703 = vmatmul.msk.bf16.gmra.mxu1 %vm554_vm3, %v2244_v3 }
  0x8c   : > { %1720 = vmatmul.msk.bf16.gmra.mxu2 %vm554_vm3, %v2258_v17 }
  0x90   : > { %1733 = vmatmul.msk.bf16.gmra.mxu3 %vm554_vm3, %v2264_v13 }
  0x94   : > { %1742 = vmatmul.msk.bf16.gmra.mxu0 %vm554_vm3, %v2141_v32 }
  0x96   : > { %1704 = vmatmul.msk.bf16.gmra.mxu1 %vm554_vm3, %v2264_v13 }
  0x9c   : > { %1721 = vmatmul.msk.bf16.gmra.mxu2 %vm554_vm3, %v2280_v60 }
  0xa0   : > { %1734 = vmatmul.msk.bf16.gmra.mxu3 %vm554_vm3, %v2287_v25 }
  0xa1   : > { %v2293_v34 = vpop.f32.mrf.mxu1 }
  0xa4   : > { %1743 = vmatmul.msk.bf16.gmra.mxu0 %vm554_vm3, %v2077_v47 }
  0xa6   : > { %1705 = vmatmul.msk.bf16.gmra.mxu1 %vm554_vm3, %v2287_v25 }
  0xa9   : > { %v2319_v53 = vpop.f32.mrf.mxu1 }
  0xab   : > { %v2323_v48 = vpop.f32.mrf.mxu2 }
  0xac   : > { %1722 = vmatmul.msk.bf16.gmra.mxu2 %vm554_vm3, %v2314_v42 }
  0xaf   : > { %v592_v27 = vpop.f32.mrf.mxu0  ;;  %v2335_v2 = vpop.f32.mrf.mxu3 }
  0xb0   : > { %1735 = vmatmul.msk.bf16.gmra.mxu3 %vm554_vm3, %v2328_v38 }
  0xb3   : > { %v2344_v30 = vpop.f32.mrf.mxu1  ;;  %v2348_v20 = vpop.f32.mrf.mxu2 }
  0xb4   : > { %1744 = vmatmul.msk.bf16.gmra.mxu0 %vm554_vm3, %v2163_v1 }
  0xb6   : > { %1706 = vmatmul.msk.bf16.gmra.mxu1 %vm554_vm3, %v2328_v38 }
  0xb7   : > { %v594_v21 = vpop.f32.mrf.mxu0  ;;  %v2354_v22 = vpop.f32.mrf.mxu3 }
  0xbb   : > { %v2360_v31 = vpop.f32.mrf.mxu1 }
  0xbc   : > { %1723 = vmatmul.msk.bf16.gmra.mxu2 %vm554_vm3, %v2352_v55 }
  0xbf   : > { %v2367_v37 = vpop.f32.mrf.mxu2 }
  0xc0   : > { %1736 = vmatmul.msk.bf16.gmra.mxu3 %vm554_vm3, %v2365_v8 }
  0xc1   : > { %v597_v46 = vpop.f32.mrf.mxu0 }
  0xc3   : > { %v2373_v10 = vpop.f32.mrf.mxu3  ;;  %v708_v11 = vpop.f32.mrf.mxu1 }
  0xc4   : > { %1745 = vmatmul.msk.bf16.gmra.mxu0 %vm554_vm3, %v2371_v26  ;;  %v709_v12 = vadd.f32 %v708_v11, %v592_v27 }
  0xc6   : > { %1748 = vmatmul.msk.bf16.vlgmr.msra.gmra.mxu1 %vm554_vm3, %v2210_v51 }
  0xc7   : > { %v2379_v44 = vpop.f32.mrf.mxu2 }
  0xc9   : > { %v599_v45 = vpop.f32.mrf.mxu0 }
  0xcb   : > { %v2381_v0 = vpop.f32.mrf.mxu3  ;;  %v710_v49 = vpop.f32.mrf.mxu1 }
  0xcc   : > { %1761 = vmatmul.msk.bf16.vlgmr.msra.gmra.mxu2 %vm554_vm3, %v2219_v16  ;;  %v711_v52 = vadd.f32 %v710_v49, %v594_v21 }
  0xcf   : > { %v877_v56 = vpop.f32.mrf.mxu2 }
  0xd0   : > { %1770 = vmatmul.msk.bf16.vlgmr.msra.gmra.mxu3 %vm554_vm3, %v2033_v63  ;;  %v917_v57 = vadd.f32 %v877_v56, %v709_v12 }
  0xd1   : > { %v1055_v58 = vpop.f32.mrf.mxu0 }
  0xd3   : > { %v955_v59 = vpop.f32.mrf.mxu3  ;;  %v713_v27 = vpop.f32.mrf.mxu1 }
  0xd4   : > { %1780 = vmatmul.msk.bf16.vlgmr.msra.gmra.mxu0 %vm554_vm3, %v2198_v43  ;;  %v995_v51 = vadd.f32 %v955_v59, %v917_v57  ;;  %v714_v4 = vadd.f32 %v713_v27, %v597_v46 }
  0xd6   : > { %1749 = vmatmul.msk.bf16.gmra.mxu1 %vm554_vm3, %v2198_v43  ;;  %v2391_v5 = vadd.f32 %v1055_v58, %v995_v51 }
  0xd7   : > { %v879_v16 = vpop.f32.mrf.mxu2 }
  0xd8   : > { %v918_v6 = vadd.f32 %v879_v16, %v711_v52 }
  0xd9   : > { %v1057_v62 = vpop.f32.mrf.mxu0 }
  0xdb   : > { %v957_v19 = vpop.f32.mrf.mxu3  ;;  %v715_v7 = vpop.f32.mrf.mxu1 }
  0xdc   : > { %v996_v63 = vadd.f32 %v957_v19, %v918_v6  ;;  %1762 = vmatmul.msk.bf16.gmra.mxu2 %vm554_vm3, %v2232_v33  ;;  %v716_v9 = vadd.f32 %v715_v7, %v599_v45 }
  0xde   : > { %v2395_v14 = vadd.f32 %v1057_v62, %v996_v63 }
  0xdf   : > { %v882_v15 = vpop.f32.mrf.mxu2 }
  0xe0   : > { %1771 = vmatmul.msk.bf16.gmra.mxu3 %vm554_vm3, %v2119_v50  ;;  %v919_v18 = vadd.f32 %v882_v15, %v714_v4 }
  0xe1   : > { %v1060_v43 = vpop.f32.mrf.mxu0 }
  0xe3   : > { %v960_v21 = vpop.f32.mrf.mxu3  ;;  %v718_v41 = vpop.f32.mrf.mxu1 }
  0xe4   : > { %1781 = vmatmul.msk.bf16.gmra.mxu0 %vm554_vm3, %v2221_v29  ;;  %v997_v23 = vadd.f32 %v960_v21, %v919_v18  ;;  %v719_v28 = vadd.f32 %v718_v41, %v2293_v34 }
  0xe6   : > { %1750 = vmatmul.msk.bf16.gmra.mxu1 %vm554_vm3, %v2221_v29  ;;  %v2404_v33 = vadd.f32 %v1060_v43, %v997_v23 }
  0xe7   : > { %v884_v35 = vpop.f32.mrf.mxu2 }
  0xe8   : > { %v920_v46 = vadd.f32 %v884_v35, %v716_v9 }
  0xe9   : > { %v1062_v11 = vpop.f32.mrf.mxu0 }
  0xeb   : > { %v962_v12 = vpop.f32.mrf.mxu3  ;;  %v720_v50 = vpop.f32.mrf.mxu1 }
  0xec   : > { %v998_v45 = vadd.f32 %v962_v12, %v920_v46  ;;  %1763 = vmatmul.msk.bf16.gmra.mxu2 %vm554_vm3, %v2244_v3  ;;  %v721_v49 = vadd.f32 %v720_v50, %v2319_v53 }
  0xee   : > { %v2409_v52 = vadd.f32 %v1062_v11, %v998_v45 }
  0xef   : > { %v887_v56 = vpop.f32.mrf.mxu2 }
  0xf0   : > { %1772 = vmatmul.msk.bf16.gmra.mxu3 %vm554_vm3, %v2056_v24  ;;  %v921_v29 = vadd.f32 %v887_v56, %v719_v28 }
  0xf1   : > { %v1065_v34 = vpop.f32.mrf.mxu0 }
  0xf3   : > { %v965_v57 = vpop.f32.mrf.mxu3  ;;  %v723_v58 = vpop.f32.mrf.mxu1 }
  0xf4   : > { %1782 = vmatmul.msk.bf16.gmra.mxu0 %vm554_vm3, %v2258_v17  ;;  %v999_v59 = vadd.f32 %v965_v57, %v921_v29  ;;  %v724_v27 = vadd.f32 %v723_v58, %v2344_v30 }
  0xf6   : > { %1751 = vmatmul.msk.bf16.gmra.mxu1 %vm554_vm3, %v2258_v17  ;;  %v2418_v3 = vadd.f32 %v1065_v34, %v999_v59 }
  0xf7   : > { %v889_v53 = vpop.f32.mrf.mxu2 }
  0xf8   : > { %v922_v51 = vadd.f32 %v889_v53, %v721_v49  ;;  %v2456_v53 = vld [vmem:[%s2302_s10 + $0xc] sm:$0xf] }
  0xf9   : > { %v1067_v4 = vpop.f32.mrf.mxu0 }
  0xfb   : > { %v967_v16 = vpop.f32.mrf.mxu3  ;;  %v725_v24 = vpop.f32.mrf.mxu1 }
  0xfc   : > { %v1000_v6 = vadd.f32 %v967_v16, %v922_v51  ;;  %1764 = vmatmul.msk.bf16.gmra.mxu2 %vm554_vm3, %v2264_v13  ;;  %v726_v62 = vadd.f32 %v725_v24, %v2360_v31  ;;  %v2459_v51 = vld [vmem:[%s2302_s10 + $0x10] sm:$0xf]  ;;  %v1274_v24 = vshrl.u32 %v2456_v53, 16 }
  0xfe   : > { %v2423_v19 = vadd.f32 %v1067_v4, %v1000_v6  ;;  %v1746_v6 = vrot.slane %v2307_v39, 9 }
  0xff   : > { %v892_v7 = vpop.f32.mrf.mxu2 }
 0x100   : > { %1773 = vmatmul.msk.bf16.gmra.mxu3 %vm554_vm3, %v2141_v32  ;;  %v923_v17 = vadd.f32 %v892_v7, %v724_v27  ;;  %v1114_v27 = vrot.slane %v2310_v40, 5  ;;  %v1287_v7 = vshrl.u32 %v2459_v51, 16 }
 0x101   : > { %v1070_v30 = vpop.f32.mrf.mxu0 }
 0x102   : > { %v1116_v40 = vrot.slane %v1114_v27, 4  ;;  %v1115_v39 = vsel %vm2168_vm7, %v1746_v6, %v1114_v27 }
 0x103   : > { %v970_v63 = vpop.f32.mrf.mxu3  ;;  %v728_v9 = vpop.f32.mrf.mxu1 }
 0x104   : > { %1783 = vmatmul.msk.bf16.gmra.mxu0 %vm554_vm3, %v2280_v60  ;;  %v1001_v15 = vadd.f32 %v970_v63, %v923_v17  ;;  %v729_v32 = vadd.f32 %v728_v9, %v2323_v48  ;;  %v1276_v9 = vrot.slane %v1274_v24, 4  ;;  %v1799_v24 = vld [vmem:[%s2302_s10 + $0xc] sm:$0xff] }
 0x106   : > { %1752 = vmatmul.msk.bf16.gmra.mxu1 %vm554_vm3, %v2280_v60  ;;  %v2431_v13 = vadd.f32 %v1070_v30, %v1001_v15 }
 0x107   : > { %v894_v31 = vpop.f32.mrf.mxu2 }
 0x108   : > { %v924_v18 = vadd.f32 %v894_v31, %v726_v62  ;;  %v1283_v62 = vshll.u32 %v2459_v51, 16 }
 0x109   : > { %v1072_v43 = vpop.f32.mrf.mxu0 }
 0x10b   : > { %v972_v21 = vpop.f32.mrf.mxu3  ;;  %v730_v41 = vpop.f32.mrf.mxu1 }
 0x10c   : > { %v1002_v23 = vadd.f32 %v972_v21, %v924_v18  ;;  %1765 = vmatmul.msk.bf16.gmra.mxu2 %vm554_vm3, %v2287_v25  ;;  %v731_v45 = vadd.f32 %v730_v41, %v2348_v20  ;;  %v1289_v21 = vrot.slane %v1287_v7, 4  ;;  %v331_v41 = vld [vmem:[%s2302_s10 + $0x14] sm:$0x1] }
 0x10e   : > { %v2436_v28 = vadd.f32 %v1072_v43, %v1002_v23  ;;  %v1285_v43 = vrot.slane %v1283_v62, 5 }
 0x10f   : > { %v897_v35 = vpop.f32.mrf.mxu2 }
 0x110   : > { %1774 = vmatmul.msk.bf16.gmra.mxu3 %vm554_vm3, %v2077_v47  ;;  %v925_v60 = vadd.f32 %v897_v35, %v729_v32 }
 0x111   : > { %v1075_v46 = vpop.f32.mrf.mxu0 }
 0x113   : > { %v975_v11 = vpop.f32.mrf.mxu3  ;;  %v733_v12 = vpop.f32.mrf.mxu1 }
 0x114   : > { %1784 = vmatmul.msk.bf16.gmra.mxu0 %vm554_vm3, %v2314_v42  ;;  %v1003_v50 = vadd.f32 %v975_v11, %v925_v60  ;;  %v734_v57 = vadd.f32 %v733_v12, %v2367_v37  ;;  %v1293_v11 = vshll.u32 %v331_v41, 16 }
 0x116   : > { %1753 = vmatmul.msk.bf16.gmra.mxu1 %vm554_vm3, %v2314_v42  ;;  %v2445_v25 = vadd.f32 %v1075_v46, %v1003_v50  ;;  %v1290_v46 = vor.u32 %v1289_v21, %v1285_v43 }
 0x117   : > { %v899_v48 = vpop.f32.mrf.mxu2 }
 0x118   : > { %v926_v49 = vadd.f32 %v899_v48, %v731_v45 }
 0x119   : > { %v1077_v47 = vpop.f32.mrf.mxu0 }
 0x11b   : > { %v977_v56 = vpop.f32.mrf.mxu3  ;;  %v735_v29 = vpop.f32.mrf.mxu1 }
 0x11c   : > { %v1004_v34 = vadd.f32 %v977_v56, %v926_v49  ;;  %1766 = vmatmul.msk.bf16.gmra.mxu2 %vm554_vm3, %v2328_v38  ;;  %v1117_v38 = vrot.slane %v2333_v61, 5  ;;  %v736_v17 = vadd.f32 %v735_v29, %v2379_v44  ;;  %v1291_v29 = vrot.slane %v1290_v46, 4 }
 0x11e   : > { %v2450_v58 = vadd.f32 %v1077_v47, %v1004_v34  ;;  %v1118_v18 = vsel %vm2168_vm7, %v1116_v40, %v1117_v38  ;;  %v1295_v34 = vrot.slane %v1293_v11, 5 }
 0x11f   : > { %v902_v20 = vpop.f32.mrf.mxu2  ;;  %v1122_v35 = vunpack.c.l.b16 %v1118_v18 }
 0x120   : > { %1775 = vmatmul.msk.bf16.gmra.mxu3 %vm554_vm3, %v2163_v1  ;;  %v927_v42 = vadd.f32 %v902_v20, %v734_v57  ;;  %v1277_v1 = vshll.u32 %v2456_v53, 16 }
 0x121   : > { %v1080_v59 = vpop.f32.mrf.mxu0 }
 0x122   : > { %v1279_v15 = vrot.slane %v1277_v1, 5 }
 0x123   : > { %v980_v4 = vpop.f32.mrf.mxu3  ;;  %v738_v16 = vpop.f32.mrf.mxu1 }
 0x124   : > { %1785 = vmatmul.msk.bf16.gmra.mxu0 %vm554_vm3, %v2352_v55  ;;  %v1005_v37 = vadd.f32 %v980_v4, %v927_v42  ;;  %v1280_v60 = vor.u32 %v1279_v15, %v1276_v9  ;;  %v739_v12 = vadd.f32 %v738_v16, %v2335_v2  ;;  %v1379_v4 = vrot.slane %v331_v41, 5 }
 0x126   : > { %1754 = vmatmul.msk.bf16.gmra.mxu1 %vm554_vm3, %v2352_v55  ;;  %v2472_v61 = vadd.f32 %v1080_v59, %v1005_v37  ;;  %v1121_v55 = vunpack.c.l.b16 %v1115_v39  ;;  %v1281_v47 = vrot.slane %v1280_v60, 4  ;;  %v1778_v59 = vrot.slane %v2456_v53, 9 }
 0x127   : > { %v904_v30 = vpop.f32.mrf.mxu2 }
 0x128   : > { %v928_v63 = vadd.f32 %v904_v30, %v736_v17  ;;  %v1123_v48 = vpack.c.b16 %v1122_v35, %v1121_v55  ;;  %v1286_v42 = vsel %vm2014_vm4, %v1281_v47, %v1285_v43 }
 0x129   : > { %v1082_v31 = vpop.f32.mrf.mxu0  ;;  %v1299_v1 = vunpack.c.l.b16 %v1286_v42 }
 0x12b   : > { %v982_v44 = vpop.f32.mrf.mxu3  ;;  %v740_v23 = vpop.f32.mrf.mxu1 }
 0x12c   : > { %v1006_v32 = vadd.f32 %v982_v44, %v928_v63  ;;  %1767 = vmatmul.msk.bf16.gmra.mxu2 %vm554_vm3, %v2365_v8  ;;  %v1376_v8 = vrot.slane %v2459_v51, 5  ;;  %v741_v16 = vadd.f32 %v740_v23, %v2354_v22 }
 0x12e   : > { %v2482_v50 = vadd.f32 %v1082_v31, %v1006_v32  ;;  %v1378_v27 = vrot.slane %v1376_v8, 4  ;;  %v1377_v36 = vsel %vm2168_vm7, %v1778_v59, %v1376_v8 }
 0x12f   : > { %v907_v45 = vpop.f32.mrf.mxu2  ;;  %v1383_v30 = vunpack.c.l.b16 %v1377_v36 }
 0x130   : > { %1776 = vmatmul.msk.bf16.gmra.mxu3 %vm554_vm3, %v2371_v26  ;;  %v929_v49 = vadd.f32 %v907_v45, %v739_v12  ;;  %v1296_v26 = vsel %vm2014_vm4, %v1291_v29, %v1295_v34  ;;  %v1380_v53 = vsel %vm2168_vm7, %v1378_v27, %v1379_v4  ;;  %v2520_v29 = vld [vmem:[%s2608_s3] ss:$0 sm:$0xff] }
 0x131   : > { %v1085_v56 = vpop.f32.mrf.mxu0  ;;  %v1300_v6 = vunpack.c.l.b16 %v1296_v26  ;;  %v1384_v63 = vunpack.c.l.b16 %v1380_v53 }
 0x133   : > { %v985_v57 = vpop.f32.mrf.mxu3  ;;  %v743_v20 = vpop.f32.mrf.mxu1  ;;  %v1301_v22 = vpack.c.b16 %v1300_v6, %v1299_v1  ;;  %v1385_v39 = vpack.c.b16 %v1384_v63, %v1383_v30 }
 0x134   : > { %1786 = vmatmul.msk.bf16.gmra.mxu0 %vm554_vm3, %v1123_v48  ;;  %v1007_v2 = vadd.f32 %v985_v57, %v929_v49  ;;  %v744_v9 = vadd.f32 %v743_v20, %v2373_v10 }
 0x136   : > { %1755 = vmatmul.msk.bf16.gmra.mxu1 %vm554_vm3, %v1123_v48  ;;  %v2495_v51 = vadd.f32 %v1085_v56, %v1007_v2 }
 0x137   : > { %v909_v38 = vpop.f32.mrf.mxu2 }
 0x138   : > { %v930_v37 = vadd.f32 %v909_v38, %v741_v16 }
 0x139   : > { %v1087_v40 = vpop.f32.mrf.mxu0 }
 0x13b   : > { %v987_v62 = vpop.f32.mrf.mxu3  ;;  %v745_v7 = vpop.f32.mrf.mxu1 }
 0x13c   : > { %v1008_v17 = vadd.f32 %v987_v62, %v930_v37  ;;  %1768 = vmatmul.msk.bf16.gmra.mxu2 %vm554_vm3, %v1799_v24  ;;  %v746_v44 = vadd.f32 %v745_v7, %v2381_v0 }
 0x13e   : > { %v2504_v15 = vadd.f32 %v1087_v40, %v1008_v17 }
 0x13f   : > { %v912_v31 = vpop.f32.mrf.mxu2 }
 0x140   : > { %1777 = vmatmul.msk.bf16.gmra.mxu3 %vm554_vm3, %v1301_v22  ;;  %v931_v18 = vadd.f32 %v912_v31, %v744_v9 }
 0x141   : > { %v1090_v54 = vpop.f32.mrf.mxu0 }
 0x143   : > { %v990_v43 = vpop.f32.mrf.mxu3  ;;  %v1139_v21 = vpop.f32.mrf.mxu1 }
 0x144   : > { %1787 = vmatmul.msk.bf16.gmra.mxu0 %vm554_vm3, %v1385_v39  ;;  %v1009_v41 = vadd.f32 %v990_v43, %v931_v18  ;;  %v1179_v11 = vadd.f32 %v1139_v21, %v2391_v5 }
 0x146   : > { %v2509_v23 = vadd.f32 %v1090_v54, %v1009_v41 }
 0x147   : > { %v914_v10 = vpop.f32.mrf.mxu2 }
 0x148   : > { %v932_v32 = vadd.f32 %v914_v10, %v746_v44 }
 0x149   : > { %v1092_v55 = vpop.f32.mrf.mxu0 }
 0x14b   : > { %v992_v35 = vpop.f32.mrf.mxu3  ;;  %v1141_v60 = vpop.f32.mrf.mxu1 }
 0x14c   : > { %v1010_v46 = vadd.f32 %v992_v35, %v932_v32  ;;  %v1180_v5 = vadd.f32 %v1141_v60, %v2395_v14 }
 0x14e   : > { %v2514_v12 = vadd.f32 %v1092_v55, %v1010_v46 }
 0x14f   : > { %v1217_v45 = vpop.f32.mrf.mxu2 }
 0x150   : > { %v1257_v48 = vadd.f32 %v1217_v45, %v1179_v11 }
 0x151   : > { %v1401_v49 = vpop.f32.mrf.mxu0 }
 0x153   : > { %v1317_v0 = vpop.f32.mrf.mxu3  ;;  %v1144_v47 = vpop.f32.mrf.mxu1 }
 0x154   : > { %v1357_v56 = vadd.f32 %v1317_v0, %v1257_v48  ;;  %v1181_v16 = vadd.f32 %v1144_v47, %v2404_v33 }
 0x156   : > { %v1441_v34 = vadd.f32 %v1401_v49, %v1357_v56 }
 0x157   : > { %v1219_v8 = vpop.f32.mrf.mxu2 }
 0x158   : > { %v1461_v57 = vadd.f32 %v2520_v29, %v1441_v34  ;;  %v1258_v20 = vadd.f32 %v1219_v8, %v1180_v5 }
 0x159   : > { %v1403_v2 = vpop.f32.mrf.mxu0 }
 0x15a   : > { %v1477_v42 = vmax.f32 %v1461_v57, 0.0 }
 0x15b   : > { %v1319_v26 = vpop.f32.mrf.mxu3  ;;  %v1146_v59 = vpop.f32.mrf.mxu1 }
 0x15c   : > { %v1493_v27 = vpack.c.bf16 %v1477_v42, %v1477_v42  ;;  %v1358_v4 = vadd.f32 %v1319_v26, %v1258_v20  ;;  %v1182_v17 = vadd.f32 %v1146_v59, %v2409_v52 }
 0x15e   : > { %1510 = vst.msk [vmem:[%s2527_s25] sm:$0xf] %vm1509_vm8, %v1493_v27  ;;  %v1442_v14 = vadd.f32 %v1403_v2, %v1358_v4 }
 0x15f   : > { %v1222_v38 = vpop.f32.mrf.mxu2 }
 0x160   : > { %v1462_v37 = vadd.f32 %v2520_v29, %v1442_v14  ;;  %v1259_v24 = vadd.f32 %v1222_v38, %v1181_v16 }
 0x161   : > { %v1406_v1 = vpop.f32.mrf.mxu0 }
 0x162   : > { %v1478_v6 = vmax.f32 %v1462_v37, 0.0 }
 0x163   : > { %v1322_v40 = vpop.f32.mrf.mxu3  ;;  %v1149_v36 = vpop.f32.mrf.mxu1 }
 0x164   : > { %v1494_v53 = vpack.c.bf16 %v1478_v6, %v1478_v6  ;;  %v1359_v62 = vadd.f32 %v1322_v40, %v1259_v24  ;;  %v1183_v21 = vadd.f32 %v1149_v36, %v2418_v3 }
 0x166   : > { %1511 = vst.msk [vmem:[%s2527_s25 + $0x4] sm:$0xf] %vm1509_vm8, %v1494_v53  ;;  %v1443_v7 = vadd.f32 %v1406_v1, %v1359_v62 }
 0x167   : > { %v1224_v22 = vpop.f32.mrf.mxu2 }
 0x168   : > { %v1463_v30 = vadd.f32 %v2520_v29, %v1443_v7  ;;  %v1260_v33 = vadd.f32 %v1224_v22, %v1182_v17 }
 0x169   : > { %v1408_v63 = vpop.f32.mrf.mxu0 }
 0x16a   : > { %v1479_v9 = vmax.f32 %v1463_v30, 0.0 }
 0x16b   : > { %v1324_v31 = vpop.f32.mrf.mxu3  ;;  %v1151_v39 = vpop.f32.mrf.mxu1 }
 0x16c   : > { %v1495_v18 = vpack.c.bf16 %v1479_v9, %v1479_v9  ;;  %v1360_v54 = vadd.f32 %v1324_v31, %v1260_v33  ;;  %v1184_v45 = vadd.f32 %v1151_v39, %v2423_v19 }
 0x16e   : > { %1512 = vst.msk [vmem:[%s2527_s25 + $0x8] sm:$0xf] %vm1509_vm8, %v1495_v18  ;;  %v1444_v43 = vadd.f32 %v1408_v63, %v1360_v54 }
 0x16f   : > { %v1227_v41 = vpop.f32.mrf.mxu2 }
 0x170   : > { %v1464_v44 = vadd.f32 %v2520_v29, %v1444_v43  ;;  %v1261_v52 = vadd.f32 %v1227_v41, %v1183_v21 }
 0x171   : > { %v1411_v10 = vpop.f32.mrf.mxu0 }
 0x172   : > { %v1480_v32 = vmax.f32 %v1464_v44, 0.0 }
 0x173   : > { %v1327_v55 = vpop.f32.mrf.mxu3  ;;  %v1154_v35 = vpop.f32.mrf.mxu1 }
 0x174   : > { %v1496_v60 = vpack.c.bf16 %v1480_v32, %v1480_v32  ;;  %v1361_v46 = vadd.f32 %v1327_v55, %v1261_v52  ;;  %v1185_v20 = vadd.f32 %v1154_v35, %v2431_v13 }
 0x176   : > { %1513 = vst.msk [vmem:[%s2527_s25 + $0xc] sm:$0xf] %vm1509_vm8, %v1496_v60  ;;  %v1445_v11 = vadd.f32 %v1411_v10, %v1361_v46 }
 0x177   : > { %v1229_v48 = vpop.f32.mrf.mxu2 }
 0x178   : > { %v1465_v49 = vadd.f32 %v2520_v29, %v1445_v11  ;;  %v1262_v3 = vadd.f32 %v1229_v48, %v1184_v45 }
 0x179   : > { %v1413_v0 = vpop.f32.mrf.mxu0 }
 0x17a   : > { %v1481_v47 = vmax.f32 %v1465_v49, 0.0 }
 0x17b   : > { %v1329_v56 = vpop.f32.mrf.mxu3  ;;  %v1156_v34 = vpop.f32.mrf.mxu1 }
 0x17c   : > { %v1497_v5 = vpack.c.bf16 %v1481_v47, %v1481_v47  ;;  %v1362_v8 = vadd.f32 %v1329_v56, %v1262_v3  ;;  %v1186_v37 = vadd.f32 %v1156_v34, %v2436_v28 }
 0x17e   : > { %1514 = vst.msk [vmem:[%s2527_s25 + $0x10] sm:$0xf] %vm1509_vm8, %v1497_v5  ;;  %v1446_v57 = vadd.f32 %v1413_v0, %v1362_v8 }
 0x17f   : > { %v1232_v2 = vpop.f32.mrf.mxu2 }
 0x180   : > { %v1466_v42 = vadd.f32 %v2520_v29, %v1446_v57  ;;  %v1263_v19 = vadd.f32 %v1232_v2, %v1185_v20 }
 0x181   : > { %v1416_v26 = vpop.f32.mrf.mxu0 }
 0x182   : > { %v1482_v59 = vmax.f32 %v1466_v42, 0.0 }
 0x183   : > { %v1332_v27 = vpop.f32.mrf.mxu3  ;;  %v1159_v4 = vpop.f32.mrf.mxu1 }
 0x184   : > { %v1498_v14 = vpack.c.bf16 %v1482_v59, %v1482_v59  ;;  %v1363_v16 = vadd.f32 %v1332_v27, %v1263_v19  ;;  %v1187_v22 = vadd.f32 %v1159_v4, %v2445_v25 }
 0x186   : > { %1515 = vst.msk [vmem:[%s2527_s25 + $0x14] sm:$0xf] %vm1509_vm8, %v1498_v14  ;;  %v1447_v38 = vadd.f32 %v1416_v26, %v1363_v16 }
 0x187   : > { %v1234_v24 = vpop.f32.mrf.mxu2 }
 0x188   : > { %v1467_v1 = vadd.f32 %v2520_v29, %v1447_v38  ;;  %v1264_v13 = vadd.f32 %v1234_v24, %v1186_v37 }
 0x189   : > { %v1418_v6 = vpop.f32.mrf.mxu0 }
 0x18a   : > { %v1483_v40 = vmax.f32 %v1467_v1, 0.0 }
 0x18b   : > { %v1334_v36 = vpop.f32.mrf.mxu3  ;;  %v1161_v53 = vpop.f32.mrf.mxu1 }
 0x18c   : > { %v1499_v62 = vpack.c.bf16 %v1483_v40, %v1483_v40  ;;  %v1364_v7 = vadd.f32 %v1334_v36, %v1264_v13  ;;  %v1188_v21 = vadd.f32 %v1161_v53, %v2450_v58 }
 0x18e   : > { %1516 = vst.msk [vmem:[%s2527_s25 + $0x18] sm:$0xf] %vm1509_vm8, %v1499_v62  ;;  %v1448_v17 = vadd.f32 %v1418_v6, %v1364_v7 }
 0x18f   : > { %v1237_v30 = vpop.f32.mrf.mxu2 }
 0x190   : > { %v1468_v33 = vadd.f32 %v2520_v29, %v1448_v17  ;;  %v1265_v28 = vadd.f32 %v1237_v30, %v1187_v22 }
 0x191   : > { %v1421_v63 = vpop.f32.mrf.mxu0 }
 0x192   : > { %v1484_v9 = vmax.f32 %v1468_v33, 0.0 }
 0x193   : > { %v1337_v31 = vpop.f32.mrf.mxu3  ;;  %v1164_v39 = vpop.f32.mrf.mxu1 }
 0x194   : > { %v1500_v18 = vpack.c.bf16 %v1484_v9, %v1484_v9  ;;  %v1365_v54 = vadd.f32 %v1337_v31, %v1265_v28  ;;  %v1189_v11 = vadd.f32 %v1164_v39, %v2472_v61 }
 0x196   : > { %1517 = vst.msk [vmem:[%s2527_s25 + $0x1c] sm:$0xf] %vm1509_vm8, %v1500_v18  ;;  %v1449_v43 = vadd.f32 %v1421_v63, %v1365_v54 }
 0x197   : > { %v1239_v41 = vpop.f32.mrf.mxu2 }
 0x198   : > { %v1469_v44 = vadd.f32 %v2520_v29, %v1449_v43  ;;  %v1266_v25 = vadd.f32 %v1239_v41, %v1188_v21 }
 0x199   : > { %v1423_v52 = vpop.f32.mrf.mxu0 }
 0x19a   : > { %v1485_v10 = vmax.f32 %v1469_v44, 0.0 }
 0x19b   : > { %v1339_v32 = vpop.f32.mrf.mxu3  ;;  %v1166_v55 = vpop.f32.mrf.mxu1 }
 0x19c   : > { %v1501_v35 = vpack.c.bf16 %v1485_v10, %v1485_v10  ;;  %v1366_v60 = vadd.f32 %v1339_v32, %v1266_v25  ;;  %v1190_v8 = vadd.f32 %v1166_v55, %v2482_v50 }
 0x19e   : > { %1518 = vst.msk [vmem:[%s2527_s25 + $0x20] sm:$0xf] %vm1509_vm8, %v1501_v35  ;;  %v1450_v46 = vadd.f32 %v1423_v52, %v1366_v60 }
 0x19f   : > { %v1242_v45 = vpop.f32.mrf.mxu2 }
 0x1a0   : > { %v1470_v48 = vadd.f32 %v2520_v29, %v1450_v46  ;;  %v1267_v58 = vadd.f32 %v1242_v45, %v1189_v11 }
 0x1a1   : > { %v1426_v49 = vpop.f32.mrf.mxu0 }
 0x1a2   : > { %v1486_v3 = vmax.f32 %v1470_v48, 0.0 }
 0x1a3   : > { %v1342_v0 = vpop.f32.mrf.mxu3  ;;  %v1169_v34 = vpop.f32.mrf.mxu1 }
 0x1a4   : > { %v1502_v47 = vpack.c.bf16 %v1486_v3, %v1486_v3  ;;  %v1367_v56 = vadd.f32 %v1342_v0, %v1267_v58  ;;  %v1191_v4 = vadd.f32 %v1169_v34, %v2495_v51 }
 0x1a6   : > { %1519 = vst.msk [vmem:[%s2527_s25 + $0x24] sm:$0xf] %vm1509_vm8, %v1502_v47  ;;  %v1451_v5 = vadd.f32 %v1426_v49, %v1367_v56 }
 0x1a7   : > { %v1244_v57 = vpop.f32.mrf.mxu2 }
 0x1a8   : > { %v1471_v20 = vadd.f32 %v2520_v29, %v1451_v5  ;;  %v1268_v61 = vadd.f32 %v1244_v57, %v1190_v8 }
 0x1a9   : > { %v1428_v2 = vpop.f32.mrf.mxu0 }
 0x1aa   : > { %v1487_v42 = vmax.f32 %v1471_v20, 0.0 }
 0x1ab   : > { %v1344_v19 = vpop.f32.mrf.mxu3  ;;  %v1171_v14 = vpop.f32.mrf.mxu1 }
 0x1ac   : > { %v1503_v26 = vpack.c.bf16 %v1487_v42, %v1487_v42  ;;  %v1368_v59 = vadd.f32 %v1344_v19, %v1268_v61  ;;  %v1192_v36 = vadd.f32 %v1171_v14, %v2504_v15 }
 0x1ae   : > { %1520 = vst.msk [vmem:[%s2527_s25 + $0x28] sm:$0xf] %vm1509_vm8, %v1503_v26  ;;  %v1452_v27 = vadd.f32 %v1428_v2, %v1368_v59 }
 0x1af   : > { %v1247_v16 = vpop.f32.mrf.mxu2 }
 0x1b0   : > { %v1472_v38 = vadd.f32 %v2520_v29, %v1452_v27  ;;  %v1269_v50 = vadd.f32 %v1247_v16, %v1191_v4 }
 0x1b1   : > { %v1431_v37 = vpop.f32.mrf.mxu0 }
 0x1b2   : > { %v1488_v24 = vmax.f32 %v1472_v38, 0.0 }
 0x1b3   : > { %v1347_v1 = vpop.f32.mrf.mxu3  ;;  %v1174_v7 = vpop.f32.mrf.mxu1 }
 0x1b4   : > { %v1504_v13 = vpack.c.bf16 %v1488_v24, %v1488_v24  ;;  %v1369_v6 = vadd.f32 %v1347_v1, %v1269_v50  ;;  %v1193_v9 = vadd.f32 %v1174_v7, %v2509_v23 }
 0x1b6   : > { %1521 = vst.msk [vmem:[%s2527_s25 + $0x2c] sm:$0xf] %vm1509_vm8, %v1504_v13  ;;  %v1453_v40 = vadd.f32 %v1431_v37, %v1369_v6 }
 0x1b7   : > { %v1249_v53 = vpop.f32.mrf.mxu2 }
 0x1b8   : > { %v1473_v62 = vadd.f32 %v2520_v29, %v1453_v40  ;;  %v1270_v51 = vadd.f32 %v1249_v53, %v1192_v36 }
 0x1b9   : > { %v1433_v17 = vpop.f32.mrf.mxu0 }
 0x1ba   : > { %v1489_v22 = vmax.f32 %v1473_v62, 0.0 }
 0x1bb   : > { %v1349_v30 = vpop.f32.mrf.mxu3  ;;  %v1176_v54 = vpop.f32.mrf.mxu1 }
 0x1bc   : > { %v1505_v33 = vpack.c.bf16 %v1489_v22, %v1489_v22  ;;  %v1370_v28 = vadd.f32 %v1349_v30, %v1270_v51  ;;  %v1194_v52 = vadd.f32 %v1176_v54, %v2514_v12 }
 0x1be   : > { %1522 = vst.msk [vmem:[%s2527_s25 + $0x30] sm:$0xf] %vm1509_vm8, %v1505_v33  ;;  %v1454_v63 = vadd.f32 %v1433_v17, %v1370_v28 }
 0x1bf   : > { %v1252_v31 = vpop.f32.mrf.mxu2 }
 0x1c0   : > { %v1474_v39 = vadd.f32 %v2520_v29, %v1454_v63  ;;  %v1271_v15 = vadd.f32 %v1252_v31, %v1193_v9 }
 0x1c1   : > { %v1436_v43 = vpop.f32.mrf.mxu0 }
 0x1c2   : > { %v1490_v18 = vmax.f32 %v1474_v39, 0.0 }
 0x1c3   : > { %v1352_v21 = vpop.f32.mrf.mxu3 }
 0x1c4   : > { %v1506_v41 = vpack.c.bf16 %v1490_v18, %v1490_v18  ;;  %v1371_v44 = vadd.f32 %v1352_v21, %v1271_v15 }
 0x1c6   : > { %1523 = vst.msk [vmem:[%s2527_s25 + $0x34] sm:$0xf] %vm1509_vm8, %v1506_v41  ;;  %v1455_v25 = vadd.f32 %v1436_v43, %v1371_v44 }
 0x1c7   : > { %v1254_v10 = vpop.f32.mrf.mxu2 }
 0x1c8   : > { %v1475_v23 = vadd.f32 %v2520_v29, %v1455_v25  ;;  %v1272_v32 = vadd.f32 %v1254_v10, %v1194_v52 }
 0x1c9   : > { %v1438_v11 = vpop.f32.mrf.mxu0 }
 0x1ca   : > { %v1491_v55 = vmax.f32 %v1475_v23, 0.0 }
 0x1cb   : > { %v1354_v35 = vpop.f32.mrf.mxu3 }
 0x1cc   : > { %v1507_v60 = vpack.c.bf16 %v1491_v55, %v1491_v55  ;;  %v1372_v46 = vadd.f32 %v1354_v35, %v1272_v32 }
 0x1ce   : > { %1524 = vst.msk [vmem:[%s2527_s25 + $0x38] sm:$0xf] %vm1509_vm8, %v1507_v60  ;;  %v1456_v45 = vadd.f32 %v1438_v11, %v1372_v46 }
 0x1d0   : > { %v1476_v48 = vadd.f32 %v2520_v29, %v1456_v45 }
 0x1d2   : > { %v1492_v58 = vmax.f32 %v1476_v48, 0.0 }
 0x1d4   : > { %v1508_v49 = vpack.c.bf16 %v1492_v58, %v1492_v58 }
 0x1d6   : > { %1525 = vst.msk [vmem:[%s2527_s25 + $0x3c] sm:$0xf] %vm1509_vm8, %v1508_v49 }
 0x1d7 PF: > { %s14_s19 = sadd.s32 1, %s1886_s19   ;;  %s2614_s15 = smov %s1878_s17 }
 0x1d8   : > { %p11_p9 = scmp.ge.s32.totalorder %s14_s19, 6   ;;  %s2615_s16 = smov %s1882_s18 }
 0x1d9   : > { %s2616_s17 = smov %s2619_s20  ;;  %s2617_s18 = smov %s2623_s21 }
 0x1da   :  { %13 = sbr.rel (!%p11_p9) target bundleno = 3 (0x3), region = 77 }

// kernel: double_oct_conv_forward.9
= control target key start
LH: loop header
LB: loop body
LE: loop exit
PB: predicated region body
PF: predicated region fallthrough
CT: control target
= control target key end

     0   :  { %s1157_s18 = smov 0   ;;  %s1159_s19 = smov 0   ;;  %s1405_s0 = inlined_call_operand.vmem [shape: bf16[2,10,10,4], index: 0, kind: input, shape index: {}]   ;;  %s1406_s1 = inlined_call_operand.vmem [shape: bf16[2,2,2,10,4], index: 1, kind: input, shape index: {}]   ;;  %s1407_s2 = inlined_call_operand.vmem [shape: bf16[9,4,4], index: 2, kind: input, shape index: {}]   ;;  %s1408_s3 = inlined_call_operand.vmem [shape: f32[1,4], index: 3, kind: input, shape index: {}]   ;;  %s1409_s4 = inlined_call_operand.vmem [shape: bf16[2,8,8,4], index: 4, kind: input, shape index: {}]   ;;  %s1410_s5 = inlined_call_operand.vmem [shape: f32[2,8,8,4], index: 5, kind: output, shape index: {}]  }
   0x1   :  { %s1161_s20 = smov 0   ;;  %s1163_s21 = smov 0  }
   0x2   :  { %s1165_s22 = smov 0  }
   0x3 LB: > { %s24_s23 = sadd.s32 1, %s1117_s20  ;;  %s27_s24 = sadd.s32 1, %s1121_s21  ;;  %s1125_s22 = sphi %s1165_s22, %s15_s22   ;;  %s1121_s21 = sphi %s1163_s21, %s1418_s21   ;;  %s1117_s20 = sphi %s1161_s20, %s1417_s20   ;;  %s1113_s19 = sphi %s1159_s19, %s1416_s19   ;;  %s1109_s18 = sphi %s1157_s18, %s1415_s18  }
   0x4   : > { %p25_p0 = scmp.ge.s32.totalorder %s24_s23, 2  ;;  %p988_p1 = scmp.ge.s32.totalorder %s1125_s22, 1 }
   0x5   : > { %p252_p2 = scmp.lt.s32.totalorder %s1125_s22, 5 }
   0x6   : > { %s1420_s23 = smov (%p25_p0, %s24_s23), 0  ;;  %s1422_s24 = smov (!%p25_p0, %s27_s24), %s1121_s21 }
   0x7   : > { %p253_p3 = pnand %p988_p1, %p252_p2  ;;  %p29_p4 = scmp.ge.s32.totalorder %s1422_s24, 2 }
   0x8   : > { %s1193_s27 = sshll.u32 (!%p253_p3), %s1109_s18, 2  ;;  %p318_p5 = scmp.lt.s32.totalorder (!%p253_p3), %s1113_s19, 1 }
   0x9   : > { %s1424_s24 = smov (%p29_p4, %s1422_s24), 0  ;;  %256 = sbr.rel (%p253_p3) target bundleno = 252 (0xfc), region = 40 }
   0xa   : > { %p320_p6 = scmp.lt.s32.totalorder (!%p253_p3), %s1193_s27, 9  ;;  %p335_p7 = scmp.lt.s32.totalorder (!%p253_p3), %s1109_s18, 1 }
   0xb   : > { %p345_p8 = scmp.lt.s32.totalorder (!%p253_p3), %s1193_s27, 7 }
   0xe   : > { %v1001_v0 = vld [vmem:[%s1407_s2 + $0x2] sm:$0x3]  ;;  %vm450_vm0 = vcmask 1041408   ;;  %s1426_s19 = smov (!%p318_p5, %s1113_s19), 1  ;;  %v375_v2 = vld [vmem:[%s1407_s2] sm:$0x3] }
   0xf   : > { %v452_v1 = vsel %vm450_vm0, %v1001_v0, 0  ;;  %v1010_v3 = vld [vmem:[%s1407_s2 + $0x4] sm:$0x3]  ;;  %s321_s7 = scalar_select %p320_p6, %s1193_s27, 9  ;;  %v490_v4 = vsel %vm450_vm0, %v375_v2, 0  ;;  %vm515_vm3 = vcmask 1042432  }
  0x10   : > { %461 = vmatpush.bf16.msra.mxu0 %v452_v1  ;;  %1044 = vmatpush.bf16.msra.mxu1 %v452_v1  ;;  %v549_v5 = vsel %vm450_vm0, %v1010_v3, 0  ;;  %v1013_v6 = vld [vmem:[%s1407_s2 + $0x6] sm:$0x3]  ;;  %s1045_s10 = smul.u32 20, %s1426_s19  ;;  %v1016_v8 = vld [vmem:[%s1407_s2 + $0x8] sm:$0x3] }
  0x11   : > { %558 = vmatpush.bf16.msra.mxu2 %v549_v5  ;;  %v587_v7 = vsel %vm450_vm0, %v1013_v6, 0  ;;  %v1023_v9 = vld [vmem:[%s1407_s2 + $0xc] sm:$0x3]  ;;  %s990_s15 = sshll.u32 %s321_s7, 1  ;;  %v638_v10 = vsel %vm450_vm0, %v1016_v8, 0  ;;  %vm516_vm4 = vcmask 1046532  }
  0x12   : > { %596 = vmatpush.bf16.msra.mxu3 %v587_v7  ;;  %v714_v11 = vsel %vm450_vm0, %v1023_v9, 0  ;;  %v1026_v12 = vld [vmem:[%s1407_s2 + $0xe] sm:$0x3]  ;;  %s324_s25 = sadd.s32 %s1045_s10, %s990_s15  ;;  %vm376_vm1 = vsmask.f32 3328  ;;  %s993_s6 = sshll.u32 %s1426_s19, 3  ;;  %vm1264_vm6 = vmor %vm515_vm3, %vm516_vm4 }
  0x13   : > { %v761_v13 = vsel %vm450_vm0, %v1026_v12, 0  ;;  %s991_s26 = sshll.u32 %s324_s25, 2  ;;  %vm377_vm2 = vsmask.f32 7440  ;;  %s1428_s18 = smov (!%p335_p7, %s1109_s18), 1  ;;  %vm443_vm7 = vcmask 31744  }
  0x14   : > { %499 = vmatpush.bf16.msrb.mxu1 %v490_v4  ;;  %647 = vmatpush.bf16.msrb.mxu0 %v638_v10  ;;  %s326_s30 = scalar_lea.vmem %s1405_s0, %s991_s26  ;;  %vm1257_vm5 = vmor %vm376_vm1, %vm377_vm2  ;;  %s992_s7 = sshll.u32 %s1428_s18, 2  ;;  %v1020_v10 = vld [vmem:[%s1407_s2 + $0xa] sm:$0x3] }
  0x15   : > { %723 = vmatpush.bf16.msrb.mxu2 %v714_v11  ;;  %v1230_v14 = vld [vmem:[%s326_s30] sm:$0xf]  ;;  %v364_v15 = vld [vmem:[%s326_s30 + $0x4] sm:$0x1]  ;;  %v1232_v16 = vld [vmem:[%s326_s30 + $0x8] sm:$0xf]  ;;  %s339_s8 = sadd.s32 %s993_s6, %s992_s7 }
  0x16   : > { %770 = vmatpush.bf16.msrb.mxu3 %v761_v13  ;;  %v366_v17 = vld [vmem:[%s326_s30 + $0xc] sm:$0x1]  ;;  %v380_v18 = vshrl.u32 %v1230_v14, 16  ;;  %v383_v19 = vshll.u32 %v1230_v14, 16  ;;  %v389_v20 = vshll.u32 %v364_v15, 16  ;;  %v394_v21 = vshrl.u32 %v1232_v16, 16 }
  0x17   : > { %v397_v22 = vshll.u32 %v1232_v16, 16  ;;  %v403_v23 = vshll.u32 %v366_v17, 16  ;;  %v1238_v24 = vld [vmem:[%s326_s30 + $0x10] sm:$0xf]  ;;  %v1240_v25 = vld [vmem:[%s326_s30 + $0x14] sm:$0x1]  ;;  %v478_v26 = vunpack.c.l.b16 %v1232_v16 }
  0x18   : > { %v382_v27 = vrot.slane %v380_v18, 4  ;;  %v385_v28 = vrot.slane %v383_v19, 5  ;;  %v391_v29 = vrot.slane %v389_v20, 5  ;;  %v396_v30 = vrot.slane %v394_v21, 4  ;;  %v1243_v31 = vld [vmem:[%s326_s30 + $0x18] sm:$0xf] }
  0x19   : > { %v399_v32 = vrot.slane %v397_v22, 5  ;;  %v405_v33 = vrot.slane %v403_v23, 5  ;;  %v1245_v34 = vld [vmem:[%s326_s30 + $0x1c] sm:$0x1]  ;;  %v408_v35 = vshrl.u32 %v1238_v24, 16  ;;  %v411_v36 = vshll.u32 %v1238_v24, 16 }
  0x1a   : > { %v386_v37 = vor.u32 %v385_v28, %v382_v27  ;;  %v417_v38 = vshll.u32 %v1240_v25, 16  ;;  %v422_v39 = vshrl.u32 %v1243_v31, 16  ;;  %v425_v40 = vshll.u32 %v1243_v31, 16  ;;  %s994_s18 = sshll.u32 %s339_s8, 2  ;;  %v1030_v13 = vld [vmem:[%s1407_s2 + $0x10] sm:$0x3] }
  0x1b   : > { %v400_v42 = vor.u32 %v399_v32, %v396_v30  ;;  %v410_v43 = vrot.slane %v408_v35, 4  ;;  %v413_v44 = vrot.slane %v411_v36, 5  ;;  %v431_v45 = vshll.u32 %v1245_v34, 16  ;;  %s1298_s13 = scalar_lea.vmem %s1406_s1, %s994_s18  ;;  %s1430_s27 = smov (!%p345_p8, %s1193_s27), 7 }
  0x1c   : > { %v387_v46 = vrot.slane %v386_v37, 4  ;;  %v419_v47 = vrot.slane %v417_v38, 5  ;;  %v424_v48 = vrot.slane %v422_v39, 4  ;;  %v427_v49 = vrot.slane %v425_v40, 5  ;;  %v1310_v19 = vld [vmem:[%s1298_s13] sm:$0xf]  ;;  %s1363_s16 = sadd.s32 %s993_s6, %s1430_s27 }
  0x1d   : > { %v401_v50 = vrot.slane %v400_v42, 4  ;;  %v414_v51 = vor.u32 %v413_v44, %v410_v43  ;;  %v433_v52 = vrot.slane %v431_v45, 5  ;;  %v1006_v54 = vrot.slane %v1230_v14, 9  ;;  %v372_v38 = vld [vmem:[%s1298_s13 + $0x4] sm:$0x1]  ;;  %s997_s17 = sshll.u32 %s1363_s16, 2 }
  0x1e   : > { %v392_v55 = vsel %vm1257_vm5, %v387_v46, %v391_v29  ;;  %v428_v56 = vor.u32 %v427_v49, %v424_v48  ;;  %v520_v57 = vrot.slane %v364_v15, 5  ;;  %v1007_v58 = vrot.slane %v1232_v16, 9  ;;  %s1369_s28 = scalar_lea.vmem %s1409_s4, %s997_s17  ;;  %s1000_s29 = sshll.u32 %s1363_s16, 3 }
  0x1f   : > { %v406_v59 = vsel %vm1257_vm5, %v401_v50, %v405_v33  ;;  %v437_v60 = vunpack.c.l.b16 %v392_v55  ;;  %v415_v61 = vrot.slane %v414_v51, 4  ;;  %v524_v62 = vrot.slane %v366_v17, 5  ;;  %s1379_s7 = scalar_lea.vmem %s1410_s5, %s1000_s29 }
  0x20   : > { %v438_v63 = vunpack.c.l.b16 %v406_v59  ;;  %v429_v0 = vrot.slane %v428_v56, 4  ;;  %v521_v1 = vsel %vm1264_vm6, %v1006_v54, %v520_v57  ;;  %v479_v2 = vunpack.c.l.b16 %v1238_v24 }
  0x21   : > { %v420_v3 = vsel %vm1257_vm5, %v415_v61, %v419_v47  ;;  %v1283_v4 = vsel %vm1264_vm6, %v1007_v58, %v524_v62  ;;  %v536_v5 = vunpack.c.l.b16 %v521_v1  ;;  %v680_v18 = vsel %vm450_vm0, %v1020_v10, 0 }
  0x22   : > { %v441_v6 = vpack.c.b16 %v438_v63, %v437_v60  ;;  %v434_v7 = vsel %vm1257_vm5, %v429_v0, %v433_v52  ;;  %v439_v8 = vunpack.c.l.b16 %v420_v3  ;;  %v537_v9 = vunpack.c.l.b16 %v1283_v4 }
  0x23   : > { %v440_v11 = vunpack.c.l.b16 %v434_v7  ;;  %v578_v12 = vpack.c.b16 %v479_v2, %v478_v26  ;;  %v799_v20 = vsel %vm450_vm0, %v1030_v13, 0  ;;  %v1008_v21 = vrot.slane %v1238_v24, 9 }
  0x24   : > { %1002 = vmatmul.msk.bf16.vlgmr.msra.gmra.mxu0 %vm443_vm7, %v441_v6  ;;  %v540_v15 = vpack.c.b16 %v537_v9, %v536_v5  ;;  %v528_v22 = vrot.slane %v1240_v25, 5  ;;  %v1009_v23 = vrot.slane %v1243_v31, 9  ;;  %v532_v27 = vrot.slane %v1245_v34, 5 }
  0x25   : > { %v442_v17 = vpack.c.b16 %v440_v11, %v439_v8  ;;  %1014 = vmatmul.msk.bf16.vlgmr.msra.gmra.mxu3 %vm443_vm7, %v578_v12  ;;  %808 = vmatpush.bf16.msra.mxu0 %v799_v20  ;;  %v613_v28 = vshrl.u32 %v1310_v19, 16  ;;  %v616_v29 = vshll.u32 %v1310_v19, 16  ;;  %v480_v33 = vunpack.c.l.b16 %v1243_v31 }
  0x26   : > { %1011 = vmatmul.msk.bf16.vlgmr.msra.gmra.mxu2 %vm443_vm7, %v540_v15  ;;  %v529_v30 = vsel %vm1264_vm6, %v1008_v21, %v528_v22  ;;  %v533_v32 = vsel %vm1264_vm6, %v1009_v23, %v532_v27  ;;  %v577_v25 = vunpack.c.l.b16 %v1310_v19  ;;  %v477_v39 = vunpack.c.l.b16 %v1230_v14  ;;  %v373_v14 = vld [vmem:[%s1298_s13 + $0x8] sm:$0xf] }
  0x27   : > { %1003 = vmatmul.msk.bf16.vlgmr.msra.gmra.mxu1 %vm443_vm7, %v442_v17  ;;  %v615_v35 = vrot.slane %v613_v28, 4  ;;  %v618_v36 = vrot.slane %v616_v29, 5  ;;  %v538_v37 = vunpack.c.l.b16 %v529_v30  ;;  %v539_v34 = vunpack.c.l.b16 %v533_v32 }
  0x28   : > { %689 = vmatpush.bf16.msra.mxu1 %v680_v18  ;;  %v629_v40 = vpack.c.b16 %v439_v8, %v438_v63  ;;  %v579_v42 = vpack.c.b16 %v577_v25, %v480_v33  ;;  %v622_v44 = vshll.u32 %v372_v38, 16  ;;  %v481_v46 = vpack.c.b16 %v478_v26, %v477_v39  ;;  %v374_v26 = vld [vmem:[%s1298_s13 + $0xc] sm:$0x1] }
  0x29   : > { %v619_v43 = vor.u32 %v618_v36, %v615_v35  ;;  %v541_v45 = vpack.c.b16 %v539_v34, %v538_v37  ;;  %v740_v49 = vshrl.u32 %v373_v14, 16  ;;  %v743_v50 = vshll.u32 %v373_v14, 16 }
  0x2a   : > { %v624_v47 = vrot.slane %v622_v44, 5  ;;  %v749_v56 = vshll.u32 %v374_v26, 16  ;;  %v482_v57 = vpack.c.b16 %v480_v33, %v479_v2  ;;  %v708_v62 = vunpack.c.l.b16 %v373_v14 }
  0x2b   : > { %v620_v31 = vrot.slane %v619_v43, 4  ;;  %v742_v52 = vrot.slane %v740_v49, 4  ;;  %v745_v16 = vrot.slane %v743_v50, 5  ;;  %v671_v24 = vpack.c.b16 %v538_v37, %v537_v9 }
  0x2c   : > { %v751_v59 = vrot.slane %v749_v56, 5  ;;  %v709_v0 = vpack.c.b16 %v708_v62, %v577_v25  ;;  %v1019_v1 = vrot.slane %v1310_v19, 9  ;;  %v666_v2 = vrot.slane %v372_v38, 5 }
  0x2d   : > { %v625_v48 = vsel %vm1257_vm5, %v620_v31, %v624_v47  ;;  %v746_v55 = vor.u32 %v745_v16, %v742_v52  ;;  %v1029_v3 = vrot.slane %v373_v14, 9  ;;  %v789_v5 = vrot.slane %v374_v26, 5  ;;  %v1086_v26 = vld [vmem:[%s1408_s3] ss:$0 sm:$0xff] }
  0x2e   : > { %v628_v51 = vunpack.c.l.b16 %v625_v48  ;;  %v667_v41 = vsel %vm1264_vm6, %v1019_v1, %v666_v2 }
  0x2f   : > { %v747_v58 = vrot.slane %v746_v55, 4  ;;  %v790_v4 = vsel %vm1264_vm6, %v1029_v3, %v789_v5  ;;  %v670_v6 = vunpack.c.l.b16 %v667_v41 }
  0x30   : > { %v630_v54 = vpack.c.b16 %v628_v51, %v440_v11  ;;  %v793_v7 = vunpack.c.l.b16 %v790_v4 }
  0x31   : > { %v752_v60 = vsel %vm1257_vm5, %v747_v58, %v751_v59  ;;  %v672_v9 = vpack.c.b16 %v670_v6, %v539_v34 }
  0x32   : > { %v755_v61 = vunpack.c.l.b16 %v752_v60  ;;  %v794_v8 = vpack.c.b16 %v793_v7, %v670_v6 }
  0x34   : > { %1017 = vmatmul.msk.bf16.vlgmr.msrb.gmra.mxu0 %vm443_vm7, %v629_v40  ;;  %v756_v63 = vpack.c.b16 %v755_v61, %v628_v51 }
  0x35   : > { %1015 = vmatmul.msk.bf16.gmra.mxu3 %vm443_vm7, %v579_v42 }
  0x36   : > { %1012 = vmatmul.msk.bf16.gmra.mxu2 %vm443_vm7, %v541_v45 }
  0x37   : > { %1004 = vmatmul.msk.bf16.vlgmr.msrb.gmra.mxu1 %vm443_vm7, %v481_v46  ;;  %v1036_v46 = vld [vmem:[%s1369_s28] sm:$0xff]  }
  0x38   : > { %v1037_v49 = vunpack.c.l.bf16 %v1036_v46 }
  0x44   : > { %1018 = vmatmul.msk.bf16.gmra.mxu0 %vm443_vm7, %v630_v54 }
  0x45   : > { %1027 = vmatmul.msk.bf16.vlgmr.msrb.gmra.mxu3 %vm443_vm7, %v442_v17 }
  0x46   : > { %1024 = vmatmul.msk.bf16.vlgmr.msrb.gmra.mxu2 %vm443_vm7, %v482_v57 }
  0x47   : > { %1005 = vmatmul.msk.bf16.gmra.mxu1 %vm443_vm7, %v482_v57 }
  0x54   : > { %1031 = vmatmul.msk.bf16.vlgmr.msra.gmra.mxu0 %vm443_vm7, %v541_v45 }
  0x55   : > { %1028 = vmatmul.msk.bf16.gmra.mxu3 %vm443_vm7, %v756_v63 }
  0x56   : > { %1025 = vmatmul.msk.bf16.gmra.mxu2 %vm443_vm7, %v709_v0 }
  0x57   : > { %1021 = vmatmul.msk.bf16.vlgmr.msra.gmra.mxu1 %vm443_vm7, %v671_v24  ;;  %v1038_v24 = vunpack.c.h.bf16 %v1036_v46 }
  0x64   : > { %1032 = vmatmul.msk.bf16.gmra.mxu0 %vm443_vm7, %v794_v8  ;;  %v1043_v8 = vld [vmem:[%s1369_s28 + $0x8] sm:$0xff]  }
  0x67   : > { %1022 = vmatmul.msk.bf16.gmra.mxu1 %vm443_vm7, %v672_v9 }
  0xa1   : > { %v463_v10 = vpop.f32.mrf.mxu0 }
  0xa4   : > { %v468_v11 = vpop.f32.mrf.mxu1 }
  0xa8   : > { %v598_v15 = vpop.f32.mrf.mxu3 }
  0xa9   : > { %v465_v12 = vpop.f32.mrf.mxu0  ;;  %v560_v13 = vpop.f32.mrf.mxu2 }
  0xac   : > { %v470_v17 = vpop.f32.mrf.mxu1 }
  0xb0   : > { %v600_v20 = vpop.f32.mrf.mxu3 }
  0xb1   : > { %v649_v18 = vpop.f32.mrf.mxu0  ;;  %v562_v19 = vpop.f32.mrf.mxu2 }
  0xb4   : > { %v501_v53 = vpop.f32.mrf.mxu1 }
  0xb5   : > { %v502_v32 = vadd.f32 %v501_v53, %v463_v10 }
  0xb7   : > { %v570_v35 = vadd.f32 %v560_v13, %v502_v32  ;;  %v1042_v32 = vunpack.c.h.bf16 %v1043_v8 }
  0xb8   : > { %v603_v27 = vpop.f32.mrf.mxu3 }
  0xb9   : > { %v651_v21 = vpop.f32.mrf.mxu0  ;;  %v565_v23 = vpop.f32.mrf.mxu2  ;;  %v608_v37 = vadd.f32 %v598_v15, %v570_v35 }
  0xbb   : > { %v659_v40 = vadd.f32 %v649_v18, %v608_v37 }
  0xbc   : > { %v503_v22 = vpop.f32.mrf.mxu1 }
  0xbd   : > { %v504_v34 = vadd.f32 %v503_v22, %v465_v12 }
  0xbf   : > { %v571_v42 = vadd.f32 %v562_v19, %v504_v34 }
  0xc0   : > { %v605_v33 = vpop.f32.mrf.mxu3 }
  0xc1   : > { %v654_v28 = vpop.f32.mrf.mxu0  ;;  %v567_v30 = vpop.f32.mrf.mxu2  ;;  %v609_v31 = vadd.f32 %v600_v20, %v571_v42 }
  0xc3   : > { %v660_v51 = vadd.f32 %v651_v21, %v609_v31 }
  0xc4   : > { %v506_v29 = vpop.f32.mrf.mxu1 }
  0xc5   : > { %v507_v47 = vadd.f32 %v506_v29, %v468_v11 }
  0xc7   : > { %v572_v52 = vadd.f32 %v565_v23, %v507_v47 }
  0xc8   : > { %v772_v39 = vpop.f32.mrf.mxu3 }
  0xc9   : > { %v656_v25 = vpop.f32.mrf.mxu0  ;;  %v725_v38 = vpop.f32.mrf.mxu2  ;;  %v610_v59 = vadd.f32 %v603_v27, %v572_v52 }
  0xcb   : > { %v661_v1 = vadd.f32 %v654_v28, %v610_v59 }
  0xcc   : > { %v508_v36 = vpop.f32.mrf.mxu1 }
  0xcd   : > { %v509_v60 = vadd.f32 %v508_v36, %v470_v17  ;;  %v1041_v17 = vunpack.c.l.bf16 %v1043_v8 }
  0xcf   : > { %v573_v2 = vadd.f32 %v567_v30, %v509_v60 }
  0xd0   : > { %v774_v54 = vpop.f32.mrf.mxu3 }
  0xd1   : > { %v810_v44 = vpop.f32.mrf.mxu0  ;;  %v727_v50 = vpop.f32.mrf.mxu2  ;;  %v611_v9 = vadd.f32 %v605_v33, %v573_v2 }
  0xd3   : > { %v662_v18 = vadd.f32 %v656_v25, %v611_v9 }
  0xd4   : > { %v691_v43 = vpop.f32.mrf.mxu1 }
  0xd5   : > { %v701_v45 = vadd.f32 %v691_v43, %v659_v40 }
  0xd7   : > { %v735_v14 = vadd.f32 %v725_v38, %v701_v45 }
  0xd8   : > { %v777_v7 = vpop.f32.mrf.mxu3 }
  0xd9   : > { %v782_v48 = vadd.f32 %v772_v39, %v735_v14  ;;  %v812_v58 = vpop.f32.mrf.mxu0  ;;  %v730_v5 = vpop.f32.mrf.mxu2 }
  0xdb   : > { %v820_v16 = vadd.f32 %v810_v44, %v782_v48 }
  0xdc   : > { %v693_v55 = vpop.f32.mrf.mxu1 }
  0xdd   : > { %v832_v56 = vadd.f32 %v1037_v49, %v820_v16  ;;  %v702_v57 = vadd.f32 %v693_v55, %v660_v51 }
  0xdf   : > { %v840_v61 = vadd.f32 %v1086_v26, %v832_v56  ;;  %v736_v62 = vadd.f32 %v727_v50, %v702_v57 }
  0xe0   : > { %v779_v28 = vpop.f32.mrf.mxu3 }
  0xe1   : > { %v844_v63 = vmax.f32 %v840_v61, 0.0  ;;  %v783_v0 = vadd.f32 %v774_v54, %v736_v62  ;;  %v815_v12 = vpop.f32.mrf.mxu0  ;;  %v732_v22 = vpop.f32.mrf.mxu2 }
  0xe3   : > { %848 = vst.msk [vmem:[%s1379_s7] sm:$0xff] %vm443_vm7, %v844_v63  ;;  %v821_v3 = vadd.f32 %v812_v58, %v783_v0 }
  0xe4   : > { %v696_v41 = vpop.f32.mrf.mxu1 }
  0xe5   : > { %v833_v4 = vadd.f32 %v1038_v24, %v821_v3  ;;  %v703_v6 = vadd.f32 %v696_v41, %v661_v1 }
  0xe7   : > { %v841_v10 = vadd.f32 %v1086_v26, %v833_v4  ;;  %v737_v11 = vadd.f32 %v730_v5, %v703_v6 }
  0xe9   : > { %v845_v13 = vmax.f32 %v841_v10, 0.0  ;;  %v784_v15 = vadd.f32 %v777_v7, %v737_v11  ;;  %v817_v33 = vpop.f32.mrf.mxu0 }
  0xeb   : > { %849 = vst.msk [vmem:[%s1379_s7 + $0x8] sm:$0xff] %vm443_vm7, %v845_v13  ;;  %v822_v19 = vadd.f32 %v815_v12, %v784_v15 }
  0xec   : > { %v698_v53 = vpop.f32.mrf.mxu1 }
  0xed   : > { %v834_v20 = vadd.f32 %v1041_v17, %v822_v19  ;;  %v704_v21 = vadd.f32 %v698_v53, %v662_v18 }
  0xef   : > { %v842_v23 = vadd.f32 %v1086_v26, %v834_v20  ;;  %v738_v27 = vadd.f32 %v732_v22, %v704_v21 }
  0xf1   : > { %v846_v29 = vmax.f32 %v842_v23, 0.0  ;;  %v785_v30 = vadd.f32 %v779_v28, %v738_v27 }
  0xf3   : > { %850 = vst.msk [vmem:[%s1379_s7 + $0x10] sm:$0xff] %vm443_vm7, %v846_v29  ;;  %v823_v35 = vadd.f32 %v817_v33, %v785_v30 }
  0xf5   : > { %v835_v36 = vadd.f32 %v1042_v32, %v823_v35 }
  0xf7   : > { %v843_v25 = vadd.f32 %v1086_v26, %v835_v36 }
  0xf9   : > { %v847_v37 = vmax.f32 %v843_v25, 0.0 }
  0xfb   : > { %851 = vst.msk [vmem:[%s1379_s7 + $0x18] sm:$0xff] %vm443_vm7, %v847_v37 }
  0xfc PF: > { %s15_s22 = sadd.s32 1, %s1125_s22   ;;  %s1415_s18 = smov %s1117_s20 }
  0xfd   : > { %p12_p9 = scmp.ge.s32.totalorder %s15_s22, 6   ;;  %s1416_s19 = smov %s1121_s21 }
  0xfe   : > { %s1417_s20 = smov %s1420_s23  ;;  %s1418_s21 = smov %s1424_s24 }
  0xff   :  { %14 = sbr.rel (!%p12_p9) target bundleno = 3 (0x3), region = 84 }

// kernel: double_oct_conv_forward.8
= control target key start
LH: loop header
LB: loop body
LE: loop exit
PB: predicated region body
PF: predicated region fallthrough
CT: control target
= control target key end

     0   :  { %s2043_s18 = smov 0   ;;  %s2045_s19 = smov 0   ;;  %s2746_s0 = inlined_call_operand.vmem [shape: bf16[2,18,18,4], index: 0, kind: input, shape index: {}]   ;;  %s2747_s1 = inlined_call_operand.vmem [shape: bf16[2,2,2,18,4], index: 1, kind: input, shape index: {}]   ;;  %s2748_s2 = inlined_call_operand.vmem [shape: bf16[9,4,4], index: 2, kind: input, shape index: {}]   ;;  %s2749_s3 = inlined_call_operand.vmem [shape: f32[1,4], index: 3, kind: input, shape index: {}]   ;;  %s2750_s4 = inlined_call_operand.vmem [shape: bf16[2,8,16,4], index: 4, kind: input, shape index: {}]   ;;  %s2751_s5 = inlined_call_operand.vmem [shape: f32[2,16,16,4], index: 5, kind: output, shape index: {}]  }
   0x1   :  { %s2047_s20 = smov 0   ;;  %s2049_s21 = smov 0  }
   0x2   :  { %s2051_s22 = smov 0  }
   0x3 LB: > { %s24_s23 = sadd.s32 1, %s2003_s20  ;;  %s27_s24 = sadd.s32 1, %s2007_s21  ;;  %s2011_s22 = sphi %s2051_s22, %s15_s22   ;;  %s2007_s21 = sphi %s2049_s21, %s2759_s21   ;;  %s2003_s20 = sphi %s2047_s20, %s2758_s20   ;;  %s1999_s19 = sphi %s2045_s19, %s2757_s19   ;;  %s1995_s18 = sphi %s2043_s18, %s2756_s18  }
   0x4   : > { %p25_p0 = scmp.ge.s32.totalorder %s24_s23, 2  ;;  %p1752_p1 = scmp.ge.s32.totalorder %s2011_s22, 1 }
   0x5   : > { %p253_p2 = scmp.lt.s32.totalorder %s2011_s22, 5 }
   0x6   : > { %s2761_s23 = smov (%p25_p0, %s24_s23), 0  ;;  %s2763_s24 = smov (!%p25_p0, %s27_s24), %s2007_s21 }
   0x7   : > { %p254_p3 = pnand %p1752_p1, %p253_p2  ;;  %p29_p4 = scmp.ge.s32.totalorder %s2763_s24, 2 }
   0x8   : > { %s2079_s27 = sshll.u32 (!%p254_p3), %s1995_s18, 3  ;;  %p321_p5 = scmp.lt.s32.totalorder (!%p254_p3), %s1999_s19, 1 }
   0x9   : > { %s2765_s24 = smov (%p29_p4, %s2763_s24), 0  ;;  %257 = sbr.rel (%p254_p3) target bundleno = 471 (0x1d7), region = 40 }
   0xa   : > { %p323_p6 = scmp.lt.s32.totalorder (!%p254_p3), %s2079_s27, 17  ;;  %p338_p7 = scmp.lt.s32.totalorder (!%p254_p3), %s1995_s18, 1 }
   0xb   : > { %p359_p9 = scmp.lt.s32.totalorder (!%p254_p3), %s2079_s27, 15 }
   0xe   : > { %v1764_v0 = vld [vmem:[%s2748_s2 + $0x2] sm:$0x3]  ;;  %vm645_vm0 = vcmask 1041408   ;;  %s2767_s19 = smov (!%p321_p5, %s1999_s19), 1  ;;  %v1821_v2 = vld [vmem:[%s2748_s2 + $0x4] sm:$0x3] }
   0xf   : > { %v647_v1 = vsel %vm645_vm0, %v1764_v0, 0  ;;  %s324_s30 = scalar_select %p323_p6, %s2079_s27, 17  ;;  %v932_v3 = vsel %vm645_vm0, %v1821_v2, 0  ;;  %v1830_v4 = vld [vmem:[%s2748_s2 + $0x6] sm:$0x3]  ;;  %vm620_vm3 = vcmask 31744  }
  0x10   : > { %1925 = vmatpush.bf16.msra.mxu1 %v647_v1  ;;  %1926 = vmatpush.bf16.msra.mxu2 %v647_v1  ;;  %s1929_s6 = smul.u32 54, %s2767_s19  ;;  %v398_v5 = vld [vmem:[%s2748_s2] sm:$0x3]  ;;  %v1843_v6 = vld [vmem:[%s2748_s2 + $0x8] sm:$0x3]  ;;  %v1010_v7 = vsel %vm645_vm0, %v1830_v4, 0 }
  0x11   : > { %1927 = vmatpush.bf16.msra.mxu3 %v647_v1  ;;  %656 = vmatpush.bf16.msra.mxu0 %v647_v1  ;;  %s1928_s7 = smul.u32 3, %s324_s30  ;;  %v763_v8 = vsel %vm645_vm0, %v398_v5, 0  ;;  %v1110_v9 = vsel %vm645_vm0, %v1843_v6, 0  ;;  %vm399_vm1 = vsmask.f32 3328  ;;  %vm822_vm5 = vcmask 1042432  }
  0x12   : > { %vm400_vm2 = vsmask.f32 7440  ;;  %vm823_vm6 = vcmask 1046532   ;;  %s339_s10 = scalar_select %p338_p7, %s1995_s18, 1 }
  0x13   : > { %s327_s14 = sadd.s32 %s1929_s6, %s1928_s7  ;;  %vm2144_vm4 = vmor %vm399_vm1, %vm400_vm2  ;;  %s1931_s12 = smul.u32 12, %s2767_s19 }
  0x14   : > { %941 = vmatpush.bf16.msrb.mxu2 %v932_v3  ;;  %s1754_s15 = sshll.u32 %s327_s14, 2  ;;  %772 = vmatpush.bf16.msrb.mxu1 %v763_v8  ;;  %vm2298_vm7 = vmor %vm822_vm5, %vm823_vm6  ;;  %s1930_s11 = smul.u32 6, %s339_s10 }
  0x15   : > { %1019 = vmatpush.bf16.msrb.mxu3 %v1010_v7  ;;  %s2106_s25 = scalar_lea.vmem %s2746_s0, %s1754_s15  ;;  %1119 = vmatpush.bf16.msrb.mxu0 %v1110_v9  ;;  %s1758_s26 = sshll.u32 %s2767_s19, 4 }
  0x16   : > { %v2109_v10 = vld [vmem:[%s2106_s25 + $0x18] sm:$0xf]  ;;  %v2112_v11 = vld [vmem:[%s2106_s25 + $0x1c] sm:$0xf]  ;;  %v2115_v12 = vld [vmem:[%s2106_s25 + $0x20] sm:$0x1]  ;;  %s342_s13 = sadd.s32 %s1931_s12, %s1930_s11 }
  0x17   : > { %v451_v13 = vshrl.u32 %v2109_v10, 16  ;;  %v454_v14 = vshll.u32 %v2109_v10, 16  ;;  %v460_v15 = vshll.u32 %v2112_v11, 16  ;;  %v464_v16 = vshrl.u32 %v2112_v11, 16  ;;  %v2122_v17 = vld [vmem:[%s2106_s25 + $0x30] sm:$0xf] }
  0x18   : > { %v470_v18 = vshll.u32 %v2115_v12, 16  ;;  %v2126_v19 = vld [vmem:[%s2106_s25 + $0x34] sm:$0xf]  ;;  %v2129_v20 = vld [vmem:[%s2106_s25 + $0x38] sm:$0x1]  ;;  %v499_v21 = vshrl.u32 %v2122_v17, 16 }
  0x19   : > { %v453_v22 = vrot.slane %v451_v13, 4  ;;  %v456_v23 = vrot.slane %v454_v14, 5  ;;  %v462_v24 = vrot.slane %v460_v15, 5  ;;  %v466_v25 = vrot.slane %v464_v16, 4  ;;  %v2133_v26 = vld [vmem:[%s2106_s25 + $0x48] sm:$0xf] }
  0x1a   : > { %v472_v27 = vrot.slane %v470_v18, 5  ;;  %v501_v28 = vrot.slane %v499_v21, 4  ;;  %v502_v29 = vshll.u32 %v2122_v17, 16  ;;  %v508_v30 = vshll.u32 %v2126_v19, 16  ;;  %v2140_v35 = vld [vmem:[%s2106_s25 + $0x4c] sm:$0xf] }
  0x1b   : > { %v457_v31 = vor.u32 %v456_v23, %v453_v22  ;;  %v467_v32 = vor.u32 %v466_v25, %v462_v24  ;;  %v512_v33 = vshrl.u32 %v2126_v19, 16  ;;  %v518_v34 = vshll.u32 %v2129_v20, 16  ;;  %v2151_v46 = vld [vmem:[%s2106_s25 + $0x50] sm:$0x1]  ;;  %v2160_v54 = vld [vmem:[%s2106_s25] sm:$0xf] }
  0x1c   : > { %v504_v37 = vrot.slane %v502_v29, 5  ;;  %v510_v38 = vrot.slane %v508_v30, 5  ;;  %v547_v39 = vshrl.u32 %v2133_v26, 16  ;;  %v550_v40 = vshll.u32 %v2133_v26, 16  ;;  %v2168_v2 = vld [vmem:[%s2106_s25 + $0x4] sm:$0xf] }
  0x1d   : > { %v458_v41 = vrot.slane %v457_v31, 4  ;;  %v468_v42 = vrot.slane %v467_v32, 4  ;;  %v514_v43 = vrot.slane %v512_v33, 4  ;;  %v520_v44 = vrot.slane %v518_v34, 5  ;;  %v2174_v8 = vld [vmem:[%s2106_s25 + $0x8] sm:$0x1] }
  0x1e   : > { %v505_v45 = vor.u32 %v504_v37, %v501_v28  ;;  %v549_v47 = vrot.slane %v547_v39, 4  ;;  %v552_v48 = vrot.slane %v550_v40, 5  ;;  %v556_v49 = vshll.u32 %v2140_v35, 16  ;;  %v2182_v16 = vld [vmem:[%s2106_s25 + $0x24] sm:$0xf]  ;;  %s1755_s14 = sshll.u32 %s342_s13, 2 }
  0x1f   : > { %v463_v50 = vsel %vm2144_vm4, %v458_v41, %v462_v24  ;;  %v473_v51 = vsel %vm2144_vm4, %v468_v42, %v472_v27  ;;  %v515_v52 = vor.u32 %v514_v43, %v510_v38  ;;  %v560_v53 = vshrl.u32 %v2140_v35, 16  ;;  %v2191_v29 = vld [vmem:[%s2106_s25 + $0x28] sm:$0xf]  ;;  %v2196_v33 = vld [vmem:[%s2106_s25 + $0x2c] sm:$0x1]  ;;  %s2432_s17 = scalar_lea.vmem %s2747_s1, %s1755_s14  ;;  %s2771_s27 = smov (!%p359_p9, %s2079_s27), 15 }
  0x20   : > { %v600_v55 = vunpack.c.l.b16 %v463_v50  ;;  %v601_v56 = vunpack.c.l.b16 %v473_v51  ;;  %v506_v57 = vrot.slane %v505_v45, 4  ;;  %v553_v58 = vor.u32 %v552_v48, %v549_v47  ;;  %v2203_v41 = vld [vmem:[%s2106_s25 + $0x3c] sm:$0xf]  ;;  %s1761_s8 = sshll.u32 %s2771_s27, 1  ;;  %s1762_s9 = sshll.u32 %s2767_s19, 5 }
  0x21   : > { %v516_v59 = vrot.slane %v515_v52, 4  ;;  %v558_v60 = vrot.slane %v556_v49, 5  ;;  %v562_v61 = vrot.slane %v560_v53, 4  ;;  %v566_v62 = vshll.u32 %v2151_v46, 16  ;;  %s363_s10 = sadd.s32 %s1762_s9, %s1761_s8 }
  0x22   : > { %v2163_v63 = vpack.c.b16 %v601_v56, %v600_v55  ;;  %v511_v0 = vsel %vm2144_vm4, %v506_v57, %v510_v38  ;;  %v554_v1 = vrot.slane %v553_v58, 4  ;;  %v403_v3 = vshrl.u32 %v2160_v54, 16  ;;  %v2211_v55 = vld [vmem:[%s2106_s25 + $0x40] sm:$0xf]  ;;  %s1763_s13 = sshll.u32 %s363_s10, 3 }
  0x23   : > { %v521_v4 = vsel %vm2144_vm4, %v516_v59, %v520_v44  ;;  %v604_v5 = vunpack.c.l.b16 %v511_v0  ;;  %v563_v6 = vor.u32 %v562_v61, %v558_v60  ;;  %v568_v7 = vrot.slane %v566_v62, 5  ;;  %v2223_v62 = vld [vmem:[%s2106_s25 + $0x54] sm:$0xf]  ;;  %s2665_s14 = scalar_lea.vmem %s2751_s5, %s1763_s13 }
  0x24   : > { %1767 = vmatmul.msk.bf16.vlgmr.msra.gmra.mxu1 %vm620_vm3, %v2163_v63  ;;  %v605_v9 = vunpack.c.l.b16 %v521_v4  ;;  %v559_v13 = vsel %vm2144_vm4, %v554_v1, %v558_v60  ;;  %v405_v14 = vrot.slane %v403_v3, 4  ;;  %v406_v15 = vshll.u32 %v2160_v54, 16  ;;  %v2219_v60 = vld [vmem:[%s2106_s25 + $0x44] sm:$0x1] }
  0x25   : > { %v564_v18 = vrot.slane %v563_v6, 4  ;;  %v608_v21 = vunpack.c.l.b16 %v559_v13  ;;  %v412_v22 = vshll.u32 %v2168_v2, 16  ;;  %v416_v23 = vshrl.u32 %v2168_v2, 16 }
  0x26   : > { %v2186_v24 = vpack.c.b16 %v605_v9, %v604_v5  ;;  %v408_v25 = vrot.slane %v406_v15, 5  ;;  %v422_v27 = vshll.u32 %v2174_v8, 16  ;;  %v830_v28 = vrot.slane %v2174_v8, 5 }
  0x27   : > { %v569_v30 = vsel %vm2144_vm4, %v564_v18, %v568_v7  ;;  %v414_v31 = vrot.slane %v412_v22, 5  ;;  %v418_v32 = vrot.slane %v416_v23, 4  ;;  %v475_v34 = vshrl.u32 %v2182_v16, 16 }
  0x28   : > { %1769 = vmatmul.msk.bf16.vlgmr.msra.gmra.mxu2 %vm620_vm3, %v2186_v24  ;;  %v609_v37 = vunpack.c.l.b16 %v569_v30  ;;  %v409_v38 = vor.u32 %v408_v25, %v405_v14  ;;  %v424_v39 = vrot.slane %v422_v27, 5  ;;  %v478_v40 = vshll.u32 %v2182_v16, 16  ;;  %v2234_v27 = vld [vmem:[%s2106_s25 + $0x58] sm:$0xf]  ;;  %v2237_v30 = vld [vmem:[%s2106_s25 + $0x5c] sm:$0x1] }
  0x29   : > { %v419_v42 = vor.u32 %v418_v32, %v414_v31  ;;  %v477_v43 = vrot.slane %v475_v34, 4  ;;  %v484_v44 = vshll.u32 %v2191_v29, 16  ;;  %v488_v45 = vshrl.u32 %v2191_v29, 16 }
  0x2a   : > { %v2207_v47 = vpack.c.b16 %v609_v37, %v608_v21  ;;  %v410_v48 = vrot.slane %v409_v38, 4  ;;  %v480_v49 = vrot.slane %v478_v40, 5  ;;  %v494_v50 = vshll.u32 %v2196_v33, 16  ;;  %v2242_v38 = vld [vmem:[%s2106_s25 + $0xc] sm:$0xf] }
  0x2b   : > { %v420_v51 = vrot.slane %v419_v42, 4  ;;  %v486_v52 = vrot.slane %v484_v44, 5  ;;  %v490_v53 = vrot.slane %v488_v45, 4  ;;  %v523_v56 = vshrl.u32 %v2203_v41, 16 }
  0x2c   : > { %1771 = vmatmul.msk.bf16.vlgmr.msra.gmra.mxu3 %vm620_vm3, %v2207_v47  ;;  %v415_v57 = vsel %vm2144_vm4, %v410_v48, %v414_v31  ;;  %v481_v58 = vor.u32 %v480_v49, %v477_v43  ;;  %v496_v59 = vrot.slane %v494_v50, 5  ;;  %v526_v61 = vshll.u32 %v2203_v41, 16 }
  0x2d   : > { %v425_v0 = vsel %vm2144_vm4, %v420_v51, %v424_v39  ;;  %v596_v1 = vunpack.c.l.b16 %v415_v57  ;;  %v491_v3 = vor.u32 %v490_v53, %v486_v52  ;;  %v525_v4 = vrot.slane %v523_v56, 4  ;;  %v2254_v53 = vld [vmem:[%s2106_s25 + $0x10] sm:$0xf] }
  0x2e   : > { %v597_v5 = vunpack.c.l.b16 %v425_v0  ;;  %v482_v6 = vrot.slane %v481_v58, 4  ;;  %v528_v7 = vrot.slane %v526_v61, 5  ;;  %v532_v9 = vshll.u32 %v2211_v55, 16  ;;  %v2258_v0 = vld [vmem:[%s2106_s25 + $0x14] sm:$0x1] }
  0x2f   : > { %v492_v13 = vrot.slane %v491_v3, 4  ;;  %v536_v14 = vshrl.u32 %v2211_v55, 16  ;;  %v542_v15 = vshll.u32 %v2219_v60, 16  ;;  %v571_v18 = vshrl.u32 %v2223_v62, 16 }
  0x30   : > { %v612_v21 = vpack.c.b16 %v597_v5, %v596_v1  ;;  %v487_v22 = vsel %vm2144_vm4, %v482_v6, %v486_v52  ;;  %v529_v23 = vor.u32 %v528_v7, %v525_v4  ;;  %v534_v25 = vrot.slane %v532_v9, 5 }
  0x31   : > { %v497_v31 = vsel %vm2144_vm4, %v492_v13, %v496_v59  ;;  %v602_v32 = vunpack.c.l.b16 %v487_v22  ;;  %v538_v34 = vrot.slane %v536_v14, 4  ;;  %v544_v37 = vrot.slane %v542_v15, 5 }
  0x32   : > { %1765 = vmatmul.msk.bf16.vlgmr.msra.gmra.mxu0 %vm620_vm3, %v612_v21  ;;  %v603_v39 = vunpack.c.l.b16 %v497_v31  ;;  %v530_v40 = vrot.slane %v529_v23, 4  ;;  %v573_v42 = vrot.slane %v571_v18, 4  ;;  %v574_v43 = vshll.u32 %v2223_v62, 16  ;;  %v1862_v31 = vld [vmem:[%s2748_s2 + $0xc] sm:$0x3] }
  0x33   : > { %v539_v44 = vor.u32 %v538_v34, %v534_v25  ;;  %v580_v45 = vshll.u32 %v2234_v27, 16  ;;  %v584_v48 = vshrl.u32 %v2234_v27, 16  ;;  %v590_v49 = vshll.u32 %v2237_v30, 16 }
  0x34   : > { %v2249_v50 = vpack.c.b16 %v603_v39, %v602_v32  ;;  %v535_v51 = vsel %vm2144_vm4, %v530_v40, %v534_v25  ;;  %v576_v52 = vrot.slane %v574_v43, 5  ;;  %v427_v56 = vshrl.u32 %v2242_v38, 16  ;;  %v1875_v40 = vld [vmem:[%s2748_s2 + $0xe] sm:$0x3] }
  0x35   : > { %v540_v57 = vrot.slane %v539_v44, 4  ;;  %v606_v58 = vunpack.c.l.b16 %v535_v51  ;;  %v582_v59 = vrot.slane %v580_v45, 5  ;;  %v586_v61 = vrot.slane %v584_v48, 4 }
  0x36   : > { %1768 = vmatmul.msk.bf16.gmra.mxu1 %vm620_vm3, %v2249_v50  ;;  %v577_v1 = vor.u32 %v576_v52, %v573_v42  ;;  %v592_v3 = vrot.slane %v590_v49, 5  ;;  %v429_v4 = vrot.slane %v427_v56, 4  ;;  %v430_v5 = vshll.u32 %v2242_v38, 16  ;;  %v1853_v42 = vld [vmem:[%s2748_s2 + $0xa] sm:$0x3] }
  0x37   : > { %v545_v6 = vsel %vm2144_vm4, %v540_v57, %v544_v37  ;;  %v587_v7 = vor.u32 %v586_v61, %v582_v59  ;;  %v436_v9 = vshll.u32 %v2254_v53, 16  ;;  %v440_v13 = vshrl.u32 %v2254_v53, 16  ;;  %v1885_v56 = vld [vmem:[%s2748_s2 + $0x10] sm:$0x3] }
  0x38   : > { %v607_v14 = vunpack.c.l.b16 %v545_v6  ;;  %v578_v15 = vrot.slane %v577_v1, 4  ;;  %v432_v18 = vrot.slane %v430_v5, 5  ;;  %v446_v21 = vshll.u32 %v2258_v0, 16 }
  0x39   : > { %v588_v22 = vrot.slane %v587_v7, 4  ;;  %v438_v23 = vrot.slane %v436_v9, 5  ;;  %v442_v25 = vrot.slane %v440_v13, 4  ;;  %v1813_v51 = vrot.slane %v2160_v54, 9 }
  0x3a   : > { %v2271_v32 = vpack.c.b16 %v607_v14, %v606_v58  ;;  %v583_v34 = vsel %vm2144_vm4, %v578_v15, %v582_v59  ;;  %v433_v37 = vor.u32 %v432_v18, %v429_v4  ;;  %v448_v39 = vrot.slane %v446_v21, 5  ;;  %v1896_v15 = vld [vmem:[%s2106_s25] sm:$0xff] }
  0x3b   : > { %v593_v43 = vsel %vm2144_vm4, %v588_v22, %v592_v3  ;;  %v610_v44 = vunpack.c.l.b16 %v583_v34  ;;  %v443_v45 = vor.u32 %v442_v25, %v438_v23  ;;  %v827_v52 = vrot.slane %v2168_v2, 5 }
  0x3c   : > { %1770 = vmatmul.msk.bf16.gmra.mxu2 %vm620_vm3, %v2271_v32  ;;  %v611_v48 = vunpack.c.l.b16 %v593_v43  ;;  %v434_v49 = vrot.slane %v433_v37, 4  ;;  %v1272_v58 = vsel %vm645_vm0, %v1862_v31, 0  ;;  %v1372_v59 = vsel %vm645_vm0, %v1875_v40, 0 }
  0x3d   : > { %v444_v57 = vrot.slane %v443_v45, 4  ;;  %v1194_v61 = vsel %vm645_vm0, %v1853_v42, 0  ;;  %v829_v2 = vrot.slane %v827_v52, 4  ;;  %1281 = vmatpush.bf16.msra.mxu2 %v1272_v58  ;;  %1381 = vmatpush.bf16.msra.mxu3 %v1372_v59  ;;  %v1456_v6 = vsel %vm645_vm0, %v1885_v56, 0  ;;  %v1897_v42 = vld [vmem:[%s2106_s25 + $0xc] sm:$0xff] }
  0x3e   : > { %v2293_v1 = vpack.c.b16 %v611_v48, %v610_v44  ;;  %v439_v3 = vsel %vm2144_vm4, %v434_v49, %v438_v23  ;;  %1203 = vmatpush.bf16.msra.mxu1 %v1194_v61  ;;  %1465 = vmatpush.bf16.msra.mxu0 %v1456_v6  ;;  %v828_v9 = vsel %vm2298_vm7, %v1813_v51, %v827_v52  ;;  %v1815_v22 = vrot.slane %v2109_v10, 9 }
  0x3f   : > { %v449_v4 = vsel %vm2144_vm4, %v444_v57, %v448_v39  ;;  %v598_v5 = vunpack.c.l.b16 %v439_v3  ;;  %v831_v13 = vsel %vm2298_vm7, %v829_v2, %v830_v28  ;;  %v883_v18 = vunpack.c.l.b16 %v828_v9  ;;  %v2374_v3 = vld [vmem:[%s2106_s25 + $0x30] sm:$0xff] }
  0x40   : > { %1772 = vmatmul.msk.bf16.gmra.mxu3 %vm620_vm3, %v2293_v1  ;;  %v599_v7 = vunpack.c.l.b16 %v449_v4  ;;  %v884_v21 = vunpack.c.l.b16 %v831_v13  ;;  %v841_v23 = vrot.slane %v2112_v11, 5  ;;  %v844_v25 = vrot.slane %v2115_v12, 5  ;;  %v2394_v13 = vld [vmem:[%s2106_s25 + $0x3c] sm:$0xff] }
  0x41   : > { %v834_v34 = vrot.slane %v2254_v53, 5  ;;  %v1814_v10 = vrot.slane %v2242_v38, 9  ;;  %v837_v12 = vrot.slane %v2258_v0, 5  ;;  %v1816_v38 = vrot.slane %v2182_v16, 9  ;;  %v2349_v16 = vld [vmem:[%s2106_s25 + $0x18] sm:$0xff] }
  0x42   : > { %v613_v14 = vpack.c.b16 %v599_v7, %v598_v5  ;;  %v899_v31 = vpack.c.b16 %v884_v21, %v883_v18  ;;  %v842_v8 = vsel %vm2298_vm7, %v1815_v22, %v841_v23  ;;  %v843_v28 = vrot.slane %v841_v23, 4 }
  0x43   : > { %v887_v37 = vunpack.c.l.b16 %v842_v8  ;;  %v836_v11 = vrot.slane %v834_v34, 4  ;;  %v835_v53 = vsel %vm2298_vm7, %v1814_v10, %v834_v34  ;;  %v848_v0 = vrot.slane %v2191_v29, 5 }
  0x44   : > { %1766 = vmatmul.msk.bf16.gmra.mxu0 %vm620_vm3, %v613_v14  ;;  %v845_v39 = vsel %vm2298_vm7, %v843_v28, %v844_v25  ;;  %v885_v45 = vunpack.c.l.b16 %v835_v53  ;;  %v851_v49 = vrot.slane %v2196_v33, 5  ;;  %v2362_v33 = vld [vmem:[%s2106_s25 + $0x24] sm:$0xff]  ;;  %v855_v61 = vrot.slane %v2126_v19, 5 }
  0x45   : > { %v888_v40 = vunpack.c.l.b16 %v845_v39  ;;  %v838_v44 = vsel %vm2298_vm7, %v836_v11, %v837_v12  ;;  %v849_v52 = vsel %vm2298_vm7, %v1816_v38, %v848_v0  ;;  %v850_v56 = vrot.slane %v848_v0, 4  ;;  %v2417_v25 = vld [vmem:[%s2106_s25 + $0x48] sm:$0xff]  ;;  %v2437_v39 = vld [vmem:[%s2432_s17] sm:$0xf]  ;;  %v2458_v38 = vld [vmem:[%s2106_s25 + $0x54] sm:$0xff]  ;;  %s1756_s25 = sshll.u32 %s1995_s18, 2 }
  0x46   : > { %1805 = vmatmul.msk.bf16.vlgmr.msrb.gmra.mxu1 %vm620_vm3, %v1896_v15  ;;  %v886_v48 = vunpack.c.l.b16 %v838_v44  ;;  %v889_v57 = vunpack.c.l.b16 %v849_v52  ;;  %v1817_v2 = vrot.slane %v2122_v17, 9  ;;  %v857_v4 = vrot.slane %v855_v61, 4  ;;  %p348_p8 = scmp.lt.s32.totalorder %s1756_s25, 7 }
  0x47   : > { %v2328_v43 = vpack.c.b16 %v888_v40, %v887_v37  ;;  %v852_v58 = vsel %vm2298_vm7, %v850_v56, %v851_v49  ;;  %v858_v5 = vrot.slane %v2129_v20, 5  ;;  %v862_v20 = vrot.slane %v2211_v55, 5  ;;  %v2440_v40 = vld [vmem:[%s2432_s17 + $0x4] sm:$0xf] }
  0x48   : > { %v2340_v51 = vpack.c.b16 %v886_v48, %v885_v45  ;;  %v890_v59 = vunpack.c.l.b16 %v852_v58  ;;  %v856_v6 = vsel %vm2298_vm7, %v1817_v2, %v855_v61  ;;  %v865_v18 = vrot.slane %v2219_v60, 5  ;;  %v2463_v61 = vld [vmem:[%s2432_s17 + $0x8] sm:$0x1]  ;;  %s2769_s25 = smov (!%p348_p8, %s1756_s25), 7 }
  0x49   : > { %v859_v19 = vsel %vm2298_vm7, %v857_v4, %v858_v5  ;;  %v891_v7 = vunpack.c.l.b16 %v856_v6  ;;  %v864_v15 = vrot.slane %v862_v20, 4  ;;  %v869_v23 = vrot.slane %v2140_v35, 5  ;;  %s1757_s18 = sshll.u32 %s2769_s25, 1 }
  0x4a   : > { %v2351_v29 = vpack.c.b16 %v890_v59, %v889_v57  ;;  %v892_v9 = vunpack.c.l.b16 %v859_v19  ;;  %v872_v28 = vrot.slane %v2151_v46, 5  ;;  %v1078_v10 = vshrl.u32 %v2437_v39, 16  ;;  %s352_s28 = sadd.s32 %s1758_s26, %s1757_s18 }
  0x4b   : > { %v866_v55 = vsel %vm2298_vm7, %v864_v15, %v865_v18  ;;  %v871_v8 = vrot.slane %v869_v23, 4  ;;  %v1081_v11 = vshll.u32 %v2437_v39, 16  ;;  %v1087_v12 = vshll.u32 %v2440_v40, 16  ;;  %s1759_s29 = sshll.u32 %s352_s28, 2 }
  0x4c   : > { %1822 = vmatmul.msk.bf16.vlgmr.msrb.gmra.mxu2 %vm620_vm3, %v899_v31  ;;  %v2388_v17 = vpack.c.b16 %v892_v9, %v891_v7  ;;  %v1819_v31 = vrot.slane %v2133_v26, 9  ;;  %v876_v44 = vrot.slane %v2234_v27, 5  ;;  %v1091_v45 = vshrl.u32 %v2440_v40, 16  ;;  %s2649_s7 = scalar_lea.vmem %s2750_s4, %s1759_s29 }
  0x4d   : > { %v873_v37 = vsel %vm2298_vm7, %v871_v8, %v872_v28  ;;  %v1080_v0 = vrot.slane %v1078_v10, 4  ;;  %v1083_v49 = vrot.slane %v1081_v11, 5  ;;  %v1089_v52 = vrot.slane %v1087_v12, 5  ;;  %v2495_v8 = vld [vmem:[%s2432_s17] sm:$0xff] }
  0x4e   : > { %v870_v35 = vsel %vm2298_vm7, %v1819_v31, %v869_v23  ;;  %v896_v46 = vunpack.c.l.b16 %v873_v37  ;;  %v1820_v56 = vrot.slane %v2223_v62, 9  ;;  %v878_v57 = vrot.slane %v876_v44, 4 }
  0x4f   : > { %v895_v26 = vunpack.c.l.b16 %v870_v35  ;;  %v879_v58 = vrot.slane %v2237_v30, 5  ;;  %v1093_v59 = vrot.slane %v1091_v45, 4  ;;  %v1084_v4 = vor.u32 %v1083_v49, %v1080_v0 }
  0x50   : > { %1835 = vmatmul.msk.bf16.vlgmr.msrb.gmra.mxu3 %vm620_vm3, %v1897_v42  ;;  %v877_v5 = vsel %vm2298_vm7, %v1820_v56, %v876_v44  ;;  %v1097_v19 = vshll.u32 %v2463_v61, 16 }
  0x51   : > { %v880_v6 = vsel %vm2298_vm7, %v878_v57, %v879_v58  ;;  %v1094_v62 = vor.u32 %v1093_v59, %v1089_v52  ;;  %v897_v7 = vunpack.c.l.b16 %v877_v5 }
  0x52   : > { %v898_v9 = vunpack.c.l.b16 %v880_v6  ;;  %v1099_v18 = vrot.slane %v1097_v19, 5 }
  0x53   : > { %v1095_v15 = vrot.slane %v1094_v62, 4 }
  0x54   : > { %1844 = vmatmul.msk.bf16.vlgmr.msrb.gmra.mxu0 %vm620_vm3, %v613_v14  ;;  %v1818_v14 = vrot.slane %v2203_v41, 9  ;;  %v894_v41 = vunpack.c.l.b16 %v866_v55  ;;  %v2482_v55 = vpack.c.b16 %v898_v9, %v897_v7 }
  0x55   : > { %v1100_v23 = vsel %vm2144_vm4, %v1095_v15, %v1099_v18 }
  0x56   : > { %1806 = vmatmul.msk.bf16.gmra.mxu1 %vm620_vm3, %v1897_v42  ;;  %v863_v21 = vsel %vm2298_vm7, %v1818_v14, %v862_v20  ;;  %v2444_v42 = vpack.c.b16 %v896_v46, %v895_v26  ;;  %v1085_v14 = vrot.slane %v1084_v4, 4  ;;  %v1104_v35 = vunpack.c.l.b16 %v1100_v23 }
  0x57   : > { %v893_v22 = vunpack.c.l.b16 %v863_v21 }
  0x59   : > { %v2410_v60 = vpack.c.b16 %v894_v41, %v893_v22  ;;  %v1090_v41 = vsel %vm2144_vm4, %v1085_v14, %v1089_v52 }
  0x5a   : > { %v1103_v28 = vunpack.c.l.b16 %v1090_v41 }
  0x5c   : > { %1823 = vmatmul.msk.bf16.gmra.mxu2 %vm620_vm3, %v2340_v51  ;;  %v2501_v26 = vpack.c.b16 %v1104_v35, %v1103_v28 }
  0x60   : > { %1836 = vmatmul.msk.bf16.gmra.mxu3 %vm620_vm3, %v2349_v16 }
  0x64   : > { %1845 = vmatmul.msk.bf16.gmra.mxu0 %vm620_vm3, %v2163_v63 }
  0x66   : > { %1807 = vmatmul.msk.bf16.gmra.mxu1 %vm620_vm3, %v2349_v16 }
  0x6c   : > { %1824 = vmatmul.msk.bf16.gmra.mxu2 %vm620_vm3, %v2328_v43 }
  0x70   : > { %1837 = vmatmul.msk.bf16.gmra.mxu3 %vm620_vm3, %v2362_v33 }
  0x74   : > { %1846 = vmatmul.msk.bf16.gmra.mxu0 %vm620_vm3, %v2249_v50 }
  0x76   : > { %1808 = vmatmul.msk.bf16.gmra.mxu1 %vm620_vm3, %v2362_v33 }
  0x7c   : > { %1825 = vmatmul.msk.bf16.gmra.mxu2 %vm620_vm3, %v2351_v29 }
  0x80   : > { %1838 = vmatmul.msk.bf16.gmra.mxu3 %vm620_vm3, %v2374_v3 }
  0x84   : > { %1847 = vmatmul.msk.bf16.gmra.mxu0 %vm620_vm3, %v2186_v24 }
  0x86   : > { %1809 = vmatmul.msk.bf16.gmra.mxu1 %vm620_vm3, %v2374_v3 }
  0x8c   : > { %1826 = vmatmul.msk.bf16.gmra.mxu2 %vm620_vm3, %v2388_v17 }
  0x90   : > { %1839 = vmatmul.msk.bf16.gmra.mxu3 %vm620_vm3, %v2394_v13 }
  0x94   : > { %1848 = vmatmul.msk.bf16.gmra.mxu0 %vm620_vm3, %v2271_v32 }
  0x96   : > { %1810 = vmatmul.msk.bf16.gmra.mxu1 %vm620_vm3, %v2394_v13 }
  0x9c   : > { %1827 = vmatmul.msk.bf16.gmra.mxu2 %vm620_vm3, %v2410_v60 }
  0xa0   : > { %1840 = vmatmul.msk.bf16.gmra.mxu3 %vm620_vm3, %v2417_v25 }
  0xa1   : > { %v2423_v34 = vpop.f32.mrf.mxu1 }
  0xa4   : > { %1849 = vmatmul.msk.bf16.gmra.mxu0 %vm620_vm3, %v2207_v47 }
  0xa6   : > { %1811 = vmatmul.msk.bf16.gmra.mxu1 %vm620_vm3, %v2417_v25 }
  0xa9   : > { %v2449_v53 = vpop.f32.mrf.mxu1 }
  0xab   : > { %v2453_v48 = vpop.f32.mrf.mxu2 }
  0xac   : > { %1828 = vmatmul.msk.bf16.gmra.mxu2 %vm620_vm3, %v2444_v42 }
  0xaf   : > { %v658_v27 = vpop.f32.mrf.mxu0  ;;  %v2465_v2 = vpop.f32.mrf.mxu3 }
  0xb0   : > { %1841 = vmatmul.msk.bf16.gmra.mxu3 %vm620_vm3, %v2458_v38 }
  0xb3   : > { %v2474_v30 = vpop.f32.mrf.mxu1  ;;  %v2478_v20 = vpop.f32.mrf.mxu2 }
  0xb4   : > { %1850 = vmatmul.msk.bf16.gmra.mxu0 %vm620_vm3, %v2293_v1 }
  0xb6   : > { %1812 = vmatmul.msk.bf16.gmra.mxu1 %vm620_vm3, %v2458_v38 }
  0xb7   : > { %v660_v21 = vpop.f32.mrf.mxu0  ;;  %v2484_v22 = vpop.f32.mrf.mxu3 }
  0xbb   : > { %v2490_v31 = vpop.f32.mrf.mxu1 }
  0xbc   : > { %1829 = vmatmul.msk.bf16.gmra.mxu2 %vm620_vm3, %v2482_v55 }
  0xbf   : > { %v2497_v37 = vpop.f32.mrf.mxu2 }
  0xc0   : > { %1842 = vmatmul.msk.bf16.gmra.mxu3 %vm620_vm3, %v2495_v8 }
  0xc1   : > { %v663_v46 = vpop.f32.mrf.mxu0 }
  0xc3   : > { %v2503_v10 = vpop.f32.mrf.mxu3  ;;  %v774_v11 = vpop.f32.mrf.mxu1 }
  0xc4   : > { %1851 = vmatmul.msk.bf16.gmra.mxu0 %vm620_vm3, %v2501_v26  ;;  %v775_v12 = vadd.f32 %v774_v11, %v658_v27 }
  0xc6   : > { %1854 = vmatmul.msk.bf16.vlgmr.msra.gmra.mxu1 %vm620_vm3, %v2340_v51 }
  0xc7   : > { %v2509_v44 = vpop.f32.mrf.mxu2 }
  0xc9   : > { %v665_v45 = vpop.f32.mrf.mxu0 }
  0xcb   : > { %v2511_v0 = vpop.f32.mrf.mxu3  ;;  %v776_v49 = vpop.f32.mrf.mxu1 }
  0xcc   : > { %1867 = vmatmul.msk.bf16.vlgmr.msra.gmra.mxu2 %vm620_vm3, %v2349_v16  ;;  %v777_v52 = vadd.f32 %v776_v49, %v660_v21 }
  0xcf   : > { %v943_v56 = vpop.f32.mrf.mxu2 }
  0xd0   : > { %1876 = vmatmul.msk.bf16.vlgmr.msra.gmra.mxu3 %vm620_vm3, %v2163_v63  ;;  %v983_v57 = vadd.f32 %v943_v56, %v775_v12 }
  0xd1   : > { %v1121_v58 = vpop.f32.mrf.mxu0 }
  0xd3   : > { %v1021_v59 = vpop.f32.mrf.mxu3  ;;  %v779_v27 = vpop.f32.mrf.mxu1 }
  0xd4   : > { %1886 = vmatmul.msk.bf16.vlgmr.msra.gmra.mxu0 %vm620_vm3, %v2328_v43  ;;  %v1061_v51 = vadd.f32 %v1021_v59, %v983_v57  ;;  %v780_v4 = vadd.f32 %v779_v27, %v663_v46 }
  0xd6   : > { %1855 = vmatmul.msk.bf16.gmra.mxu1 %vm620_vm3, %v2328_v43  ;;  %v2521_v5 = vadd.f32 %v1121_v58, %v1061_v51 }
  0xd7   : > { %v945_v16 = vpop.f32.mrf.mxu2 }
  0xd8   : > { %v984_v6 = vadd.f32 %v945_v16, %v777_v52 }
  0xd9   : > { %v1123_v62 = vpop.f32.mrf.mxu0 }
  0xdb   : > { %v1023_v19 = vpop.f32.mrf.mxu3  ;;  %v781_v7 = vpop.f32.mrf.mxu1 }
  0xdc   : > { %v1062_v63 = vadd.f32 %v1023_v19, %v984_v6  ;;  %1868 = vmatmul.msk.bf16.gmra.mxu2 %vm620_vm3, %v2362_v33  ;;  %v782_v9 = vadd.f32 %v781_v7, %v665_v45 }
  0xde   : > { %v2525_v14 = vadd.f32 %v1123_v62, %v1062_v63 }
  0xdf   : > { %v948_v15 = vpop.f32.mrf.mxu2 }
  0xe0   : > { %1877 = vmatmul.msk.bf16.gmra.mxu3 %vm620_vm3, %v2249_v50  ;;  %v985_v18 = vadd.f32 %v948_v15, %v780_v4 }
  0xe1   : > { %v1126_v43 = vpop.f32.mrf.mxu0 }
  0xe3   : > { %v1026_v21 = vpop.f32.mrf.mxu3  ;;  %v784_v41 = vpop.f32.mrf.mxu1 }
  0xe4   : > { %1887 = vmatmul.msk.bf16.gmra.mxu0 %vm620_vm3, %v2351_v29  ;;  %v1063_v23 = vadd.f32 %v1026_v21, %v985_v18  ;;  %v785_v28 = vadd.f32 %v784_v41, %v2423_v34 }
  0xe6   : > { %1856 = vmatmul.msk.bf16.gmra.mxu1 %vm620_vm3, %v2351_v29  ;;  %v2534_v33 = vadd.f32 %v1126_v43, %v1063_v23 }
  0xe7   : > { %v950_v35 = vpop.f32.mrf.mxu2 }
  0xe8   : > { %v986_v46 = vadd.f32 %v950_v35, %v782_v9 }
  0xe9   : > { %v1128_v11 = vpop.f32.mrf.mxu0 }
  0xeb   : > { %v1028_v12 = vpop.f32.mrf.mxu3  ;;  %v786_v50 = vpop.f32.mrf.mxu1 }
  0xec   : > { %v1064_v45 = vadd.f32 %v1028_v12, %v986_v46  ;;  %1869 = vmatmul.msk.bf16.gmra.mxu2 %vm620_vm3, %v2374_v3  ;;  %v787_v49 = vadd.f32 %v786_v50, %v2449_v53 }
  0xee   : > { %v2539_v52 = vadd.f32 %v1128_v11, %v1064_v45 }
  0xef   : > { %v953_v56 = vpop.f32.mrf.mxu2 }
  0xf0   : > { %1878 = vmatmul.msk.bf16.gmra.mxu3 %vm620_vm3, %v2186_v24  ;;  %v987_v29 = vadd.f32 %v953_v56, %v785_v28 }
  0xf1   : > { %v1131_v34 = vpop.f32.mrf.mxu0 }
  0xf3   : > { %v1031_v57 = vpop.f32.mrf.mxu3  ;;  %v789_v58 = vpop.f32.mrf.mxu1 }
  0xf4   : > { %1888 = vmatmul.msk.bf16.gmra.mxu0 %vm620_vm3, %v2388_v17  ;;  %v1065_v59 = vadd.f32 %v1031_v57, %v987_v29  ;;  %v790_v27 = vadd.f32 %v789_v58, %v2474_v30 }
  0xf6   : > { %1857 = vmatmul.msk.bf16.gmra.mxu1 %vm620_vm3, %v2388_v17  ;;  %v2548_v3 = vadd.f32 %v1131_v34, %v1065_v59 }
  0xf7   : > { %v955_v53 = vpop.f32.mrf.mxu2 }
  0xf8   : > { %v988_v51 = vadd.f32 %v955_v53, %v787_v49  ;;  %v2586_v53 = vld [vmem:[%s2432_s17 + $0xc] sm:$0xf] }
  0xf9   : > { %v1133_v4 = vpop.f32.mrf.mxu0 }
  0xfb   : > { %v1033_v16 = vpop.f32.mrf.mxu3  ;;  %v791_v24 = vpop.f32.mrf.mxu1 }
  0xfc   : > { %v1066_v6 = vadd.f32 %v1033_v16, %v988_v51  ;;  %1870 = vmatmul.msk.bf16.gmra.mxu2 %vm620_vm3, %v2394_v13  ;;  %v792_v62 = vadd.f32 %v791_v24, %v2490_v31  ;;  %v2589_v51 = vld [vmem:[%s2432_s17 + $0x10] sm:$0xf]  ;;  %v1340_v24 = vshrl.u32 %v2586_v53, 16 }
  0xfe   : > { %v2553_v19 = vadd.f32 %v1133_v4, %v1066_v6  ;;  %v1852_v6 = vrot.slane %v2437_v39, 9 }
  0xff   : > { %v958_v7 = vpop.f32.mrf.mxu2 }
 0x100   : > { %1879 = vmatmul.msk.bf16.gmra.mxu3 %vm620_vm3, %v2271_v32  ;;  %v989_v17 = vadd.f32 %v958_v7, %v790_v27  ;;  %v1180_v27 = vrot.slane %v2440_v40, 5  ;;  %v1353_v7 = vshrl.u32 %v2589_v51, 16 }
 0x101   : > { %v1136_v30 = vpop.f32.mrf.mxu0 }
 0x102   : > { %v1182_v40 = vrot.slane %v1180_v27, 4  ;;  %v1181_v39 = vsel %vm2298_vm7, %v1852_v6, %v1180_v27 }
 0x103   : > { %v1036_v63 = vpop.f32.mrf.mxu3  ;;  %v794_v9 = vpop.f32.mrf.mxu1 }
 0x104   : > { %1889 = vmatmul.msk.bf16.gmra.mxu0 %vm620_vm3, %v2410_v60  ;;  %v1067_v15 = vadd.f32 %v1036_v63, %v989_v17  ;;  %v795_v32 = vadd.f32 %v794_v9, %v2453_v48  ;;  %v1342_v9 = vrot.slane %v1340_v24, 4  ;;  %v1905_v24 = vld [vmem:[%s2432_s17 + $0xc] sm:$0xff] }
 0x106   : > { %1858 = vmatmul.msk.bf16.gmra.mxu1 %vm620_vm3, %v2410_v60  ;;  %v2561_v13 = vadd.f32 %v1136_v30, %v1067_v15 }
 0x107   : > { %v960_v31 = vpop.f32.mrf.mxu2 }
 0x108   : > { %v990_v18 = vadd.f32 %v960_v31, %v792_v62  ;;  %v1349_v62 = vshll.u32 %v2589_v51, 16 }
 0x109   : > { %v1138_v43 = vpop.f32.mrf.mxu0 }
 0x10b   : > { %v1038_v21 = vpop.f32.mrf.mxu3  ;;  %v796_v41 = vpop.f32.mrf.mxu1 }
 0x10c   : > { %v1068_v23 = vadd.f32 %v1038_v21, %v990_v18  ;;  %1871 = vmatmul.msk.bf16.gmra.mxu2 %vm620_vm3, %v2417_v25  ;;  %v797_v45 = vadd.f32 %v796_v41, %v2478_v20  ;;  %v1355_v21 = vrot.slane %v1353_v7, 4  ;;  %v397_v41 = vld [vmem:[%s2432_s17 + $0x14] sm:$0x1] }
 0x10e   : > { %v2566_v28 = vadd.f32 %v1138_v43, %v1068_v23  ;;  %v1351_v43 = vrot.slane %v1349_v62, 5 }
 0x10f   : > { %v963_v35 = vpop.f32.mrf.mxu2 }
 0x110   : > { %1880 = vmatmul.msk.bf16.gmra.mxu3 %vm620_vm3, %v2207_v47  ;;  %v991_v60 = vadd.f32 %v963_v35, %v795_v32 }
 0x111   : > { %v1141_v46 = vpop.f32.mrf.mxu0 }
 0x113   : > { %v1041_v11 = vpop.f32.mrf.mxu3  ;;  %v799_v12 = vpop.f32.mrf.mxu1 }
 0x114   : > { %1890 = vmatmul.msk.bf16.gmra.mxu0 %vm620_vm3, %v2444_v42  ;;  %v1069_v50 = vadd.f32 %v1041_v11, %v991_v60  ;;  %v800_v57 = vadd.f32 %v799_v12, %v2497_v37  ;;  %v1359_v11 = vshll.u32 %v397_v41, 16 }
 0x116   : > { %1859 = vmatmul.msk.bf16.gmra.mxu1 %vm620_vm3, %v2444_v42  ;;  %v2575_v25 = vadd.f32 %v1141_v46, %v1069_v50  ;;  %v1356_v46 = vor.u32 %v1355_v21, %v1351_v43 }
 0x117   : > { %v965_v48 = vpop.f32.mrf.mxu2 }
 0x118   : > { %v992_v49 = vadd.f32 %v965_v48, %v797_v45 }
 0x119   : > { %v1143_v47 = vpop.f32.mrf.mxu0 }
 0x11b   : > { %v1043_v56 = vpop.f32.mrf.mxu3  ;;  %v801_v29 = vpop.f32.mrf.mxu1 }
 0x11c   : > { %v1070_v34 = vadd.f32 %v1043_v56, %v992_v49  ;;  %1872 = vmatmul.msk.bf16.gmra.mxu2 %vm620_vm3, %v2458_v38  ;;  %v1183_v38 = vrot.slane %v2463_v61, 5  ;;  %v802_v17 = vadd.f32 %v801_v29, %v2509_v44  ;;  %v1357_v29 = vrot.slane %v1356_v46, 4 }
 0x11e   : > { %v2580_v58 = vadd.f32 %v1143_v47, %v1070_v34  ;;  %v1184_v18 = vsel %vm2298_vm7, %v1182_v40, %v1183_v38  ;;  %v1361_v34 = vrot.slane %v1359_v11, 5 }
 0x11f   : > { %v968_v20 = vpop.f32.mrf.mxu2  ;;  %v1188_v35 = vunpack.c.l.b16 %v1184_v18 }
 0x120   : > { %1881 = vmatmul.msk.bf16.gmra.mxu3 %vm620_vm3, %v2293_v1  ;;  %v993_v42 = vadd.f32 %v968_v20, %v800_v57  ;;  %v1343_v1 = vshll.u32 %v2586_v53, 16 }
 0x121   : > { %v1146_v59 = vpop.f32.mrf.mxu0 }
 0x122   : > { %v1345_v15 = vrot.slane %v1343_v1, 5 }
 0x123   : > { %v1046_v4 = vpop.f32.mrf.mxu3  ;;  %v804_v16 = vpop.f32.mrf.mxu1 }
 0x124   : > { %1891 = vmatmul.msk.bf16.gmra.mxu0 %vm620_vm3, %v2482_v55  ;;  %v1071_v37 = vadd.f32 %v1046_v4, %v993_v42  ;;  %v1346_v60 = vor.u32 %v1345_v15, %v1342_v9  ;;  %v805_v12 = vadd.f32 %v804_v16, %v2465_v2  ;;  %v1445_v4 = vrot.slane %v397_v41, 5 }
 0x126   : > { %1860 = vmatmul.msk.bf16.gmra.mxu1 %vm620_vm3, %v2482_v55  ;;  %v2602_v61 = vadd.f32 %v1146_v59, %v1071_v37  ;;  %v1187_v55 = vunpack.c.l.b16 %v1181_v39  ;;  %v1347_v47 = vrot.slane %v1346_v60, 4  ;;  %v1884_v59 = vrot.slane %v2586_v53, 9 }
 0x127   : > { %v970_v30 = vpop.f32.mrf.mxu2 }
 0x128   : > { %v994_v63 = vadd.f32 %v970_v30, %v802_v17  ;;  %v1189_v48 = vpack.c.b16 %v1188_v35, %v1187_v55  ;;  %v1352_v42 = vsel %vm2144_vm4, %v1347_v47, %v1351_v43 }
 0x129   : > { %v1148_v31 = vpop.f32.mrf.mxu0  ;;  %v1365_v1 = vunpack.c.l.b16 %v1352_v42 }
 0x12b   : > { %v1048_v44 = vpop.f32.mrf.mxu3  ;;  %v806_v23 = vpop.f32.mrf.mxu1 }
 0x12c   : > { %v1072_v32 = vadd.f32 %v1048_v44, %v994_v63  ;;  %1873 = vmatmul.msk.bf16.gmra.mxu2 %vm620_vm3, %v2495_v8  ;;  %v1442_v8 = vrot.slane %v2589_v51, 5  ;;  %v807_v16 = vadd.f32 %v806_v23, %v2484_v22 }
 0x12e   : > { %v2612_v50 = vadd.f32 %v1148_v31, %v1072_v32  ;;  %v1444_v27 = vrot.slane %v1442_v8, 4  ;;  %v1443_v36 = vsel %vm2298_vm7, %v1884_v59, %v1442_v8  ;;  %v2658_v8 = vld [vmem:[%s2749_s3] ss:$0 sm:$0xff] }
 0x12f   : > { %v973_v45 = vpop.f32.mrf.mxu2  ;;  %v1449_v30 = vunpack.c.l.b16 %v1443_v36 }
 0x130   : > { %1882 = vmatmul.msk.bf16.gmra.mxu3 %vm620_vm3, %v2501_v26  ;;  %v995_v49 = vadd.f32 %v973_v45, %v805_v12  ;;  %v1362_v26 = vsel %vm2144_vm4, %v1357_v29, %v1361_v34  ;;  %v1446_v53 = vsel %vm2298_vm7, %v1444_v27, %v1445_v4 }
 0x131   : > { %v1151_v56 = vpop.f32.mrf.mxu0  ;;  %v1366_v6 = vunpack.c.l.b16 %v1362_v26  ;;  %v1450_v63 = vunpack.c.l.b16 %v1446_v53 }
 0x133   : > { %v1051_v57 = vpop.f32.mrf.mxu3  ;;  %v809_v20 = vpop.f32.mrf.mxu1  ;;  %v1367_v17 = vpack.c.b16 %v1366_v6, %v1365_v1  ;;  %v1451_v54 = vpack.c.b16 %v1450_v63, %v1449_v30 }
 0x134   : > { %1892 = vmatmul.msk.bf16.gmra.mxu0 %vm620_vm3, %v1189_v48  ;;  %v1073_v2 = vadd.f32 %v1051_v57, %v995_v49  ;;  %v810_v9 = vadd.f32 %v809_v20, %v2503_v10  ;;  %v1907_v49 = vld [vmem:[%s2649_s7] sm:$0xff]  }
 0x135   : > { %v1908_v34 = vunpack.c.l.bf16 %v1907_v49 }
 0x136   : > { %1861 = vmatmul.msk.bf16.gmra.mxu1 %vm620_vm3, %v1189_v48  ;;  %v2625_v51 = vadd.f32 %v1151_v56, %v1073_v2 }
 0x137   : > { %v975_v38 = vpop.f32.mrf.mxu2 }
 0x138   : > { %v996_v37 = vadd.f32 %v975_v38, %v807_v16 }
 0x139   : > { %v1153_v40 = vpop.f32.mrf.mxu0 }
 0x13b   : > { %v1053_v62 = vpop.f32.mrf.mxu3  ;;  %v811_v7 = vpop.f32.mrf.mxu1 }
 0x13c   : > { %v1074_v22 = vadd.f32 %v1053_v62, %v996_v37  ;;  %1874 = vmatmul.msk.bf16.gmra.mxu2 %vm620_vm3, %v1905_v24  ;;  %v812_v10 = vadd.f32 %v811_v7, %v2511_v0  ;;  %v1909_v37 = vunpack.c.h.bf16 %v1907_v49 }
 0x13e   : > { %v2635_v15 = vadd.f32 %v1153_v40, %v1074_v22 }
 0x13f   : > { %v978_v31 = vpop.f32.mrf.mxu2 }
 0x140   : > { %1883 = vmatmul.msk.bf16.gmra.mxu3 %vm620_vm3, %v1367_v17  ;;  %v997_v39 = vadd.f32 %v978_v31, %v810_v9 }
 0x141   : > { %v1156_v18 = vpop.f32.mrf.mxu0 }
 0x143   : > { %v1056_v43 = vpop.f32.mrf.mxu3  ;;  %v1205_v21 = vpop.f32.mrf.mxu1 }
 0x144   : > { %1893 = vmatmul.msk.bf16.gmra.mxu0 %vm620_vm3, %v1451_v54  ;;  %v1075_v41 = vadd.f32 %v1056_v43, %v997_v39  ;;  %v1245_v11 = vadd.f32 %v1205_v21, %v2521_v5 }
 0x146   : > { %v2641_v44 = vadd.f32 %v1156_v18, %v1075_v41 }
 0x147   : > { %v980_v23 = vpop.f32.mrf.mxu2 }
 0x148   : > { %v998_v32 = vadd.f32 %v980_v23, %v812_v10 }
 0x149   : > { %v1158_v55 = vpop.f32.mrf.mxu0 }
 0x14b   : > { %v1058_v35 = vpop.f32.mrf.mxu3  ;;  %v1207_v60 = vpop.f32.mrf.mxu1 }
 0x14c   : > { %v1076_v46 = vadd.f32 %v1058_v35, %v998_v32  ;;  %v1246_v57 = vadd.f32 %v1207_v60, %v2525_v14  ;;  %v1922_v60 = vld [vmem:[%s2649_s7 + $0x8] sm:$0xff]  }
 0x14d   : > { %v1912_v49 = vunpack.c.l.bf16 %v1922_v60 }
 0x14e   : > { %v2651_v0 = vadd.f32 %v1158_v55, %v1076_v46 }
 0x14f   : > { %v1283_v12 = vpop.f32.mrf.mxu2 }
 0x150   : > { %v1323_v45 = vadd.f32 %v1283_v12, %v1245_v11 }
 0x151   : > { %v1467_v48 = vpop.f32.mrf.mxu0 }
 0x153   : > { %v1383_v47 = vpop.f32.mrf.mxu3  ;;  %v1210_v56 = vpop.f32.mrf.mxu1 }
 0x154   : > { %v1423_v29 = vadd.f32 %v1383_v47, %v1323_v45  ;;  %v1247_v24 = vadd.f32 %v1210_v56, %v2534_v33 }
 0x156   : > { %v1507_v5 = vadd.f32 %v1467_v48, %v1423_v29 }
 0x157   : > { %v1285_v20 = vpop.f32.mrf.mxu2 }
 0x158   : > { %v1539_v2 = vadd.f32 %v1908_v34, %v1507_v5  ;;  %v1324_v42 = vadd.f32 %v1285_v20, %v1246_v57 }
 0x159   : > { %v1469_v26 = vpop.f32.mrf.mxu0 }
 0x15a   : > { %v1559_v59 = vadd.f32 %v2658_v8, %v1539_v2 }
 0x15b   : > { %v1385_v27 = vpop.f32.mrf.mxu3  ;;  %v1212_v4 = vpop.f32.mrf.mxu1 }
 0x15c   : > { %v1575_v16 = vmax.f32 %v1559_v59, 0.0  ;;  %v1424_v38 = vadd.f32 %v1385_v27, %v1324_v42  ;;  %v1248_v63 = vadd.f32 %v1212_v4, %v2539_v52  ;;  %v1913_v59 = vunpack.c.h.bf16 %v1922_v60 }
 0x15e   : > { %1591 = vst.msk [vmem:[%s2665_s14] sm:$0xff] %vm620_vm3, %v1575_v16  ;;  %v1508_v14 = vadd.f32 %v1469_v26, %v1424_v38 }
 0x15f   : > { %v1288_v1 = vpop.f32.mrf.mxu2 }
 0x160   : > { %v1540_v6 = vadd.f32 %v1909_v37, %v1508_v14  ;;  %v1325_v40 = vadd.f32 %v1288_v1, %v1247_v24 }
 0x161   : > { %v1472_v36 = vpop.f32.mrf.mxu0 }
 0x162   : > { %v1560_v53 = vadd.f32 %v2658_v8, %v1540_v6 }
 0x163   : > { %v1388_v62 = vpop.f32.mrf.mxu3  ;;  %v1215_v7 = vpop.f32.mrf.mxu1 }
 0x164   : > { %v1576_v22 = vmax.f32 %v1560_v53, 0.0  ;;  %v1425_v17 = vadd.f32 %v1388_v62, %v1325_v40  ;;  %v1249_v23 = vadd.f32 %v1215_v7, %v2548_v3 }
 0x166   : > { %1592 = vst.msk [vmem:[%s2665_s14 + $0x8] sm:$0xff] %vm620_vm3, %v1576_v22  ;;  %v1509_v30 = vadd.f32 %v1472_v36, %v1425_v17 }
 0x167   : > { %v1290_v9 = vpop.f32.mrf.mxu2 }
 0x168   : > { %v1541_v31 = vadd.f32 %v1908_v34, %v1509_v30  ;;  %v1326_v33 = vadd.f32 %v1290_v9, %v1248_v63 }
 0x169   : > { %v1474_v54 = vpop.f32.mrf.mxu0 }
 0x16a   : > { %v1561_v39 = vadd.f32 %v2658_v8, %v1541_v31 }
 0x16b   : > { %v1390_v18 = vpop.f32.mrf.mxu3  ;;  %v1217_v43 = vpop.f32.mrf.mxu1 }
 0x16c   : > { %v1577_v21 = vmax.f32 %v1561_v39, 0.0  ;;  %v1426_v41 = vadd.f32 %v1390_v18, %v1326_v33  ;;  %v1250_v56 = vadd.f32 %v1217_v43, %v2553_v19 }
 0x16e   : > { %1593 = vst.msk [vmem:[%s2665_s14 + $0x10] sm:$0xff] %vm620_vm3, %v1577_v21  ;;  %v1510_v10 = vadd.f32 %v1474_v54, %v1426_v41  ;;  %v1923_v21 = vld [vmem:[%s2649_s7 + $0x10] sm:$0xff]  }
 0x16f   : > { %v1293_v32 = vpop.f32.mrf.mxu2 }
 0x170   : > { %v1542_v55 = vadd.f32 %v1909_v37, %v1510_v10  ;;  %v1327_v52 = vadd.f32 %v1293_v32, %v1249_v23 }
 0x171   : > { %v1477_v35 = vpop.f32.mrf.mxu0 }
 0x172   : > { %v1562_v46 = vadd.f32 %v2658_v8, %v1542_v55 }
 0x173   : > { %v1393_v11 = vpop.f32.mrf.mxu3  ;;  %v1220_v12 = vpop.f32.mrf.mxu1 }
 0x174   : > { %v1578_v45 = vmax.f32 %v1562_v46, 0.0  ;;  %v1427_v48 = vadd.f32 %v1393_v11, %v1327_v52  ;;  %v1251_v4 = vadd.f32 %v1220_v12, %v2561_v13  ;;  %v1916_v52 = vunpack.c.l.bf16 %v1923_v21 }
 0x176   : > { %1594 = vst.msk [vmem:[%s2665_s14 + $0x18] sm:$0xff] %vm620_vm3, %v1578_v45  ;;  %v1511_v47 = vadd.f32 %v1477_v35, %v1427_v48 }
 0x177   : > { %v1295_v29 = vpop.f32.mrf.mxu2 }
 0x178   : > { %v1543_v3 = vadd.f32 %v1912_v49, %v1511_v47  ;;  %v1328_v34 = vadd.f32 %v1295_v29, %v1250_v56  ;;  %v1917_v29 = vunpack.c.h.bf16 %v1923_v21 }
 0x179   : > { %v1479_v5 = vpop.f32.mrf.mxu0 }
 0x17a   : > { %v1563_v57 = vadd.f32 %v2658_v8, %v1543_v3 }
 0x17b   : > { %v1395_v20 = vpop.f32.mrf.mxu3  ;;  %v1222_v2 = vpop.f32.mrf.mxu1 }
 0x17c   : > { %v1579_v42 = vmax.f32 %v1563_v57, 0.0  ;;  %v1428_v26 = vadd.f32 %v1395_v20, %v1328_v34  ;;  %v1252_v53 = vadd.f32 %v1222_v2, %v2566_v28 }
 0x17e   : > { %1595 = vst.msk [vmem:[%s2665_s14 + $0x20] sm:$0xff] %vm620_vm3, %v1579_v42  ;;  %v1512_v27 = vadd.f32 %v1479_v5, %v1428_v26 }
 0x17f   : > { %v1298_v16 = vpop.f32.mrf.mxu2 }
 0x180   : > { %v1544_v38 = vadd.f32 %v1913_v59, %v1512_v27  ;;  %v1329_v19 = vadd.f32 %v1298_v16, %v1251_v4 }
 0x181   : > { %v1482_v37 = vpop.f32.mrf.mxu0 }
 0x182   : > { %v1564_v14 = vadd.f32 %v2658_v8, %v1544_v38 }
 0x183   : > { %v1398_v24 = vpop.f32.mrf.mxu3  ;;  %v1225_v1 = vpop.f32.mrf.mxu1 }
 0x184   : > { %v1580_v6 = vmax.f32 %v1564_v14, 0.0  ;;  %v1429_v40 = vadd.f32 %v1398_v24, %v1329_v19  ;;  %v1253_v54 = vadd.f32 %v1225_v1, %v2575_v25 }
 0x186   : > { %1596 = vst.msk [vmem:[%s2665_s14 + $0x28] sm:$0xff] %vm620_vm3, %v1580_v6  ;;  %v1513_v36 = vadd.f32 %v1482_v37, %v1429_v40 }
 0x187   : > { %v1300_v62 = vpop.f32.mrf.mxu2 }
 0x188   : > { %v1545_v7 = vadd.f32 %v1912_v49, %v1513_v36  ;;  %v1330_v13 = vadd.f32 %v1300_v62, %v1252_v53 }
 0x189   : > { %v1484_v22 = vpop.f32.mrf.mxu0 }
 0x18a   : > { %v1565_v17 = vadd.f32 %v2658_v8, %v1545_v7 }
 0x18b   : > { %v1400_v30 = vpop.f32.mrf.mxu3  ;;  %v1227_v63 = vpop.f32.mrf.mxu1 }
 0x18c   : > { %v1581_v9 = vmax.f32 %v1565_v17, 0.0  ;;  %v1430_v31 = vadd.f32 %v1400_v30, %v1330_v13  ;;  %v1254_v60 = vadd.f32 %v1227_v63, %v2580_v58 }
 0x18e   : > { %1597 = vst.msk [vmem:[%s2665_s14 + $0x30] sm:$0xff] %vm620_vm3, %v1581_v9  ;;  %v1514_v33 = vadd.f32 %v1484_v22, %v1430_v31  ;;  %v1924_v22 = vld [vmem:[%s2649_s7 + $0x18] sm:$0xff]  }
 0x18f   : > { %v1303_v39 = vpop.f32.mrf.mxu2  ;;  %v1920_v31 = vunpack.c.l.bf16 %v1924_v22 }
 0x190   : > { %v1546_v18 = vadd.f32 %v1913_v59, %v1514_v33  ;;  %v1331_v28 = vadd.f32 %v1303_v39, %v1253_v54 }
 0x191   : > { %v1487_v43 = vpop.f32.mrf.mxu0 }
 0x192   : > { %v1566_v41 = vadd.f32 %v2658_v8, %v1546_v18 }
 0x193   : > { %v1403_v10 = vpop.f32.mrf.mxu3  ;;  %v1230_v23 = vpop.f32.mrf.mxu1 }
 0x194   : > { %v1582_v32 = vmax.f32 %v1566_v41, 0.0  ;;  %v1431_v55 = vadd.f32 %v1403_v10, %v1331_v28  ;;  %v1255_v34 = vadd.f32 %v1230_v23, %v2602_v61 }
 0x196   : > { %1598 = vst.msk [vmem:[%s2665_s14 + $0x38] sm:$0xff] %vm620_vm3, %v1582_v32  ;;  %v1515_v35 = vadd.f32 %v1487_v43, %v1431_v55  ;;  %v1921_v32 = vunpack.c.h.bf16 %v1924_v22 }
 0x197   : > { %v1305_v46 = vpop.f32.mrf.mxu2 }
 0x198   : > { %v1547_v25 = vadd.f32 %v1916_v52, %v1515_v35  ;;  %v1332_v11 = vadd.f32 %v1305_v46, %v1254_v60 }
 0x199   : > { %v1489_v12 = vpop.f32.mrf.mxu0 }
 0x19a   : > { %v1567_v45 = vadd.f32 %v2658_v8, %v1547_v25 }
 0x19b   : > { %v1405_v48 = vpop.f32.mrf.mxu3  ;;  %v1232_v49 = vpop.f32.mrf.mxu1 }
 0x19c   : > { %v1583_v47 = vmax.f32 %v1567_v45, 0.0  ;;  %v1432_v56 = vadd.f32 %v1405_v48, %v1332_v11  ;;  %v1256_v16 = vadd.f32 %v1232_v49, %v2612_v50 }
 0x19e   : > { %1599 = vst.msk [vmem:[%s2665_s14 + $0x40] sm:$0xff] %vm620_vm3, %v1583_v47  ;;  %v1516_v3 = vadd.f32 %v1489_v12, %v1432_v56 }
 0x19f   : > { %v1308_v5 = vpop.f32.mrf.mxu2 }
 0x1a0   : > { %v1548_v57 = vadd.f32 %v1917_v29, %v1516_v3  ;;  %v1333_v58 = vadd.f32 %v1308_v5, %v1255_v34 }
 0x1a1   : > { %v1492_v20 = vpop.f32.mrf.mxu0 }
 0x1a2   : > { %v1568_v2 = vadd.f32 %v2658_v8, %v1548_v57 }
 0x1a3   : > { %v1408_v42 = vpop.f32.mrf.mxu3  ;;  %v1235_v27 = vpop.f32.mrf.mxu1 }
 0x1a4   : > { %v1584_v26 = vmax.f32 %v1568_v2, 0.0  ;;  %v1433_v59 = vadd.f32 %v1408_v42, %v1333_v58  ;;  %v1257_v36 = vadd.f32 %v1235_v27, %v2625_v51 }
 0x1a6   : > { %1600 = vst.msk [vmem:[%s2665_s14 + $0x48] sm:$0xff] %vm620_vm3, %v1584_v26  ;;  %v1517_v4 = vadd.f32 %v1492_v20, %v1433_v59 }
 0x1a7   : > { %v1310_v38 = vpop.f32.mrf.mxu2 }
 0x1a8   : > { %v1549_v19 = vadd.f32 %v1916_v52, %v1517_v4  ;;  %v1334_v61 = vadd.f32 %v1310_v38, %v1256_v16 }
 0x1a9   : > { %v1494_v37 = vpop.f32.mrf.mxu0 }
 0x1aa   : > { %v1569_v14 = vadd.f32 %v2658_v8, %v1549_v19 }
 0x1ab   : > { %v1410_v24 = vpop.f32.mrf.mxu3  ;;  %v1237_v53 = vpop.f32.mrf.mxu1 }
 0x1ac   : > { %v1585_v1 = vmax.f32 %v1569_v14, 0.0  ;;  %v1434_v6 = vadd.f32 %v1410_v24, %v1334_v61  ;;  %v1258_v54 = vadd.f32 %v1237_v53, %v2635_v15 }
 0x1ae   : > { %1601 = vst.msk [vmem:[%s2665_s14 + $0x50] sm:$0xff] %vm620_vm3, %v1585_v1  ;;  %v1518_v40 = vadd.f32 %v1494_v37, %v1434_v6 }
 0x1af   : > { %v1313_v62 = vpop.f32.mrf.mxu2 }
 0x1b0   : > { %v1550_v7 = vadd.f32 %v1917_v29, %v1518_v40  ;;  %v1335_v50 = vadd.f32 %v1313_v62, %v1257_v36 }
 0x1b1   : > { %v1497_v13 = vpop.f32.mrf.mxu0 }
 0x1b2   : > { %v1570_v17 = vadd.f32 %v2658_v8, %v1550_v7 }
 0x1b3   : > { %v1413_v30 = vpop.f32.mrf.mxu3  ;;  %v1240_v28 = vpop.f32.mrf.mxu1 }
 0x1b4   : > { %v1586_v63 = vmax.f32 %v1570_v17, 0.0  ;;  %v1435_v9 = vadd.f32 %v1413_v30, %v1335_v50  ;;  %v1259_v52 = vadd.f32 %v1240_v28, %v2641_v44 }
 0x1b6   : > { %1602 = vst.msk [vmem:[%s2665_s14 + $0x58] sm:$0xff] %vm620_vm3, %v1586_v63  ;;  %v1519_v33 = vadd.f32 %v1497_v13, %v1435_v9 }
 0x1b7   : > { %v1315_v39 = vpop.f32.mrf.mxu2 }
 0x1b8   : > { %v1551_v51 = vadd.f32 %v1920_v31, %v1519_v33  ;;  %v1336_v18 = vadd.f32 %v1315_v39, %v1258_v54 }
 0x1b9   : > { %v1499_v43 = vpop.f32.mrf.mxu0 }
 0x1ba   : > { %v1571_v21 = vadd.f32 %v2658_v8, %v1551_v51 }
 0x1bb   : > { %v1415_v41 = vpop.f32.mrf.mxu3  ;;  %v1242_v25 = vpop.f32.mrf.mxu1 }
 0x1bc   : > { %v1587_v10 = vmax.f32 %v1571_v21, 0.0  ;;  %v1436_v23 = vadd.f32 %v1415_v41, %v1336_v18  ;;  %v1260_v47 = vadd.f32 %v1242_v25, %v2651_v0 }
 0x1be   : > { %1603 = vst.msk [vmem:[%s2665_s14 + $0x60] sm:$0xff] %vm620_vm3, %v1587_v10  ;;  %v1520_v55 = vadd.f32 %v1499_v43, %v1436_v23 }
 0x1bf   : > { %v1318_v35 = vpop.f32.mrf.mxu2 }
 0x1c0   : > { %v1552_v60 = vadd.f32 %v1921_v32, %v1520_v55  ;;  %v1337_v15 = vadd.f32 %v1318_v35, %v1259_v52 }
 0x1c1   : > { %v1502_v11 = vpop.f32.mrf.mxu0 }
 0x1c2   : > { %v1572_v46 = vadd.f32 %v2658_v8, %v1552_v60 }
 0x1c3   : > { %v1418_v12 = vpop.f32.mrf.mxu3 }
 0x1c4   : > { %v1588_v45 = vmax.f32 %v1572_v46, 0.0  ;;  %v1437_v48 = vadd.f32 %v1418_v12, %v1337_v15 }
 0x1c6   : > { %1604 = vst.msk [vmem:[%s2665_s14 + $0x68] sm:$0xff] %vm620_vm3, %v1588_v45  ;;  %v1521_v49 = vadd.f32 %v1502_v11, %v1437_v48 }
 0x1c7   : > { %v1320_v56 = vpop.f32.mrf.mxu2 }
 0x1c8   : > { %v1553_v29 = vadd.f32 %v1920_v31, %v1521_v49  ;;  %v1338_v44 = vadd.f32 %v1320_v56, %v1260_v47 }
 0x1c9   : > { %v1504_v58 = vpop.f32.mrf.mxu0 }
 0x1ca   : > { %v1573_v3 = vadd.f32 %v2658_v8, %v1553_v29 }
 0x1cb   : > { %v1420_v34 = vpop.f32.mrf.mxu3 }
 0x1cc   : > { %v1589_v5 = vmax.f32 %v1573_v3, 0.0  ;;  %v1438_v57 = vadd.f32 %v1420_v34, %v1338_v44 }
 0x1ce   : > { %1605 = vst.msk [vmem:[%s2665_s14 + $0x70] sm:$0xff] %vm620_vm3, %v1589_v5  ;;  %v1522_v20 = vadd.f32 %v1504_v58, %v1438_v57 }
 0x1d0   : > { %v1554_v2 = vadd.f32 %v1921_v32, %v1522_v20 }
 0x1d2   : > { %v1574_v42 = vadd.f32 %v2658_v8, %v1554_v2 }
 0x1d4   : > { %v1590_v26 = vmax.f32 %v1574_v42, 0.0 }
 0x1d6   : > { %1606 = vst.msk [vmem:[%s2665_s14 + $0x78] sm:$0xff] %vm620_vm3, %v1590_v26 }
 0x1d7 PF: > { %s15_s22 = sadd.s32 1, %s2011_s22   ;;  %s2756_s18 = smov %s2003_s20 }
 0x1d8   : > { %p12_p10 = scmp.ge.s32.totalorder %s15_s22, 6   ;;  %s2757_s19 = smov %s2007_s21 }
 0x1d9   : > { %s2758_s20 = smov %s2761_s23  ;;  %s2759_s21 = smov %s2765_s24 }
 0x1da   :  { %14 = sbr.rel (!%p12_p10) target bundleno = 3 (0x3), region = 84 }

</bundles_post_ra>
